<compile_context>
chip_gen: v7x
topology: tpu7x:2x2x1
jax: 0.10.0
libtpu: 0.0.40
codegen_flags: <defaults>
</compile_context>

<pallas_src>
import math

import jax
import jax.numpy as jnp
from jax import lax
from jax.experimental import pallas as pl
from jax.experimental.pallas import tpu as pltpu

# ----------------------------- hyperparameters ------------------------------
MAX_SEQ_LEN = 32            # hp.max_seq_len
D_MODEL = 32                # hp.length_predictor_hidden
N_LAYERS = 2                # hp.length_predictor_layer
N_HEAD = 2                  # hp.length_predictor_head
D_K = D_MODEL // N_HEAD
D_V = D_K
D_INNER = 64                # hp.fft_conv1d_filter_size
K1, K2 = 9, 1               # FastSpeech FFT conv1d kernel sizes [9, 1]
PAD1 = (K1 - 1) // 2
LN_EPS = 1e-5               # torch.nn.LayerNorm default
NEG_INF = -1e9              # masked_fill(-inf) approximation (keeps padded rows finite)

QKV_W = 3 * N_HEAD * D_K    # 96 useful fused-projection columns
QKV_PAD = 128               # fused QKV output padded to a full lane tile
D_PAD = 128                 # conv1 filter width padded 64 -> 128 (full-lane tiles)


# ------------------------------- kernel -------------------------------------
def _layer_norm(x, g, b):
    mu = jnp.mean(x, axis=-1, keepdims=True)
    var = jnp.mean(jnp.square(x - mu), axis=-1, keepdims=True)
    return (x - mu) * lax.rsqrt(var + LN_EPS) * g[None, :] + b[None, :]


def length_predictor_kernel(
    x_ref,            # (BT, H) f32      flattened encoder_output rows
    pos_ref,          # (BT, H) f32      sinusoid pos-enc tiled over the block
    keepc_ref,        # (BT, 1) f32      1.0 = valid timestep (sublane-major)
    keepr_ref,        # (1, 1, BT) f32   same, lane-major
    exc_ref,          # (BT, 1) i32      example id per row (sublane-major)
    exr_ref,          # (1, BT) i32      example id per row (lane-major)
    wqkv_ref, bqkv_ref,                  # (L,H,128) bf16 / (L,128) f32
    wo_ref, bo_ref,                      # (L,NH*DV,H) bf16 / (L,H) f32
    ln1_g_ref, ln1_b_ref,                # (L,H) f32
    conv1_w_ref, conv1_b_ref,            # (L,K1,H,128) bf16 / (L,128) f32
    conv2_w_ref, conv2_b_ref,            # (L,128,H) bf16 / (L,H) f32
    ln2_g_ref, ln2_b_ref,                # (L,H) f32
    wlin_ref, blin_ref,                  # (1,H) f32 / (1,1) f32
    out_ref,          # (1, 1, BT) f32   lane-dense output row
    xpad_ref,         # VMEM (B_blk, T+2*PAD1, H) f32 scratch ('same' conv padding)
):
    BT, H = x_ref.shape
    B_blk, TP, _ = xpad_ref.shape
    T = TP - 2 * PAD1
    bf16 = jnp.bfloat16
    NHD = N_HEAD * D_K

    # ---------------- hoisted per-grid-step constants -----------------------
    keep_c = keepc_ref[...]                       # (BT, 1)
    keep_r = keepr_ref[0]                         # (1, BT)
    same_ex = exc_ref[...] == exr_ref[...]        # (BT, BT) block-diagonal pattern
    allow = jnp.logical_and(same_ex, keep_r > 0.5)
    attn_bias = jnp.where(allow, 0.0, NEG_INF).astype(jnp.float32)   # (BT, BT)

    # zero the conv 'same'-padding scratch once per grid step
    xpad_ref[...] = jnp.zeros(xpad_ref.shape, xpad_ref.dtype)

    # positional encoding (zero at padded positions, FastSpeech padding_idx=0)
    x = x_ref[...] + pos_ref[...] * keep_c        # (BT, H) f32

    for l in range(N_LAYERS):
        # -------- multi-head self-attention (post-norm), block-diagonal ------
        residual = x
        qkv = (jnp.dot(x.astype(bf16), wqkv_ref[l],
                       preferred_element_type=jnp.float32)
               + bqkv_ref[l][None, :])            # (BT, 128): [Q | K | V | 0]
        ctx = []
        for h in range(N_HEAD):                   # unrolled (2 heads)
            qh = qkv[:, h * D_K:(h + 1) * D_K].astype(bf16)           # scale folded in
            kh = qkv[:, NHD + h * D_K: NHD + (h + 1) * D_K].astype(bf16)
            vh = qkv[:, 2 * NHD + h * D_K: 2 * NHD + (h + 1) * D_K].astype(bf16)
            s = lax.dot_general(qh, kh, (((1,), (1,)), ((), ())),
                                preferred_element_type=jnp.float32) + attn_bias
            m = jnp.max(s, axis=-1, keepdims=True)
            e = jnp.exp(s - m)
            p = e * pl.reciprocal(jnp.sum(e, axis=-1, keepdims=True), approx=True)
            ctx.append(jnp.dot(p.astype(bf16), vh,
                               preferred_element_type=jnp.float32))   # (BT, DV)
        ctx = jnp.concatenate(ctx, axis=-1)                           # (BT, NH*DV)
        o = (jnp.dot(ctx.astype(bf16), wo_ref[l],
                     preferred_element_type=jnp.float32) + bo_ref[l][None, :])
        x = _layer_norm(o + residual, ln1_g_ref[l], ln1_b_ref[l]) * keep_c

        # -------- conv1d(9) / ReLU / conv1d(1) feed-forward (no im2col) -------
        residual = x
        xpad_ref[:, PAD1:PAD1 + T, :] = x.reshape(B_blk, T, H)
        acc = jnp.zeros((BT, D_PAD), jnp.float32)
        for t in range(K1):                       # K1 accumulated matmuls
            win = xpad_ref[:, t:t + T, :].reshape(BT, H).astype(bf16)
            acc = acc + jnp.dot(win, conv1_w_ref[l, t],
                                preferred_element_type=jnp.float32)
        h1 = jnp.maximum(acc + conv1_b_ref[l][None, :], 0.0)
        ff = (jnp.dot(h1.astype(bf16), conv2_w_ref[l],
                      preferred_element_type=jnp.float32) + conv2_b_ref[l][None, :])
        x = _layer_norm(ff + residual, ln2_g_ref[l], ln2_b_ref[l]) * keep_c

    # -------- final Linear(H,1) as (1,H)x(H,BT): lane-dense (1,BT) store ------
    out_row = lax.dot_general(wlin_ref[...], x, (((1,), (1,)), ((), ())),
                              preferred_element_type=jnp.float32) + blin_ref[...]
    out_ref[...] = (out_row * keep_r).reshape(1, 1, BT)   # masked_fill(mask, 0.0)


# ------------------------------- wrapper -------------------------------------
def _full_spec(a):
    nd = a.ndim
    return pl.BlockSpec(a.shape, lambda b, _nd=nd: (0,) * _nd)


def _choose_batch_block(B, T, target_rows=1024):
    """Batch tile so B_blk*T ~= target rows; multiple of 8; grid >= 2 when the
    batch allows it (v7x has two TensorCores); padding trimmed afterwards."""
    b_cover = max(8, -(-B // 8) * 8)
    bb = max(8, (max(1, target_rows // T) // 8) * 8)
    bb = min(bb, b_cover)
    if bb >= b_cover and b_cover >= 16:          # keep at least 2 grid steps
        bb = max(8, -(-(b_cover // 2) // 8) * 8)
    n_blocks = -(-B // bb)
    per_block = -(-B // n_blocks)                # shrink block to limit batch padding
    return max(8, ((per_block + 7) // 8) * 8)


def _prepare_weights(p):
    """Reshape/cast weights once on the host into kernel-friendly layouts.
    TODO(synk): real PyTorch checkpoints store Linear weights as (out,in) and
    Conv1d weights as (out,in,k); they must be transposed into these layouts."""
    L, H = N_LAYERS, D_MODEL
    bf16 = jnp.bfloat16
    scale = 1.0 / math.sqrt(D_K)
    # fused QKV projection: columns [Q(32)|K(32)|V(32)|zeros(32)],
    # attention scale 1/sqrt(d_k) folded into the Q weight and bias.
    zw = jnp.zeros((L, H, QKV_PAD - QKV_W), jnp.float32)
    wqkv = jnp.concatenate([p["wq"] * scale, p["wk"], p["wv"], zw], -1).astype(bf16)
    zb = jnp.zeros((L, QKV_PAD - QKV_W), jnp.float32)
    bqkv = jnp.concatenate([p["bq"] * scale, p["bk"], p["bv"], zb], -1)
    wo = p["wo"].astype(bf16)                                       # (L, NH*DV, H)
    conv1_w = jnp.pad(p["conv1_w"],
                      ((0, 0), (0, 0), (0, 0), (0, D_PAD - D_INNER))).astype(bf16)
    conv1_b = jnp.pad(p["conv1_b"], ((0, 0), (0, D_PAD - D_INNER)))
    conv2_w = jnp.pad(p["conv2_w"].reshape(L, D_INNER, H),
                      ((0, 0), (0, D_PAD - D_INNER), (0, 0))).astype(bf16)
    wlin = p["wlin"].reshape(1, H)
    return [wqkv, bqkv, wo, p["bo"], p["ln1_g"], p["ln1_b"],
            conv1_w, conv1_b, conv2_w, p["conv2_b"], p["ln2_g"], p["ln2_b"],
            wlin, p["blin"]]


def length_predictor(encoder_output, src_seq, mask, params):
    """encoder_output: (B, T, H) f32; src_seq: (B, T) int (unused by forward);
    mask: (B, T) bool, True = padded.  Returns (B, T) f32."""
    del src_seq  # TODO(synk): reference Decoder builds positions internally (1..T assumed)
    B, T0, H = encoder_output.shape
    assert H == D_MODEL
    T = -(-T0 // 8) * 8                          # pad time to a sublane multiple
    assert T <= MAX_SEQ_LEN
    if T != T0:                                  # extra timesteps are fully masked
        encoder_output = jnp.pad(encoder_output, ((0, 0), (0, T - T0), (0, 0)))
        mask = jnp.pad(mask, ((0, 0), (0, T - T0)), constant_values=True)

    B_blk = _choose_batch_block(B, T)
    n_blocks = -(-B // B_blk)
    B_pad = n_blocks * B_blk
    if B_pad != B:                               # dummy rows: zero input, fully masked
        encoder_output = jnp.pad(encoder_output, ((0, B_pad - B), (0, 0), (0, 0)))
        mask = jnp.pad(mask, ((0, B_pad - B), (0, 0)), constant_values=True)
    BT = B_blk * T

    keep = 1.0 - mask.astype(jnp.float32)                      # 1.0 = valid
    x_flat = encoder_output.reshape(B_pad * T, H)
    keep_col = keep.reshape(B_pad * T, 1)
    keep_row = keep.reshape(n_blocks, 1, BT)
    ex_id = (jnp.arange(BT, dtype=jnp.int32) // T)             # example id per row
    exid_col = ex_id.reshape(BT, 1)
    exid_row = ex_id.reshape(1, BT)
    posenc = jnp.tile(params["posenc"][1:T + 1], (B_blk, 1))   # (BT, H), rows 1..T
    weights = _prepare_weights(params)

    in_specs = [
        pl.BlockSpec((BT, H), lambda b: (b, 0)),        # encoder output rows
        pl.BlockSpec((BT, H), lambda b: (0, 0)),        # tiled positional encoding
        pl.BlockSpec((BT, 1), lambda b: (b, 0)),        # keep mask, sublane-major
        pl.BlockSpec((1, 1, BT), lambda b: (b, 0, 0)),  # keep mask, lane-major
        pl.BlockSpec((BT, 1), lambda b: (0, 0)),        # example ids, sublane-major
        pl.BlockSpec((1, BT), lambda b: (0, 0)),        # example ids, lane-major
    ] + [_full_spec(w) for w in weights]

    out = pl.pallas_call(
        length_predictor_kernel,
        out_shape=jax.ShapeDtypeStruct((n_blocks, 1, BT), jnp.float32),
        grid=(n_blocks,),
        in_specs=in_specs,
        out_specs=pl.BlockSpec((1, 1, BT), lambda b: (b, 0, 0)),
        scratch_shapes=[pltpu.VMEM((B_blk, T + 2 * PAD1, H), jnp.float32)],
        compiler_params=pltpu.CompilerParams(
            dimension_semantics=("parallel",),
            vmem_limit_bytes=48 * 1024 * 1024),
    )(x_flat, posenc, keep_col, keep_row, exid_col, exid_row, *weights)
    return out.reshape(B_pad, T)[:B, :T0]


# --------------------------- deterministic params ----------------------------
def sinusoid_table(n_pos, d):
    pos = jnp.arange(n_pos, dtype=jnp.float32)[:, None]
    i = jnp.arange(d, dtype=jnp.float32)[None, :]
    angle = pos / jnp.power(10000.0, 2.0 * jnp.floor(i / 2.0) / d)
    even = jnp.sin(angle)
    odd = jnp.cos(angle)
    is_even = (jnp.arange(d) % 2 == 0)[None, :]
    return jnp.where(is_even, even, odd).astype(jnp.float32)


def init_params(key):
    ks = jax.random.split(key, 8)

    def nrm(k, shape, scale=0.05):
        return (scale * jax.random.normal(k, shape)).astype(jnp.float32)

    L, H, Din = N_LAYERS, D_MODEL, D_INNER
    return {
        "posenc": sinusoid_table(MAX_SEQ_LEN + 1, H),
        "wq": nrm(ks[0], (L, H, N_HEAD * D_K)),
        "bq": jnp.zeros((L, N_HEAD * D_K), jnp.float32),
        "wk": nrm(ks[1], (L, H, N_HEAD * D_K)),
        "bk": jnp.zeros((L, N_HEAD * D_K), jnp.float32),
        "wv": nrm(ks[2], (L, H, N_HEAD * D_V)),
        "bv": jnp.zeros((L, N_HEAD * D_V), jnp.float32),
        "wo": nrm(ks[3], (L, N_HEAD * D_V, H)),
        "bo": jnp.zeros((L, H), jnp.float32),
        "ln1_g": jnp.ones((L, H), jnp.float32),
        "ln1_b": jnp.zeros((L, H), jnp.float32),
        "conv1_w": nrm(ks[4], (L, K1, H, Din)),
        "conv1_b": jnp.zeros((L, Din), jnp.float32),
        "conv2_w": nrm(ks[5], (L, K2, Din, H)),
        "conv2_b": jnp.zeros((L, H), jnp.float32),
        "ln2_g": jnp.ones((L, H), jnp.float32),
        "ln2_b": jnp.zeros((L, H), jnp.float32),
        "wlin": nrm(ks[6], (H, 1)),
        "blin": jnp.zeros((1, 1), jnp.float32),
    }


# ---------------------------------- main -------------------------------------
if __name__ == "__main__":
    key = jax.random.PRNGKey(0)
    pkey, xkey = jax.random.split(key)
    params = init_params(pkey)

    B, T = 2, 8
    encoder_output = jax.random.normal(xkey, (B, T, D_MODEL), dtype=jnp.float32)
    src_seq = jnp.tile(jnp.arange(1, T + 1, dtype=jnp.int32)[None, :], (B, 1))
    lengths = jnp.array([T, 5])
    mask = jnp.arange(T)[None, :] >= lengths[:, None]   # True = padded position

    out = length_predictor(encoder_output, src_seq, mask, params)
    jax.block_until_ready(out)
    assert out.shape == (B, T)
    # padded positions must be exactly zero (masked_fill semantics)
    assert bool(jnp.all(jnp.where(mask, out == 0.0, True)))
    assert bool(jnp.all(jnp.isfinite(out)))
    print("KERNEL_OK")
</pallas_src>

<mosaic_0001>
module attributes {stable_mosaic.version = 11 : i64} {
  func.func @length_predictor_kernel(%arg0: i32, %arg1: memref<64x32xf32, #tpu.memory_space<vmem>>, %arg2: memref<64x32xf32, #tpu.memory_space<vmem>>, %arg3: memref<64x1xf32, #tpu.memory_space<vmem>>, %arg4: memref<1x1x64xf32, #tpu.memory_space<vmem>>, %arg5: memref<64x1xi32, #tpu.memory_space<vmem>>, %arg6: memref<1x64xi32, #tpu.memory_space<vmem>>, %arg7: memref<2x32x128xbf16, #tpu.memory_space<vmem>>, %arg8: memref<2x128xf32, #tpu.memory_space<vmem>>, %arg9: memref<2x32x32xbf16, #tpu.memory_space<vmem>>, %arg10: memref<2x32xf32, #tpu.memory_space<vmem>>, %arg11: memref<2x32xf32, #tpu.memory_space<vmem>>, %arg12: memref<2x32xf32, #tpu.memory_space<vmem>>, %arg13: memref<2x9x32x128xbf16, #tpu.memory_space<vmem>>, %arg14: memref<2x128xf32, #tpu.memory_space<vmem>>, %arg15: memref<2x128x32xbf16, #tpu.memory_space<vmem>>, %arg16: memref<2x32xf32, #tpu.memory_space<vmem>>, %arg17: memref<2x32xf32, #tpu.memory_space<vmem>>, %arg18: memref<2x32xf32, #tpu.memory_space<vmem>>, %arg19: memref<1x32xf32, #tpu.memory_space<vmem>>, %arg20: memref<1x1xf32, #tpu.memory_space<vmem>>, %arg21: memref<1x1x64xf32, #tpu.memory_space<vmem>>, %arg22: memref<8x16x32xf32, #tpu.memory_space<vmem>>) attributes {dimension_semantics = [#tpu.dimension_semantics<parallel>], iteration_bounds = array<i64: 1>, scalar_prefetch = 0 : i64, scratch_operands = 1 : i64, tpu.core_type = #tpu.core_type<tc>, window_params = [{transform_indices = @transform_0, window_bounds = array<i64: 64, 32>}, {pipeline_mode = #tpu.pipeline_mode<synchronous>, transform_indices = @transform_1, window_bounds = array<i64: 64, 32>}, {transform_indices = @transform_2, window_bounds = array<i64: 64, 1>}, {transform_indices = @transform_3, window_bounds = array<i64: 1, 1, 64>}, {pipeline_mode = #tpu.pipeline_mode<synchronous>, transform_indices = @transform_4, window_bounds = array<i64: 64, 1>}, {pipeline_mode = #tpu.pipeline_mode<synchronous>, transform_indices = @transform_5, window_bounds = array<i64: 1, 64>}, {pipeline_mode = #tpu.pipeline_mode<synchronous>, transform_indices = @transform_6, window_bounds = array<i64: 2, 32, 128>}, {pipeline_mode = #tpu.pipeline_mode<synchronous>, transform_indices = @transform_7, window_bounds = array<i64: 2, 128>}, {pipeline_mode = #tpu.pipeline_mode<synchronous>, transform_indices = @transform_8, window_bounds = array<i64: 2, 32, 32>}, {pipeline_mode = #tpu.pipeline_mode<synchronous>, transform_indices = @transform_9, window_bounds = array<i64: 2, 32>}, {pipeline_mode = #tpu.pipeline_mode<synchronous>, transform_indices = @transform_10, window_bounds = array<i64: 2, 32>}, {pipeline_mode = #tpu.pipeline_mode<synchronous>, transform_indices = @transform_11, window_bounds = array<i64: 2, 32>}, {pipeline_mode = #tpu.pipeline_mode<synchronous>, transform_indices = @transform_12, window_bounds = array<i64: 2, 9, 32, 128>}, {pipeline_mode = #tpu.pipeline_mode<synchronous>, transform_indices = @transform_13, window_bounds = array<i64: 2, 128>}, {pipeline_mode = #tpu.pipeline_mode<synchronous>, transform_indices = @transform_14, window_bounds = array<i64: 2, 128, 32>}, {pipeline_mode = #tpu.pipeline_mode<synchronous>, transform_indices = @transform_15, window_bounds = array<i64: 2, 32>}, {pipeline_mode = #tpu.pipeline_mode<synchronous>, transform_indices = @transform_16, window_bounds = array<i64: 2, 32>}, {pipeline_mode = #tpu.pipeline_mode<synchronous>, transform_indices = @transform_17, window_bounds = array<i64: 2, 32>}, {pipeline_mode = #tpu.pipeline_mode<synchronous>, transform_indices = @transform_18, window_bounds = array<i64: 1, 32>}, {pipeline_mode = #tpu.pipeline_mode<synchronous>, transform_indices = @transform_19, window_bounds = array<i64: 1, 1>}, {transform_indices = @transform_20, window_bounds = array<i64: 1, 1, 64>}]} {
    %c0 = arith.constant 0 : index
    %c0_0 = arith.constant 0 : index
    %0 = vector.load %arg3[%c0, %c0_0] : memref<64x1xf32, #tpu.memory_space<vmem>>, vector<64x1xf32>
    %c0_1 = arith.constant 0 : index
    %c0_2 = arith.constant 0 : index
    %c0_3 = arith.constant 0 : index
    %1 = vector.load %arg4[%c0_1, %c0_2, %c0_3] : memref<1x1x64xf32, #tpu.memory_space<vmem>>, vector<1x1x64xf32>
    %2 = vector.shape_cast %1 : vector<1x1x64xf32> to vector<1x64xf32>
    %c0_4 = arith.constant 0 : index
    %c0_5 = arith.constant 0 : index
    %3 = vector.load %arg5[%c0_4, %c0_5] : memref<64x1xi32, #tpu.memory_space<vmem>>, vector<64x1xi32>
    %c0_6 = arith.constant 0 : index
    %c0_7 = arith.constant 0 : index
    %4 = vector.load %arg6[%c0_6, %c0_7] : memref<1x64xi32, #tpu.memory_space<vmem>>, vector<1x64xi32>
    %5 = vector.broadcast %3 : vector<64x1xi32> to vector<64x64xi32>
    %6 = vector.broadcast %4 : vector<1x64xi32> to vector<64x64xi32>
    %7 = arith.cmpi eq, %5, %6 : vector<64x64xi32>
    %cst = arith.constant 5.000000e-01 : f32
    %8 = vector.broadcast %cst : f32 to vector<1x64xf32>
    %9 = arith.cmpf ogt, %2, %8 : vector<1x64xf32>
    %10 = vector.broadcast %9 : vector<1x64xi1> to vector<64x64xi1>
    %11 = arith.andi %7, %10 : vector<64x64xi1>
    %cst_8 = arith.constant 0.000000e+00 : f32
    %cst_9 = arith.constant -1.000000e+09 : f32
    %12 = vector.broadcast %cst_8 : f32 to vector<64x64xf32>
    %13 = vector.broadcast %cst_9 : f32 to vector<64x64xf32>
    %14 = arith.select %11, %12, %13 : vector<64x64xi1>, vector<64x64xf32>
    %cst_10 = arith.constant 0.000000e+00 : f32
    %15 = vector.broadcast %cst_10 : f32 to vector<8x16x32xf32>
    %c0_11 = arith.constant 0 : index
    %c0_12 = arith.constant 0 : index
    %c0_13 = arith.constant 0 : index
    %16 = vector.load %arg22[%c0_11, %c0_12, %c0_13] : memref<8x16x32xf32, #tpu.memory_space<vmem>>, vector<8x16x32xf32>
    tpu.vector_store %arg22[%c0_11, %c0_12, %c0_13], %15 {strides = array<i32>} : memref<8x16x32xf32, #tpu.memory_space<vmem>>, vector<8x16x32xf32>,
    %c0_14 = arith.constant 0 : index
    %c0_15 = arith.constant 0 : index
    %17 = vector.load %arg1[%c0_14, %c0_15] : memref<64x32xf32, #tpu.memory_space<vmem>>, vector<64x32xf32>
    %c0_16 = arith.constant 0 : index
    %c0_17 = arith.constant 0 : index
    %18 = vector.load %arg2[%c0_16, %c0_17] : memref<64x32xf32, #tpu.memory_space<vmem>>, vector<64x32xf32>
    %19 = vector.broadcast %0 : vector<64x1xf32> to vector<64x32xf32>
    %20 = arith.mulf %18, %19 : vector<64x32xf32>
    %21 = arith.addf %17, %20 : vector<64x32xf32>
    %22 = arith.truncf %21 : vector<64x32xf32> to vector<64x32xbf16>
    %c0_18 = arith.constant 0 : index
    %c0_19 = arith.constant 0 : index
    %c0_20 = arith.constant 0 : index
    %23 = vector.load %arg7[%c0_18, %c0_19, %c0_20] : memref<2x32x128xbf16, #tpu.memory_space<vmem>>, vector<1x32x128xbf16>
    %24 = vector.shape_cast %23 : vector<1x32x128xbf16> to vector<32x128xbf16>
    %cst_21 = arith.constant dense<0.000000e+00> : vector<64x128xf32>
    %25 = tpu.matmul %22, %24, %cst_21 {dimension_numbers = #tpu.dot_dimension_numbers<[1], [0], [0], [1], [0, 0, 1, 1], [], []>} : vector<64x32xbf16>, vector<32x128xbf16>, vector<64x128xf32> -> vector<64x128xf32>
    %c0_22 = arith.constant 0 : index
    %c0_23 = arith.constant 0 : index
    %26 = vector.load %arg8[%c0_22, %c0_23] : memref<2x128xf32, #tpu.memory_space<vmem>>, vector<1x128xf32>
    %27 = vector.shape_cast %26 : vector<1x128xf32> to vector<128xf32>
    %28 = vector.shape_cast %27 : vector<128xf32> to vector<1x128xf32>
    %29 = vector.broadcast %28 : vector<1x128xf32> to vector<64x128xf32>
    %30 = arith.addf %25, %29 : vector<64x128xf32>
    %31 = vector.extract_strided_slice %30 {offsets = [0, 0], sizes = [64, 16], strides = [1, 1]} : vector<64x128xf32> to vector<64x16xf32>
    %32 = arith.truncf %31 : vector<64x16xf32> to vector<64x16xbf16>
    %33 = vector.extract_strided_slice %30 {offsets = [0, 32], sizes = [64, 16], strides = [1, 1]} : vector<64x128xf32> to vector<64x16xf32>
    %34 = arith.truncf %33 : vector<64x16xf32> to vector<64x16xbf16>
    %35 = vector.extract_strided_slice %30 {offsets = [0, 64], sizes = [64, 16], strides = [1, 1]} : vector<64x128xf32> to vector<64x16xf32>
    %36 = arith.truncf %35 : vector<64x16xf32> to vector<64x16xbf16>
    %cst_24 = arith.constant dense<0.000000e+00> : vector<64x64xf32>
    %37 = tpu.matmul %32, %34, %cst_24 {dimension_numbers = #tpu.dot_dimension_numbers<[1], [1], [0], [0], [0, 0, 1, 0], [], []>} : vector<64x16xbf16>, vector<64x16xbf16>, vector<64x64xf32> -> vector<64x64xf32>
    %38 = arith.addf %37, %14 : vector<64x64xf32>
    %cst_25 = arith.constant dense<0xFF800000> : vector<64xf32>
    %39 = vector.multi_reduction <maximumf>, %38, %cst_25 [1] : vector<64x64xf32> to vector<64xf32>
    %40 = vector.shape_cast %39 : vector<64xf32> to vector<64x1xf32>
    %41 = vector.broadcast %40 : vector<64x1xf32> to vector<64x64xf32>
    %42 = arith.subf %38, %41 : vector<64x64xf32>
    %43 = math.exp %42 : vector<64x64xf32>
    %cst_26 = arith.constant dense<0.000000e+00> : vector<64xf32>
    %44 = vector.multi_reduction <add>, %43, %cst_26 [1] : vector<64x64xf32> to vector<64xf32>
    %45 = vector.shape_cast %44 : vector<64xf32> to vector<64x1xf32>
    %46 = tpu.reciprocal %45 {approx = true} : vector<64x1xf32> -> vector<64x1xf32>
    %47 = vector.broadcast %46 : vector<64x1xf32> to vector<64x64xf32>
    %48 = arith.mulf %43, %47 : vector<64x64xf32>
    %49 = arith.truncf %48 : vector<64x64xf32> to vector<64x64xbf16>
    %cst_27 = arith.constant dense<0.000000e+00> : vector<64x16xf32>
    %50 = tpu.matmul %49, %36, %cst_27 {dimension_numbers = #tpu.dot_dimension_numbers<[1], [0], [0], [1], [0, 0, 1, 1], [], []>} : vector<64x64xbf16>, vector<64x16xbf16>, vector<64x16xf32> -> vector<64x16xf32>
    %51 = vector.extract_strided_slice %30 {offsets = [0, 16], sizes = [64, 16], strides = [1, 1]} : vector<64x128xf32> to vector<64x16xf32>
    %52 = arith.truncf %51 : vector<64x16xf32> to vector<64x16xbf16>
    %53 = vector.extract_strided_slice %30 {offsets = [0, 48], sizes = [64, 16], strides = [1, 1]} : vector<64x128xf32> to vector<64x16xf32>
    %54 = arith.truncf %53 : vector<64x16xf32> to vector<64x16xbf16>
    %55 = vector.extract_strided_slice %30 {offsets = [0, 80], sizes = [64, 16], strides = [1, 1]} : vector<64x128xf32> to vector<64x16xf32>
    %56 = arith.truncf %55 : vector<64x16xf32> to vector<64x16xbf16>
    %cst_28 = arith.constant dense<0.000000e+00> : vector<64x64xf32>
    %57 = tpu.matmul %52, %54, %cst_28 {dimension_numbers = #tpu.dot_dimension_numbers<[1], [1], [0], [0], [0, 0, 1, 0], [], []>} : vector<64x16xbf16>, vector<64x16xbf16>, vector<64x64xf32> -> vector<64x64xf32>
    %58 = arith.addf %57, %14 : vector<64x64xf32>
    %cst_29 = arith.constant dense<0xFF800000> : vector<64xf32>
    %59 = vector.multi_reduction <maximumf>, %58, %cst_29 [1] : vector<64x64xf32> to vector<64xf32>
    %60 = vector.shape_cast %59 : vector<64xf32> to vector<64x1xf32>
    %61 = vector.broadcast %60 : vector<64x1xf32> to vector<64x64xf32>
    %62 = arith.subf %58, %61 : vector<64x64xf32>
    %63 = math.exp %62 : vector<64x64xf32>
    %cst_30 = arith.constant dense<0.000000e+00> : vector<64xf32>
    %64 = vector.multi_reduction <add>, %63, %cst_30 [1] : vector<64x64xf32> to vector<64xf32>
    %65 = vector.shape_cast %64 : vector<64xf32> to vector<64x1xf32>
    %66 = tpu.reciprocal %65 {approx = true} : vector<64x1xf32> -> vector<64x1xf32>
    %67 = vector.broadcast %66 : vector<64x1xf32> to vector<64x64xf32>
    %68 = arith.mulf %63, %67 : vector<64x64xf32>
    %69 = arith.truncf %68 : vector<64x64xf32> to vector<64x64xbf16>
    %cst_31 = arith.constant dense<0.000000e+00> : vector<64x16xf32>
    %70 = tpu.matmul %69, %56, %cst_31 {dimension_numbers = #tpu.dot_dimension_numbers<[1], [0], [0], [1], [0, 0, 1, 1], [], []>} : vector<64x64xbf16>, vector<64x16xbf16>, vector<64x16xf32> -> vector<64x16xf32>
    %71 = tpu.concatenate %50, %70 in 1 : vector<64x16xf32>, vector<64x16xf32> -> vector<64x32xf32>
    %72 = arith.truncf %71 : vector<64x32xf32> to vector<64x32xbf16>
    %c0_32 = arith.constant 0 : index
    %c0_33 = arith.constant 0 : index
    %c0_34 = arith.constant 0 : index
    %73 = vector.load %arg9[%c0_32, %c0_33, %c0_34] : memref<2x32x32xbf16, #tpu.memory_space<vmem>>, vector<1x32x32xbf16>
    %74 = vector.shape_cast %73 : vector<1x32x32xbf16> to vector<32x32xbf16>
    %cst_35 = arith.constant dense<0.000000e+00> : vector<64x32xf32>
    %75 = tpu.matmul %72, %74, %cst_35 {dimension_numbers = #tpu.dot_dimension_numbers<[1], [0], [0], [1], [0, 0, 1, 1], [], []>} : vector<64x32xbf16>, vector<32x32xbf16>, vector<64x32xf32> -> vector<64x32xf32>
    %c0_36 = arith.constant 0 : index
    %c0_37 = arith.constant 0 : index
    %76 = vector.load %arg10[%c0_36, %c0_37] : memref<2x32xf32, #tpu.memory_space<vmem>>, vector<1x32xf32>
    %77 = vector.shape_cast %76 : vector<1x32xf32> to vector<32xf32>
    %78 = vector.shape_cast %77 : vector<32xf32> to vector<1x32xf32>
    %79 = vector.broadcast %78 : vector<1x32xf32> to vector<64x32xf32>
    %80 = arith.addf %75, %79 : vector<64x32xf32>
    %81 = arith.addf %80, %21 : vector<64x32xf32>
    %c0_38 = arith.constant 0 : index
    %c0_39 = arith.constant 0 : index
    %82 = vector.load %arg11[%c0_38, %c0_39] : memref<2x32xf32, #tpu.memory_space<vmem>>, vector<1x32xf32>
    %83 = vector.shape_cast %82 : vector<1x32xf32> to vector<32xf32>
    %c0_40 = arith.constant 0 : index
    %c0_41 = arith.constant 0 : index
    %84 = vector.load %arg12[%c0_40, %c0_41] : memref<2x32xf32, #tpu.memory_space<vmem>>, vector<1x32xf32>
    %85 = vector.shape_cast %84 : vector<1x32xf32> to vector<32xf32>
    %cst_42 = arith.constant dense<0.000000e+00> : vector<64xf32>
    %86 = vector.multi_reduction <add>, %81, %cst_42 [1] : vector<64x32xf32> to vector<64xf32>
    %87 = vector.shape_cast %86 : vector<64xf32> to vector<64x1xf32>
    %cst_43 = arith.constant 3.200000e+01 : f32
    %88 = vector.broadcast %cst_43 : f32 to vector<64x1xf32>
    %89 = arith.divf %87, %88 : vector<64x1xf32>
    %90 = vector.broadcast %89 : vector<64x1xf32> to vector<64x32xf32>
    %91 = arith.subf %81, %90 : vector<64x32xf32>
    %92 = arith.mulf %91, %91 : vector<64x32xf32>
    %cst_44 = arith.constant dense<0.000000e+00> : vector<64xf32>
    %93 = vector.multi_reduction <add>, %92, %cst_44 [1] : vector<64x32xf32> to vector<64xf32>
    %94 = vector.shape_cast %93 : vector<64xf32> to vector<64x1xf32>
    %cst_45 = arith.constant 3.200000e+01 : f32
    %95 = vector.broadcast %cst_45 : f32 to vector<64x1xf32>
    %96 = arith.divf %94, %95 : vector<64x1xf32>
    %97 = vector.broadcast %89 : vector<64x1xf32> to vector<64x32xf32>
    %98 = arith.subf %81, %97 : vector<64x32xf32>
    %cst_46 = arith.constant 9.99999974E-6 : f32
    %99 = vector.broadcast %cst_46 : f32 to vector<64x1xf32>
    %100 = arith.addf %96, %99 : vector<64x1xf32>
    %101 = math.rsqrt %100 : vector<64x1xf32>
    %102 = vector.broadcast %101 : vector<64x1xf32> to vector<64x32xf32>
    %103 = arith.mulf %98, %102 : vector<64x32xf32>
    %104 = vector.shape_cast %83 : vector<32xf32> to vector<1x32xf32>
    %105 = vector.broadcast %104 : vector<1x32xf32> to vector<64x32xf32>
    %106 = arith.mulf %103, %105 : vector<64x32xf32>
    %107 = vector.shape_cast %85 : vector<32xf32> to vector<1x32xf32>
    %108 = vector.broadcast %107 : vector<1x32xf32> to vector<64x32xf32>
    %109 = arith.addf %106, %108 : vector<64x32xf32>
    %110 = vector.broadcast %0 : vector<64x1xf32> to vector<64x32xf32>
    %111 = arith.mulf %109, %110 : vector<64x32xf32>
    %112 = vector.shape_cast %111 : vector<64x32xf32> to vector<8x8x32xf32>
    %c0_47 = arith.constant 0 : index
    %c4 = arith.constant 4 : index
    %c0_48 = arith.constant 0 : index
    %113 = vector.load %arg22[%c0_47, %c4, %c0_48] : memref<8x16x32xf32, #tpu.memory_space<vmem>>, vector<8x8x32xf32>
    tpu.vector_store %arg22[%c0_47, %c4, %c0_48], %112 {strides = array<i32>} : memref<8x16x32xf32, #tpu.memory_space<vmem>>, vector<8x8x32xf32>,
    %cst_49 = arith.constant 0.000000e+00 : f32
    %114 = vector.broadcast %cst_49 : f32 to vector<64x128xf32>
    %c0_50 = arith.constant 0 : index
    %c0_51 = arith.constant 0 : index
    %c0_52 = arith.constant 0 : index
    %115 = vector.load %arg22[%c0_50, %c0_51, %c0_52] : memref<8x16x32xf32, #tpu.memory_space<vmem>>, vector<8x8x32xf32>
    %116 = vector.shape_cast %115 : vector<8x8x32xf32> to vector<64x32xf32>
    %117 = arith.truncf %116 : vector<64x32xf32> to vector<64x32xbf16>
    %c0_53 = arith.constant 0 : index
    %c0_54 = arith.constant 0 : index
    %c0_55 = arith.constant 0 : index
    %c0_56 = arith.constant 0 : index
    %118 = vector.load %arg13[%c0_53, %c0_54, %c0_55, %c0_56] : memref<2x9x32x128xbf16, #tpu.memory_space<vmem>>, vector<1x1x32x128xbf16>
    %119 = vector.shape_cast %118 : vector<1x1x32x128xbf16> to vector<32x128xbf16>
    %cst_57 = arith.constant dense<0.000000e+00> : vector<64x128xf32>
    %120 = tpu.matmul %117, %119, %cst_57 {dimension_numbers = #tpu.dot_dimension_numbers<[1], [0], [0], [1], [0, 0, 1, 1], [], []>} : vector<64x32xbf16>, vector<32x128xbf16>, vector<64x128xf32> -> vector<64x128xf32>
    %121 = arith.addf %114, %120 : vector<64x128xf32>
    %c0_58 = arith.constant 0 : index
    %c1 = arith.constant 1 : index
    %c0_59 = arith.constant 0 : index
    %122 = vector.load %arg22[%c0_58, %c1, %c0_59] : memref<8x16x32xf32, #tpu.memory_space<vmem>>, vector<8x8x32xf32>
    %123 = vector.shape_cast %122 : vector<8x8x32xf32> to vector<64x32xf32>
    %124 = arith.truncf %123 : vector<64x32xf32> to vector<64x32xbf16>
    %c0_60 = arith.constant 0 : index
    %c1_61 = arith.constant 1 : index
    %c0_62 = arith.constant 0 : index
    %c0_63 = arith.constant 0 : index
    %125 = vector.load %arg13[%c0_60, %c1_61, %c0_62, %c0_63] : memref<2x9x32x128xbf16, #tpu.memory_space<vmem>>, vector<1x1x32x128xbf16>
    %126 = vector.shape_cast %125 : vector<1x1x32x128xbf16> to vector<32x128xbf16>
    %cst_64 = arith.constant dense<0.000000e+00> : vector<64x128xf32>
    %127 = tpu.matmul %124, %126, %cst_64 {dimension_numbers = #tpu.dot_dimension_numbers<[1], [0], [0], [1], [0, 0, 1, 1], [], []>} : vector<64x32xbf16>, vector<32x128xbf16>, vector<64x128xf32> -> vector<64x128xf32>
    %128 = arith.addf %121, %127 : vector<64x128xf32>
    %c0_65 = arith.constant 0 : index
    %c2 = arith.constant 2 : index
    %c0_66 = arith.constant 0 : index
    %129 = vector.load %arg22[%c0_65, %c2, %c0_66] : memref<8x16x32xf32, #tpu.memory_space<vmem>>, vector<8x8x32xf32>
    %130 = vector.shape_cast %129 : vector<8x8x32xf32> to vector<64x32xf32>
    %131 = arith.truncf %130 : vector<64x32xf32> to vector<64x32xbf16>
    %c0_67 = arith.constant 0 : index
    %c2_68 = arith.constant 2 : index
    %c0_69 = arith.constant 0 : index
    %c0_70 = arith.constant 0 : index
    %132 = vector.load %arg13[%c0_67, %c2_68, %c0_69, %c0_70] : memref<2x9x32x128xbf16, #tpu.memory_space<vmem>>, vector<1x1x32x128xbf16>
    %133 = vector.shape_cast %132 : vector<1x1x32x128xbf16> to vector<32x128xbf16>
    %cst_71 = arith.constant dense<0.000000e+00> : vector<64x128xf32>
    %134 = tpu.matmul %131, %133, %cst_71 {dimension_numbers = #tpu.dot_dimension_numbers<[1], [0], [0], [1], [0, 0, 1, 1], [], []>} : vector<64x32xbf16>, vector<32x128xbf16>, vector<64x128xf32> -> vector<64x128xf32>
    %135 = arith.addf %128, %134 : vector<64x128xf32>
    %c0_72 = arith.constant 0 : index
    %c3 = arith.constant 3 : index
    %c0_73 = arith.constant 0 : index
    %136 = vector.load %arg22[%c0_72, %c3, %c0_73] : memref<8x16x32xf32, #tpu.memory_space<vmem>>, vector<8x8x32xf32>
    %137 = vector.shape_cast %136 : vector<8x8x32xf32> to vector<64x32xf32>
    %138 = arith.truncf %137 : vector<64x32xf32> to vector<64x32xbf16>
    %c0_74 = arith.constant 0 : index
    %c3_75 = arith.constant 3 : index
    %c0_76 = arith.constant 0 : index
    %c0_77 = arith.constant 0 : index
    %139 = vector.load %arg13[%c0_74, %c3_75, %c0_76, %c0_77] : memref<2x9x32x128xbf16, #tpu.memory_space<vmem>>, vector<1x1x32x128xbf16>
    %140 = vector.shape_cast %139 : vector<1x1x32x128xbf16> to vector<32x128xbf16>
    %cst_78 = arith.constant dense<0.000000e+00> : vector<64x128xf32>
    %141 = tpu.matmul %138, %140, %cst_78 {dimension_numbers = #tpu.dot_dimension_numbers<[1], [0], [0], [1], [0, 0, 1, 1], [], []>} : vector<64x32xbf16>, vector<32x128xbf16>, vector<64x128xf32> -> vector<64x128xf32>
    %142 = arith.addf %135, %141 : vector<64x128xf32>
    %c0_79 = arith.constant 0 : index
    %c4_80 = arith.constant 4 : index
    %c0_81 = arith.constant 0 : index
    %143 = vector.load %arg22[%c0_79, %c4_80, %c0_81] : memref<8x16x32xf32, #tpu.memory_space<vmem>>, vector<8x8x32xf32>
    %144 = vector.shape_cast %143 : vector<8x8x32xf32> to vector<64x32xf32>
    %145 = arith.truncf %144 : vector<64x32xf32> to vector<64x32xbf16>
    %c0_82 = arith.constant 0 : index
    %c4_83 = arith.constant 4 : index
    %c0_84 = arith.constant 0 : index
    %c0_85 = arith.constant 0 : index
    %146 = vector.load %arg13[%c0_82, %c4_83, %c0_84, %c0_85] : memref<2x9x32x128xbf16, #tpu.memory_space<vmem>>, vector<1x1x32x128xbf16>
    %147 = vector.shape_cast %146 : vector<1x1x32x128xbf16> to vector<32x128xbf16>
    %cst_86 = arith.constant dense<0.000000e+00> : vector<64x128xf32>
    %148 = tpu.matmul %145, %147, %cst_86 {dimension_numbers = #tpu.dot_dimension_numbers<[1], [0], [0], [1], [0, 0, 1, 1], [], []>} : vector<64x32xbf16>, vector<32x128xbf16>, vector<64x128xf32> -> vector<64x128xf32>
    %149 = arith.addf %142, %148 : vector<64x128xf32>
    %c0_87 = arith.constant 0 : index
    %c5 = arith.constant 5 : index
    %c0_88 = arith.constant 0 : index
    %150 = vector.load %arg22[%c0_87, %c5, %c0_88] : memref<8x16x32xf32, #tpu.memory_space<vmem>>, vector<8x8x32xf32>
    %151 = vector.shape_cast %150 : vector<8x8x32xf32> to vector<64x32xf32>
    %152 = arith.truncf %151 : vector<64x32xf32> to vector<64x32xbf16>
    %c0_89 = arith.constant 0 : index
    %c5_90 = arith.constant 5 : index
    %c0_91 = arith.constant 0 : index
    %c0_92 = arith.constant 0 : index
    %153 = vector.load %arg13[%c0_89, %c5_90, %c0_91, %c0_92] : memref<2x9x32x128xbf16, #tpu.memory_space<vmem>>, vector<1x1x32x128xbf16>
    %154 = vector.shape_cast %153 : vector<1x1x32x128xbf16> to vector<32x128xbf16>
    %cst_93 = arith.constant dense<0.000000e+00> : vector<64x128xf32>
    %155 = tpu.matmul %152, %154, %cst_93 {dimension_numbers = #tpu.dot_dimension_numbers<[1], [0], [0], [1], [0, 0, 1, 1], [], []>} : vector<64x32xbf16>, vector<32x128xbf16>, vector<64x128xf32> -> vector<64x128xf32>
    %156 = arith.addf %149, %155 : vector<64x128xf32>
    %c0_94 = arith.constant 0 : index
    %c6 = arith.constant 6 : index
    %c0_95 = arith.constant 0 : index
    %157 = vector.load %arg22[%c0_94, %c6, %c0_95] : memref<8x16x32xf32, #tpu.memory_space<vmem>>, vector<8x8x32xf32>
    %158 = vector.shape_cast %157 : vector<8x8x32xf32> to vector<64x32xf32>
    %159 = arith.truncf %158 : vector<64x32xf32> to vector<64x32xbf16>
    %c0_96 = arith.constant 0 : index
    %c6_97 = arith.constant 6 : index
    %c0_98 = arith.constant 0 : index
    %c0_99 = arith.constant 0 : index
    %160 = vector.load %arg13[%c0_96, %c6_97, %c0_98, %c0_99] : memref<2x9x32x128xbf16, #tpu.memory_space<vmem>>, vector<1x1x32x128xbf16>
    %161 = vector.shape_cast %160 : vector<1x1x32x128xbf16> to vector<32x128xbf16>
    %cst_100 = arith.constant dense<0.000000e+00> : vector<64x128xf32>
    %162 = tpu.matmul %159, %161, %cst_100 {dimension_numbers = #tpu.dot_dimension_numbers<[1], [0], [0], [1], [0, 0, 1, 1], [], []>} : vector<64x32xbf16>, vector<32x128xbf16>, vector<64x128xf32> -> vector<64x128xf32>
    %163 = arith.addf %156, %162 : vector<64x128xf32>
    %c0_101 = arith.constant 0 : index
    %c7 = arith.constant 7 : index
    %c0_102 = arith.constant 0 : index
    %164 = vector.load %arg22[%c0_101, %c7, %c0_102] : memref<8x16x32xf32, #tpu.memory_space<vmem>>, vector<8x8x32xf32>
    %165 = vector.shape_cast %164 : vector<8x8x32xf32> to vector<64x32xf32>
    %166 = arith.truncf %165 : vector<64x32xf32> to vector<64x32xbf16>
    %c0_103 = arith.constant 0 : index
    %c7_104 = arith.constant 7 : index
    %c0_105 = arith.constant 0 : index
    %c0_106 = arith.constant 0 : index
    %167 = vector.load %arg13[%c0_103, %c7_104, %c0_105, %c0_106] : memref<2x9x32x128xbf16, #tpu.memory_space<vmem>>, vector<1x1x32x128xbf16>
    %168 = vector.shape_cast %167 : vector<1x1x32x128xbf16> to vector<32x128xbf16>
    %cst_107 = arith.constant dense<0.000000e+00> : vector<64x128xf32>
    %169 = tpu.matmul %166, %168, %cst_107 {dimension_numbers = #tpu.dot_dimension_numbers<[1], [0], [0], [1], [0, 0, 1, 1], [], []>} : vector<64x32xbf16>, vector<32x128xbf16>, vector<64x128xf32> -> vector<64x128xf32>
    %170 = arith.addf %163, %169 : vector<64x128xf32>
    %c0_108 = arith.constant 0 : index
    %c8 = arith.constant 8 : index
    %c0_109 = arith.constant 0 : index
    %171 = vector.load %arg22[%c0_108, %c8, %c0_109] : memref<8x16x32xf32, #tpu.memory_space<vmem>>, vector<8x8x32xf32>
    %172 = vector.shape_cast %171 : vector<8x8x32xf32> to vector<64x32xf32>
    %173 = arith.truncf %172 : vector<64x32xf32> to vector<64x32xbf16>
    %c0_110 = arith.constant 0 : index
    %c8_111 = arith.constant 8 : index
    %c0_112 = arith.constant 0 : index
    %c0_113 = arith.constant 0 : index
    %174 = vector.load %arg13[%c0_110, %c8_111, %c0_112, %c0_113] : memref<2x9x32x128xbf16, #tpu.memory_space<vmem>>, vector<1x1x32x128xbf16>
    %175 = vector.shape_cast %174 : vector<1x1x32x128xbf16> to vector<32x128xbf16>
    %cst_114 = arith.constant dense<0.000000e+00> : vector<64x128xf32>
    %176 = tpu.matmul %173, %175, %cst_114 {dimension_numbers = #tpu.dot_dimension_numbers<[1], [0], [0], [1], [0, 0, 1, 1], [], []>} : vector<64x32xbf16>, vector<32x128xbf16>, vector<64x128xf32> -> vector<64x128xf32>
    %177 = arith.addf %170, %176 : vector<64x128xf32>
    %c0_115 = arith.constant 0 : index
    %c0_116 = arith.constant 0 : index
    %178 = vector.load %arg14[%c0_115, %c0_116] : memref<2x128xf32, #tpu.memory_space<vmem>>, vector<1x128xf32>
    %179 = vector.shape_cast %178 : vector<1x128xf32> to vector<128xf32>
    %180 = vector.shape_cast %179 : vector<128xf32> to vector<1x128xf32>
    %181 = vector.broadcast %180 : vector<1x128xf32> to vector<64x128xf32>
    %182 = arith.addf %177, %181 : vector<64x128xf32>
    %cst_117 = arith.constant 0.000000e+00 : f32
    %183 = vector.broadcast %cst_117 : f32 to vector<64x128xf32>
    %184 = arith.maximumf %182, %183 : vector<64x128xf32>
    %185 = arith.truncf %184 : vector<64x128xf32> to vector<64x128xbf16>
    %c0_118 = arith.constant 0 : index
    %c0_119 = arith.constant 0 : index
    %c0_120 = arith.constant 0 : index
    %186 = vector.load %arg15[%c0_118, %c0_119, %c0_120] : memref<2x128x32xbf16, #tpu.memory_space<vmem>>, vector<1x128x32xbf16>
    %187 = vector.shape_cast %186 : vector<1x128x32xbf16> to vector<128x32xbf16>
    %cst_121 = arith.constant dense<0.000000e+00> : vector<64x32xf32>
    %188 = tpu.matmul %185, %187, %cst_121 {dimension_numbers = #tpu.dot_dimension_numbers<[1], [0], [0], [1], [0, 0, 1, 1], [], []>} : vector<64x128xbf16>, vector<128x32xbf16>, vector<64x32xf32> -> vector<64x32xf32>
    %c0_122 = arith.constant 0 : index
    %c0_123 = arith.constant 0 : index
    %189 = vector.load %arg16[%c0_122, %c0_123] : memref<2x32xf32, #tpu.memory_space<vmem>>, vector<1x32xf32>
    %190 = vector.shape_cast %189 : vector<1x32xf32> to vector<32xf32>
    %191 = vector.shape_cast %190 : vector<32xf32> to vector<1x32xf32>
    %192 = vector.broadcast %191 : vector<1x32xf32> to vector<64x32xf32>
    %193 = arith.addf %188, %192 : vector<64x32xf32>
    %194 = arith.addf %193, %111 : vector<64x32xf32>
    %c0_124 = arith.constant 0 : index
    %c0_125 = arith.constant 0 : index
    %195 = vector.load %arg17[%c0_124, %c0_125] : memref<2x32xf32, #tpu.memory_space<vmem>>, vector<1x32xf32>
    %196 = vector.shape_cast %195 : vector<1x32xf32> to vector<32xf32>
    %c0_126 = arith.constant 0 : index
    %c0_127 = arith.constant 0 : index
    %197 = vector.load %arg18[%c0_126, %c0_127] : memref<2x32xf32, #tpu.memory_space<vmem>>, vector<1x32xf32>
    %198 = vector.shape_cast %197 : vector<1x32xf32> to vector<32xf32>
    %cst_128 = arith.constant dense<0.000000e+00> : vector<64xf32>
    %199 = vector.multi_reduction <add>, %194, %cst_128 [1] : vector<64x32xf32> to vector<64xf32>
    %200 = vector.shape_cast %199 : vector<64xf32> to vector<64x1xf32>
    %cst_129 = arith.constant 3.200000e+01 : f32
    %201 = vector.broadcast %cst_129 : f32 to vector<64x1xf32>
    %202 = arith.divf %200, %201 : vector<64x1xf32>
    %203 = vector.broadcast %202 : vector<64x1xf32> to vector<64x32xf32>
    %204 = arith.subf %194, %203 : vector<64x32xf32>
    %205 = arith.mulf %204, %204 : vector<64x32xf32>
    %cst_130 = arith.constant dense<0.000000e+00> : vector<64xf32>
    %206 = vector.multi_reduction <add>, %205, %cst_130 [1] : vector<64x32xf32> to vector<64xf32>
    %207 = vector.shape_cast %206 : vector<64xf32> to vector<64x1xf32>
    %cst_131 = arith.constant 3.200000e+01 : f32
    %208 = vector.broadcast %cst_131 : f32 to vector<64x1xf32>
    %209 = arith.divf %207, %208 : vector<64x1xf32>
    %210 = vector.broadcast %202 : vector<64x1xf32> to vector<64x32xf32>
    %211 = arith.subf %194, %210 : vector<64x32xf32>
    %cst_132 = arith.constant 9.99999974E-6 : f32
    %212 = vector.broadcast %cst_132 : f32 to vector<64x1xf32>
    %213 = arith.addf %209, %212 : vector<64x1xf32>
    %214 = math.rsqrt %213 : vector<64x1xf32>
    %215 = vector.broadcast %214 : vector<64x1xf32> to vector<64x32xf32>
    %216 = arith.mulf %211, %215 : vector<64x32xf32>
    %217 = vector.shape_cast %196 : vector<32xf32> to vector<1x32xf32>
    %218 = vector.broadcast %217 : vector<1x32xf32> to vector<64x32xf32>
    %219 = arith.mulf %216, %218 : vector<64x32xf32>
    %220 = vector.shape_cast %198 : vector<32xf32> to vector<1x32xf32>
    %221 = vector.broadcast %220 : vector<1x32xf32> to vector<64x32xf32>
    %222 = arith.addf %219, %221 : vector<64x32xf32>
    %223 = vector.broadcast %0 : vector<64x1xf32> to vector<64x32xf32>
    %224 = arith.mulf %222, %223 : vector<64x32xf32>
    %225 = arith.truncf %224 : vector<64x32xf32> to vector<64x32xbf16>
    %c1_133 = arith.constant 1 : index
    %c0_134 = arith.constant 0 : index
    %c0_135 = arith.constant 0 : index
    %226 = vector.load %arg7[%c1_133, %c0_134, %c0_135] : memref<2x32x128xbf16, #tpu.memory_space<vmem>>, vector<1x32x128xbf16>
    %227 = vector.shape_cast %226 : vector<1x32x128xbf16> to vector<32x128xbf16>
    %cst_136 = arith.constant dense<0.000000e+00> : vector<64x128xf32>
    %228 = tpu.matmul %225, %227, %cst_136 {dimension_numbers = #tpu.dot_dimension_numbers<[1], [0], [0], [1], [0, 0, 1, 1], [], []>} : vector<64x32xbf16>, vector<32x128xbf16>, vector<64x128xf32> -> vector<64x128xf32>
    %c1_137 = arith.constant 1 : index
    %c0_138 = arith.constant 0 : index
    %229 = vector.load %arg8[%c1_137, %c0_138] : memref<2x128xf32, #tpu.memory_space<vmem>>, vector<1x128xf32>
    %230 = vector.shape_cast %229 : vector<1x128xf32> to vector<128xf32>
    %231 = vector.shape_cast %230 : vector<128xf32> to vector<1x128xf32>
    %232 = vector.broadcast %231 : vector<1x128xf32> to vector<64x128xf32>
    %233 = arith.addf %228, %232 : vector<64x128xf32>
    %234 = vector.extract_strided_slice %233 {offsets = [0, 0], sizes = [64, 16], strides = [1, 1]} : vector<64x128xf32> to vector<64x16xf32>
    %235 = arith.truncf %234 : vector<64x16xf32> to vector<64x16xbf16>
    %236 = vector.extract_strided_slice %233 {offsets = [0, 32], sizes = [64, 16], strides = [1, 1]} : vector<64x128xf32> to vector<64x16xf32>
    %237 = arith.truncf %236 : vector<64x16xf32> to vector<64x16xbf16>
    %238 = vector.extract_strided_slice %233 {offsets = [0, 64], sizes = [64, 16], strides = [1, 1]} : vector<64x128xf32> to vector<64x16xf32>
    %239 = arith.truncf %238 : vector<64x16xf32> to vector<64x16xbf16>
    %cst_139 = arith.constant dense<0.000000e+00> : vector<64x64xf32>
    %240 = tpu.matmul %235, %237, %cst_139 {dimension_numbers = #tpu.dot_dimension_numbers<[1], [1], [0], [0], [0, 0, 1, 0], [], []>} : vector<64x16xbf16>, vector<64x16xbf16>, vector<64x64xf32> -> vector<64x64xf32>
    %241 = arith.addf %240, %14 : vector<64x64xf32>
    %cst_140 = arith.constant dense<0xFF800000> : vector<64xf32>
    %242 = vector.multi_reduction <maximumf>, %241, %cst_140 [1] : vector<64x64xf32> to vector<64xf32>
    %243 = vector.shape_cast %242 : vector<64xf32> to vector<64x1xf32>
    %244 = vector.broadcast %243 : vector<64x1xf32> to vector<64x64xf32>
    %245 = arith.subf %241, %244 : vector<64x64xf32>
    %246 = math.exp %245 : vector<64x64xf32>
    %cst_141 = arith.constant dense<0.000000e+00> : vector<64xf32>
    %247 = vector.multi_reduction <add>, %246, %cst_141 [1] : vector<64x64xf32> to vector<64xf32>
    %248 = vector.shape_cast %247 : vector<64xf32> to vector<64x1xf32>
    %249 = tpu.reciprocal %248 {approx = true} : vector<64x1xf32> -> vector<64x1xf32>
    %250 = vector.broadcast %249 : vector<64x1xf32> to vector<64x64xf32>
    %251 = arith.mulf %246, %250 : vector<64x64xf32>
    %252 = arith.truncf %251 : vector<64x64xf32> to vector<64x64xbf16>
    %cst_142 = arith.constant dense<0.000000e+00> : vector<64x16xf32>
    %253 = tpu.matmul %252, %239, %cst_142 {dimension_numbers = #tpu.dot_dimension_numbers<[1], [0], [0], [1], [0, 0, 1, 1], [], []>} : vector<64x64xbf16>, vector<64x16xbf16>, vector<64x16xf32> -> vector<64x16xf32>
    %254 = vector.extract_strided_slice %233 {offsets = [0, 16], sizes = [64, 16], strides = [1, 1]} : vector<64x128xf32> to vector<64x16xf32>
    %255 = arith.truncf %254 : vector<64x16xf32> to vector<64x16xbf16>
    %256 = vector.extract_strided_slice %233 {offsets = [0, 48], sizes = [64, 16], strides = [1, 1]} : vector<64x128xf32> to vector<64x16xf32>
    %257 = arith.truncf %256 : vector<64x16xf32> to vector<64x16xbf16>
    %258 = vector.extract_strided_slice %233 {offsets = [0, 80], sizes = [64, 16], strides = [1, 1]} : vector<64x128xf32> to vector<64x16xf32>
    %259 = arith.truncf %258 : vector<64x16xf32> to vector<64x16xbf16>
    %cst_143 = arith.constant dense<0.000000e+00> : vector<64x64xf32>
    %260 = tpu.matmul %255, %257, %cst_143 {dimension_numbers = #tpu.dot_dimension_numbers<[1], [1], [0], [0], [0, 0, 1, 0], [], []>} : vector<64x16xbf16>, vector<64x16xbf16>, vector<64x64xf32> -> vector<64x64xf32>
    %261 = arith.addf %260, %14 : vector<64x64xf32>
    %cst_144 = arith.constant dense<0xFF800000> : vector<64xf32>
    %262 = vector.multi_reduction <maximumf>, %261, %cst_144 [1] : vector<64x64xf32> to vector<64xf32>
    %263 = vector.shape_cast %262 : vector<64xf32> to vector<64x1xf32>
    %264 = vector.broadcast %263 : vector<64x1xf32> to vector<64x64xf32>
    %265 = arith.subf %261, %264 : vector<64x64xf32>
    %266 = math.exp %265 : vector<64x64xf32>
    %cst_145 = arith.constant dense<0.000000e+00> : vector<64xf32>
    %267 = vector.multi_reduction <add>, %266, %cst_145 [1] : vector<64x64xf32> to vector<64xf32>
    %268 = vector.shape_cast %267 : vector<64xf32> to vector<64x1xf32>
    %269 = tpu.reciprocal %268 {approx = true} : vector<64x1xf32> -> vector<64x1xf32>
    %270 = vector.broadcast %269 : vector<64x1xf32> to vector<64x64xf32>
    %271 = arith.mulf %266, %270 : vector<64x64xf32>
    %272 = arith.truncf %271 : vector<64x64xf32> to vector<64x64xbf16>
    %cst_146 = arith.constant dense<0.000000e+00> : vector<64x16xf32>
    %273 = tpu.matmul %272, %259, %cst_146 {dimension_numbers = #tpu.dot_dimension_numbers<[1], [0], [0], [1], [0, 0, 1, 1], [], []>} : vector<64x64xbf16>, vector<64x16xbf16>, vector<64x16xf32> -> vector<64x16xf32>
    %274 = tpu.concatenate %253, %273 in 1 : vector<64x16xf32>, vector<64x16xf32> -> vector<64x32xf32>
    %275 = arith.truncf %274 : vector<64x32xf32> to vector<64x32xbf16>
    %c1_147 = arith.constant 1 : index
    %c0_148 = arith.constant 0 : index
    %c0_149 = arith.constant 0 : index
    %276 = vector.load %arg9[%c1_147, %c0_148, %c0_149] : memref<2x32x32xbf16, #tpu.memory_space<vmem>>, vector<1x32x32xbf16>
    %277 = vector.shape_cast %276 : vector<1x32x32xbf16> to vector<32x32xbf16>
    %cst_150 = arith.constant dense<0.000000e+00> : vector<64x32xf32>
    %278 = tpu.matmul %275, %277, %cst_150 {dimension_numbers = #tpu.dot_dimension_numbers<[1], [0], [0], [1], [0, 0, 1, 1], [], []>} : vector<64x32xbf16>, vector<32x32xbf16>, vector<64x32xf32> -> vector<64x32xf32>
    %c1_151 = arith.constant 1 : index
    %c0_152 = arith.constant 0 : index
    %279 = vector.load %arg10[%c1_151, %c0_152] : memref<2x32xf32, #tpu.memory_space<vmem>>, vector<1x32xf32>
    %280 = vector.shape_cast %279 : vector<1x32xf32> to vector<32xf32>
    %281 = vector.shape_cast %280 : vector<32xf32> to vector<1x32xf32>
    %282 = vector.broadcast %281 : vector<1x32xf32> to vector<64x32xf32>
    %283 = arith.addf %278, %282 : vector<64x32xf32>
    %284 = arith.addf %283, %224 : vector<64x32xf32>
    %c1_153 = arith.constant 1 : index
    %c0_154 = arith.constant 0 : index
    %285 = vector.load %arg11[%c1_153, %c0_154] : memref<2x32xf32, #tpu.memory_space<vmem>>, vector<1x32xf32>
    %286 = vector.shape_cast %285 : vector<1x32xf32> to vector<32xf32>
    %c1_155 = arith.constant 1 : index
    %c0_156 = arith.constant 0 : index
    %287 = vector.load %arg12[%c1_155, %c0_156] : memref<2x32xf32, #tpu.memory_space<vmem>>, vector<1x32xf32>
    %288 = vector.shape_cast %287 : vector<1x32xf32> to vector<32xf32>
    %cst_157 = arith.constant dense<0.000000e+00> : vector<64xf32>
    %289 = vector.multi_reduction <add>, %284, %cst_157 [1] : vector<64x32xf32> to vector<64xf32>
    %290 = vector.shape_cast %289 : vector<64xf32> to vector<64x1xf32>
    %cst_158 = arith.constant 3.200000e+01 : f32
    %291 = vector.broadcast %cst_158 : f32 to vector<64x1xf32>
    %292 = arith.divf %290, %291 : vector<64x1xf32>
    %293 = vector.broadcast %292 : vector<64x1xf32> to vector<64x32xf32>
    %294 = arith.subf %284, %293 : vector<64x32xf32>
    %295 = arith.mulf %294, %294 : vector<64x32xf32>
    %cst_159 = arith.constant dense<0.000000e+00> : vector<64xf32>
    %296 = vector.multi_reduction <add>, %295, %cst_159 [1] : vector<64x32xf32> to vector<64xf32>
    %297 = vector.shape_cast %296 : vector<64xf32> to vector<64x1xf32>
    %cst_160 = arith.constant 3.200000e+01 : f32
    %298 = vector.broadcast %cst_160 : f32 to vector<64x1xf32>
    %299 = arith.divf %297, %298 : vector<64x1xf32>
    %300 = vector.broadcast %292 : vector<64x1xf32> to vector<64x32xf32>
    %301 = arith.subf %284, %300 : vector<64x32xf32>
    %cst_161 = arith.constant 9.99999974E-6 : f32
    %302 = vector.broadcast %cst_161 : f32 to vector<64x1xf32>
    %303 = arith.addf %299, %302 : vector<64x1xf32>
    %304 = math.rsqrt %303 : vector<64x1xf32>
    %305 = vector.broadcast %304 : vector<64x1xf32> to vector<64x32xf32>
    %306 = arith.mulf %301, %305 : vector<64x32xf32>
    %307 = vector.shape_cast %286 : vector<32xf32> to vector<1x32xf32>
    %308 = vector.broadcast %307 : vector<1x32xf32> to vector<64x32xf32>
    %309 = arith.mulf %306, %308 : vector<64x32xf32>
    %310 = vector.shape_cast %288 : vector<32xf32> to vector<1x32xf32>
    %311 = vector.broadcast %310 : vector<1x32xf32> to vector<64x32xf32>
    %312 = arith.addf %309, %311 : vector<64x32xf32>
    %313 = vector.broadcast %0 : vector<64x1xf32> to vector<64x32xf32>
    %314 = arith.mulf %312, %313 : vector<64x32xf32>
    %315 = vector.shape_cast %314 : vector<64x32xf32> to vector<8x8x32xf32>
    %c0_162 = arith.constant 0 : index
    %c4_163 = arith.constant 4 : index
    %c0_164 = arith.constant 0 : index
    %316 = vector.load %arg22[%c0_162, %c4_163, %c0_164] : memref<8x16x32xf32, #tpu.memory_space<vmem>>, vector<8x8x32xf32>
    tpu.vector_store %arg22[%c0_162, %c4_163, %c0_164], %315 {strides = array<i32>} : memref<8x16x32xf32, #tpu.memory_space<vmem>>, vector<8x8x32xf32>,
    %cst_165 = arith.constant 0.000000e+00 : f32
    %317 = vector.broadcast %cst_165 : f32 to vector<64x128xf32>
    %c0_166 = arith.constant 0 : index
    %c0_167 = arith.constant 0 : index
    %c0_168 = arith.constant 0 : index
    %318 = vector.load %arg22[%c0_166, %c0_167, %c0_168] : memref<8x16x32xf32, #tpu.memory_space<vmem>>, vector<8x8x32xf32>
    %319 = vector.shape_cast %318 : vector<8x8x32xf32> to vector<64x32xf32>
    %320 = arith.truncf %319 : vector<64x32xf32> to vector<64x32xbf16>
    %c1_169 = arith.constant 1 : index
    %c0_170 = arith.constant 0 : index
    %c0_171 = arith.constant 0 : index
    %c0_172 = arith.constant 0 : index
    %321 = vector.load %arg13[%c1_169, %c0_170, %c0_171, %c0_172] : memref<2x9x32x128xbf16, #tpu.memory_space<vmem>>, vector<1x1x32x128xbf16>
    %322 = vector.shape_cast %321 : vector<1x1x32x128xbf16> to vector<32x128xbf16>
    %cst_173 = arith.constant dense<0.000000e+00> : vector<64x128xf32>
    %323 = tpu.matmul %320, %322, %cst_173 {dimension_numbers = #tpu.dot_dimension_numbers<[1], [0], [0], [1], [0, 0, 1, 1], [], []>} : vector<64x32xbf16>, vector<32x128xbf16>, vector<64x128xf32> -> vector<64x128xf32>
    %324 = arith.addf %317, %323 : vector<64x128xf32>
    %c0_174 = arith.constant 0 : index
    %c1_175 = arith.constant 1 : index
    %c0_176 = arith.constant 0 : index
    %325 = vector.load %arg22[%c0_174, %c1_175, %c0_176] : memref<8x16x32xf32, #tpu.memory_space<vmem>>, vector<8x8x32xf32>
    %326 = vector.shape_cast %325 : vector<8x8x32xf32> to vector<64x32xf32>
    %327 = arith.truncf %326 : vector<64x32xf32> to vector<64x32xbf16>
    %c1_177 = arith.constant 1 : index
    %c1_178 = arith.constant 1 : index
    %c0_179 = arith.constant 0 : index
    %c0_180 = arith.constant 0 : index
    %328 = vector.load %arg13[%c1_177, %c1_178, %c0_179, %c0_180] : memref<2x9x32x128xbf16, #tpu.memory_space<vmem>>, vector<1x1x32x128xbf16>
    %329 = vector.shape_cast %328 : vector<1x1x32x128xbf16> to vector<32x128xbf16>
    %cst_181 = arith.constant dense<0.000000e+00> : vector<64x128xf32>
    %330 = tpu.matmul %327, %329, %cst_181 {dimension_numbers = #tpu.dot_dimension_numbers<[1], [0], [0], [1], [0, 0, 1, 1], [], []>} : vector<64x32xbf16>, vector<32x128xbf16>, vector<64x128xf32> -> vector<64x128xf32>
    %331 = arith.addf %324, %330 : vector<64x128xf32>
    %c0_182 = arith.constant 0 : index
    %c2_183 = arith.constant 2 : index
    %c0_184 = arith.constant 0 : index
    %332 = vector.load %arg22[%c0_182, %c2_183, %c0_184] : memref<8x16x32xf32, #tpu.memory_space<vmem>>, vector<8x8x32xf32>
    %333 = vector.shape_cast %332 : vector<8x8x32xf32> to vector<64x32xf32>
    %334 = arith.truncf %333 : vector<64x32xf32> to vector<64x32xbf16>
    %c1_185 = arith.constant 1 : index
    %c2_186 = arith.constant 2 : index
    %c0_187 = arith.constant 0 : index
    %c0_188 = arith.constant 0 : index
    %335 = vector.load %arg13[%c1_185, %c2_186, %c0_187, %c0_188] : memref<2x9x32x128xbf16, #tpu.memory_space<vmem>>, vector<1x1x32x128xbf16>
    %336 = vector.shape_cast %335 : vector<1x1x32x128xbf16> to vector<32x128xbf16>
    %cst_189 = arith.constant dense<0.000000e+00> : vector<64x128xf32>
    %337 = tpu.matmul %334, %336, %cst_189 {dimension_numbers = #tpu.dot_dimension_numbers<[1], [0], [0], [1], [0, 0, 1, 1], [], []>} : vector<64x32xbf16>, vector<32x128xbf16>, vector<64x128xf32> -> vector<64x128xf32>
    %338 = arith.addf %331, %337 : vector<64x128xf32>
    %c0_190 = arith.constant 0 : index
    %c3_191 = arith.constant 3 : index
    %c0_192 = arith.constant 0 : index
    %339 = vector.load %arg22[%c0_190, %c3_191, %c0_192] : memref<8x16x32xf32, #tpu.memory_space<vmem>>, vector<8x8x32xf32>
    %340 = vector.shape_cast %339 : vector<8x8x32xf32> to vector<64x32xf32>
    %341 = arith.truncf %340 : vector<64x32xf32> to vector<64x32xbf16>
    %c1_193 = arith.constant 1 : index
    %c3_194 = arith.constant 3 : index
    %c0_195 = arith.constant 0 : index
    %c0_196 = arith.constant 0 : index
    %342 = vector.load %arg13[%c1_193, %c3_194, %c0_195, %c0_196] : memref<2x9x32x128xbf16, #tpu.memory_space<vmem>>, vector<1x1x32x128xbf16>
    %343 = vector.shape_cast %342 : vector<1x1x32x128xbf16> to vector<32x128xbf16>
    %cst_197 = arith.constant dense<0.000000e+00> : vector<64x128xf32>
    %344 = tpu.matmul %341, %343, %cst_197 {dimension_numbers = #tpu.dot_dimension_numbers<[1], [0], [0], [1], [0, 0, 1, 1], [], []>} : vector<64x32xbf16>, vector<32x128xbf16>, vector<64x128xf32> -> vector<64x128xf32>
    %345 = arith.addf %338, %344 : vector<64x128xf32>
    %c0_198 = arith.constant 0 : index
    %c4_199 = arith.constant 4 : index
    %c0_200 = arith.constant 0 : index
    %346 = vector.load %arg22[%c0_198, %c4_199, %c0_200] : memref<8x16x32xf32, #tpu.memory_space<vmem>>, vector<8x8x32xf32>
    %347 = vector.shape_cast %346 : vector<8x8x32xf32> to vector<64x32xf32>
    %348 = arith.truncf %347 : vector<64x32xf32> to vector<64x32xbf16>
    %c1_201 = arith.constant 1 : index
    %c4_202 = arith.constant 4 : index
    %c0_203 = arith.constant 0 : index
    %c0_204 = arith.constant 0 : index
    %349 = vector.load %arg13[%c1_201, %c4_202, %c0_203, %c0_204] : memref<2x9x32x128xbf16, #tpu.memory_space<vmem>>, vector<1x1x32x128xbf16>
    %350 = vector.shape_cast %349 : vector<1x1x32x128xbf16> to vector<32x128xbf16>
    %cst_205 = arith.constant dense<0.000000e+00> : vector<64x128xf32>
    %351 = tpu.matmul %348, %350, %cst_205 {dimension_numbers = #tpu.dot_dimension_numbers<[1], [0], [0], [1], [0, 0, 1, 1], [], []>} : vector<64x32xbf16>, vector<32x128xbf16>, vector<64x128xf32> -> vector<64x128xf32>
    %352 = arith.addf %345, %351 : vector<64x128xf32>
    %c0_206 = arith.constant 0 : index
    %c5_207 = arith.constant 5 : index
    %c0_208 = arith.constant 0 : index
    %353 = vector.load %arg22[%c0_206, %c5_207, %c0_208] : memref<8x16x32xf32, #tpu.memory_space<vmem>>, vector<8x8x32xf32>
    %354 = vector.shape_cast %353 : vector<8x8x32xf32> to vector<64x32xf32>
    %355 = arith.truncf %354 : vector<64x32xf32> to vector<64x32xbf16>
    %c1_209 = arith.constant 1 : index
    %c5_210 = arith.constant 5 : index
    %c0_211 = arith.constant 0 : index
    %c0_212 = arith.constant 0 : index
    %356 = vector.load %arg13[%c1_209, %c5_210, %c0_211, %c0_212] : memref<2x9x32x128xbf16, #tpu.memory_space<vmem>>, vector<1x1x32x128xbf16>
    %357 = vector.shape_cast %356 : vector<1x1x32x128xbf16> to vector<32x128xbf16>
    %cst_213 = arith.constant dense<0.000000e+00> : vector<64x128xf32>
    %358 = tpu.matmul %355, %357, %cst_213 {dimension_numbers = #tpu.dot_dimension_numbers<[1], [0], [0], [1], [0, 0, 1, 1], [], []>} : vector<64x32xbf16>, vector<32x128xbf16>, vector<64x128xf32> -> vector<64x128xf32>
    %359 = arith.addf %352, %358 : vector<64x128xf32>
    %c0_214 = arith.constant 0 : index
    %c6_215 = arith.constant 6 : index
    %c0_216 = arith.constant 0 : index
    %360 = vector.load %arg22[%c0_214, %c6_215, %c0_216] : memref<8x16x32xf32, #tpu.memory_space<vmem>>, vector<8x8x32xf32>
    %361 = vector.shape_cast %360 : vector<8x8x32xf32> to vector<64x32xf32>
    %362 = arith.truncf %361 : vector<64x32xf32> to vector<64x32xbf16>
    %c1_217 = arith.constant 1 : index
    %c6_218 = arith.constant 6 : index
    %c0_219 = arith.constant 0 : index
    %c0_220 = arith.constant 0 : index
    %363 = vector.load %arg13[%c1_217, %c6_218, %c0_219, %c0_220] : memref<2x9x32x128xbf16, #tpu.memory_space<vmem>>, vector<1x1x32x128xbf16>
    %364 = vector.shape_cast %363 : vector<1x1x32x128xbf16> to vector<32x128xbf16>
    %cst_221 = arith.constant dense<0.000000e+00> : vector<64x128xf32>
    %365 = tpu.matmul %362, %364, %cst_221 {dimension_numbers = #tpu.dot_dimension_numbers<[1], [0], [0], [1], [0, 0, 1, 1], [], []>} : vector<64x32xbf16>, vector<32x128xbf16>, vector<64x128xf32> -> vector<64x128xf32>
    %366 = arith.addf %359, %365 : vector<64x128xf32>
    %c0_222 = arith.constant 0 : index
    %c7_223 = arith.constant 7 : index
    %c0_224 = arith.constant 0 : index
    %367 = vector.load %arg22[%c0_222, %c7_223, %c0_224] : memref<8x16x32xf32, #tpu.memory_space<vmem>>, vector<8x8x32xf32>
    %368 = vector.shape_cast %367 : vector<8x8x32xf32> to vector<64x32xf32>
    %369 = arith.truncf %368 : vector<64x32xf32> to vector<64x32xbf16>
    %c1_225 = arith.constant 1 : index
    %c7_226 = arith.constant 7 : index
    %c0_227 = arith.constant 0 : index
    %c0_228 = arith.constant 0 : index
    %370 = vector.load %arg13[%c1_225, %c7_226, %c0_227, %c0_228] : memref<2x9x32x128xbf16, #tpu.memory_space<vmem>>, vector<1x1x32x128xbf16>
    %371 = vector.shape_cast %370 : vector<1x1x32x128xbf16> to vector<32x128xbf16>
    %cst_229 = arith.constant dense<0.000000e+00> : vector<64x128xf32>
    %372 = tpu.matmul %369, %371, %cst_229 {dimension_numbers = #tpu.dot_dimension_numbers<[1], [0], [0], [1], [0, 0, 1, 1], [], []>} : vector<64x32xbf16>, vector<32x128xbf16>, vector<64x128xf32> -> vector<64x128xf32>
    %373 = arith.addf %366, %372 : vector<64x128xf32>
    %c0_230 = arith.constant 0 : index
    %c8_231 = arith.constant 8 : index
    %c0_232 = arith.constant 0 : index
    %374 = vector.load %arg22[%c0_230, %c8_231, %c0_232] : memref<8x16x32xf32, #tpu.memory_space<vmem>>, vector<8x8x32xf32>
    %375 = vector.shape_cast %374 : vector<8x8x32xf32> to vector<64x32xf32>
    %376 = arith.truncf %375 : vector<64x32xf32> to vector<64x32xbf16>
    %c1_233 = arith.constant 1 : index
    %c8_234 = arith.constant 8 : index
    %c0_235 = arith.constant 0 : index
    %c0_236 = arith.constant 0 : index
    %377 = vector.load %arg13[%c1_233, %c8_234, %c0_235, %c0_236] : memref<2x9x32x128xbf16, #tpu.memory_space<vmem>>, vector<1x1x32x128xbf16>
    %378 = vector.shape_cast %377 : vector<1x1x32x128xbf16> to vector<32x128xbf16>
    %cst_237 = arith.constant dense<0.000000e+00> : vector<64x128xf32>
    %379 = tpu.matmul %376, %378, %cst_237 {dimension_numbers = #tpu.dot_dimension_numbers<[1], [0], [0], [1], [0, 0, 1, 1], [], []>} : vector<64x32xbf16>, vector<32x128xbf16>, vector<64x128xf32> -> vector<64x128xf32>
    %380 = arith.addf %373, %379 : vector<64x128xf32>
    %c1_238 = arith.constant 1 : index
    %c0_239 = arith.constant 0 : index
    %381 = vector.load %arg14[%c1_238, %c0_239] : memref<2x128xf32, #tpu.memory_space<vmem>>, vector<1x128xf32>
    %382 = vector.shape_cast %381 : vector<1x128xf32> to vector<128xf32>
    %383 = vector.shape_cast %382 : vector<128xf32> to vector<1x128xf32>
    %384 = vector.broadcast %383 : vector<1x128xf32> to vector<64x128xf32>
    %385 = arith.addf %380, %384 : vector<64x128xf32>
    %cst_240 = arith.constant 0.000000e+00 : f32
    %386 = vector.broadcast %cst_240 : f32 to vector<64x128xf32>
    %387 = arith.maximumf %385, %386 : vector<64x128xf32>
    %388 = arith.truncf %387 : vector<64x128xf32> to vector<64x128xbf16>
    %c1_241 = arith.constant 1 : index
    %c0_242 = arith.constant 0 : index
    %c0_243 = arith.constant 0 : index
    %389 = vector.load %arg15[%c1_241, %c0_242, %c0_243] : memref<2x128x32xbf16, #tpu.memory_space<vmem>>, vector<1x128x32xbf16>
    %390 = vector.shape_cast %389 : vector<1x128x32xbf16> to vector<128x32xbf16>
    %cst_244 = arith.constant dense<0.000000e+00> : vector<64x32xf32>
    %391 = tpu.matmul %388, %390, %cst_244 {dimension_numbers = #tpu.dot_dimension_numbers<[1], [0], [0], [1], [0, 0, 1, 1], [], []>} : vector<64x128xbf16>, vector<128x32xbf16>, vector<64x32xf32> -> vector<64x32xf32>
    %c1_245 = arith.constant 1 : index
    %c0_246 = arith.constant 0 : index
    %392 = vector.load %arg16[%c1_245, %c0_246] : memref<2x32xf32, #tpu.memory_space<vmem>>, vector<1x32xf32>
    %393 = vector.shape_cast %392 : vector<1x32xf32> to vector<32xf32>
    %394 = vector.shape_cast %393 : vector<32xf32> to vector<1x32xf32>
    %395 = vector.broadcast %394 : vector<1x32xf32> to vector<64x32xf32>
    %396 = arith.addf %391, %395 : vector<64x32xf32>
    %397 = arith.addf %396, %314 : vector<64x32xf32>
    %c1_247 = arith.constant 1 : index
    %c0_248 = arith.constant 0 : index
    %398 = vector.load %arg17[%c1_247, %c0_248] : memref<2x32xf32, #tpu.memory_space<vmem>>, vector<1x32xf32>
    %399 = vector.shape_cast %398 : vector<1x32xf32> to vector<32xf32>
    %c1_249 = arith.constant 1 : index
    %c0_250 = arith.constant 0 : index
    %400 = vector.load %arg18[%c1_249, %c0_250] : memref<2x32xf32, #tpu.memory_space<vmem>>, vector<1x32xf32>
    %401 = vector.shape_cast %400 : vector<1x32xf32> to vector<32xf32>
    %cst_251 = arith.constant dense<0.000000e+00> : vector<64xf32>
    %402 = vector.multi_reduction <add>, %397, %cst_251 [1] : vector<64x32xf32> to vector<64xf32>
    %403 = vector.shape_cast %402 : vector<64xf32> to vector<64x1xf32>
    %cst_252 = arith.constant 3.200000e+01 : f32
    %404 = vector.broadcast %cst_252 : f32 to vector<64x1xf32>
    %405 = arith.divf %403, %404 : vector<64x1xf32>
    %406 = vector.broadcast %405 : vector<64x1xf32> to vector<64x32xf32>
    %407 = arith.subf %397, %406 : vector<64x32xf32>
    %408 = arith.mulf %407, %407 : vector<64x32xf32>
    %cst_253 = arith.constant dense<0.000000e+00> : vector<64xf32>
    %409 = vector.multi_reduction <add>, %408, %cst_253 [1] : vector<64x32xf32> to vector<64xf32>
    %410 = vector.shape_cast %409 : vector<64xf32> to vector<64x1xf32>
    %cst_254 = arith.constant 3.200000e+01 : f32
    %411 = vector.broadcast %cst_254 : f32 to vector<64x1xf32>
    %412 = arith.divf %410, %411 : vector<64x1xf32>
    %413 = vector.broadcast %405 : vector<64x1xf32> to vector<64x32xf32>
    %414 = arith.subf %397, %413 : vector<64x32xf32>
    %cst_255 = arith.constant 9.99999974E-6 : f32
    %415 = vector.broadcast %cst_255 : f32 to vector<64x1xf32>
    %416 = arith.addf %412, %415 : vector<64x1xf32>
    %417 = math.rsqrt %416 : vector<64x1xf32>
    %418 = vector.broadcast %417 : vector<64x1xf32> to vector<64x32xf32>
    %419 = arith.mulf %414, %418 : vector<64x32xf32>
    %420 = vector.shape_cast %399 : vector<32xf32> to vector<1x32xf32>
    %421 = vector.broadcast %420 : vector<1x32xf32> to vector<64x32xf32>
    %422 = arith.mulf %419, %421 : vector<64x32xf32>
    %423 = vector.shape_cast %401 : vector<32xf32> to vector<1x32xf32>
    %424 = vector.broadcast %423 : vector<1x32xf32> to vector<64x32xf32>
    %425 = arith.addf %422, %424 : vector<64x32xf32>
    %426 = vector.broadcast %0 : vector<64x1xf32> to vector<64x32xf32>
    %427 = arith.mulf %425, %426 : vector<64x32xf32>
    %c0_256 = arith.constant 0 : index
    %c0_257 = arith.constant 0 : index
    %428 = vector.load %arg19[%c0_256, %c0_257] : memref<1x32xf32, #tpu.memory_space<vmem>>, vector<1x32xf32>
    %cst_258 = arith.constant dense<0.000000e+00> : vector<1x64xf32>
    %429 = tpu.matmul %428, %427, %cst_258 {dimension_numbers = #tpu.dot_dimension_numbers<[1], [1], [0], [0], [0, 0, 1, 0], [], []>} : vector<1x32xf32>, vector<64x32xf32>, vector<1x64xf32> -> vector<1x64xf32>
    %c0_259 = arith.constant 0 : index
    %c0_260 = arith.constant 0 : index
    %430 = vector.load %arg20[%c0_259, %c0_260] : memref<1x1xf32, #tpu.memory_space<vmem>>, vector<1x1xf32>
    %431 = vector.broadcast %430 : vector<1x1xf32> to vector<1x64xf32>
    %432 = arith.addf %429, %431 : vector<1x64xf32>
    %433 = arith.mulf %432, %2 : vector<1x64xf32>
    %434 = vector.shape_cast %433 : vector<1x64xf32> to vector<1x1x64xf32>
    %c0_261 = arith.constant 0 : index
    %c0_262 = arith.constant 0 : index
    %c0_263 = arith.constant 0 : index
    %435 = vector.load %arg21[%c0_261, %c0_262, %c0_263] : memref<1x1x64xf32, #tpu.memory_space<vmem>>, vector<1x1x64xf32>
    tpu.vector_store %arg21[%c0_261, %c0_262, %c0_263], %434 {strides = array<i32>} : memref<1x1x64xf32, #tpu.memory_space<vmem>>, vector<1x1x64xf32>,
    return
  }
  func.func @transform_0(%arg0: i32) -> (i32, i32) {
    %c0_i32 = arith.constant 0 : i32
    %c0_i32_0 = arith.constant 0 : i32
    return %arg0, %c0_i32 : i32, i32
  }
  func.func @transform_1(%arg0: i32) -> (i32, i32) {
    %c0_i32 = arith.constant 0 : i32
    %c0_i32_0 = arith.constant 0 : i32
    %c0_i32_1 = arith.constant 0 : i32
    return %c0_i32, %c0_i32_0 : i32, i32
  }
  func.func @transform_2(%arg0: i32) -> (i32, i32) {
    %c0_i32 = arith.constant 0 : i32
    %c0_i32_0 = arith.constant 0 : i32
    return %arg0, %c0_i32 : i32, i32
  }
  func.func @transform_3(%arg0: i32) -> (i32, i32, i32) {
    %c0_i32 = arith.constant 0 : i32
    %c0_i32_0 = arith.constant 0 : i32
    %c0_i32_1 = arith.constant 0 : i32
    return %arg0, %c0_i32, %c0_i32_0 : i32, i32, i32
  }
  func.func @transform_4(%arg0: i32) -> (i32, i32) {
    %c0_i32 = arith.constant 0 : i32
    %c0_i32_0 = arith.constant 0 : i32
    %c0_i32_1 = arith.constant 0 : i32
    return %c0_i32, %c0_i32_0 : i32, i32
  }
  func.func @transform_5(%arg0: i32) -> (i32, i32) {
    %c0_i32 = arith.constant 0 : i32
    %c0_i32_0 = arith.constant 0 : i32
    %c0_i32_1 = arith.constant 0 : i32
    return %c0_i32, %c0_i32_0 : i32, i32
  }
  func.func @transform_6(%arg0: i32) -> (i32, i32, i32) {
    %c0_i32 = arith.constant 0 : i32
    %c0_i32_0 = arith.constant 0 : i32
    %c0_i32_1 = arith.constant 0 : i32
    %c0_i32_2 = arith.constant 0 : i32
    return %c0_i32, %c0_i32_0, %c0_i32_1 : i32, i32, i32
  }
  func.func @transform_7(%arg0: i32) -> (i32, i32) {
    %c0_i32 = arith.constant 0 : i32
    %c0_i32_0 = arith.constant 0 : i32
    %c0_i32_1 = arith.constant 0 : i32
    return %c0_i32, %c0_i32_0 : i32, i32
  }
  func.func @transform_8(%arg0: i32) -> (i32, i32, i32) {
    %c0_i32 = arith.constant 0 : i32
    %c0_i32_0 = arith.constant 0 : i32
    %c0_i32_1 = arith.constant 0 : i32
    %c0_i32_2 = arith.constant 0 : i32
    return %c0_i32, %c0_i32_0, %c0_i32_1 : i32, i32, i32
  }
  func.func @transform_9(%arg0: i32) -> (i32, i32) {
    %c0_i32 = arith.constant 0 : i32
    %c0_i32_0 = arith.constant 0 : i32
    %c0_i32_1 = arith.constant 0 : i32
    return %c0_i32, %c0_i32_0 : i32, i32
  }
  func.func @transform_10(%arg0: i32) -> (i32, i32) {
    %c0_i32 = arith.constant 0 : i32
    %c0_i32_0 = arith.constant 0 : i32
    %c0_i32_1 = arith.constant 0 : i32
    return %c0_i32, %c0_i32_0 : i32, i32
  }
  func.func @transform_11(%arg0: i32) -> (i32, i32) {
    %c0_i32 = arith.constant 0 : i32
    %c0_i32_0 = arith.constant 0 : i32
    %c0_i32_1 = arith.constant 0 : i32
    return %c0_i32, %c0_i32_0 : i32, i32
  }
  func.func @transform_12(%arg0: i32) -> (i32, i32, i32, i32) {
    %c0_i32 = arith.constant 0 : i32
    %c0_i32_0 = arith.constant 0 : i32
    %c0_i32_1 = arith.constant 0 : i32
    %c0_i32_2 = arith.constant 0 : i32
    %c0_i32_3 = arith.constant 0 : i32
    return %c0_i32, %c0_i32_0, %c0_i32_1, %c0_i32_2 : i32, i32, i32, i32
  }
  func.func @transform_13(%arg0: i32) -> (i32, i32) {
    %c0_i32 = arith.constant 0 : i32
    %c0_i32_0 = arith.constant 0 : i32
    %c0_i32_1 = arith.constant 0 : i32
    return %c0_i32, %c0_i32_0 : i32, i32
  }
  func.func @transform_14(%arg0: i32) -> (i32, i32, i32) {
    %c0_i32 = arith.constant 0 : i32
    %c0_i32_0 = arith.constant 0 : i32
    %c0_i32_1 = arith.constant 0 : i32
    %c0_i32_2 = arith.constant 0 : i32
    return %c0_i32, %c0_i32_0, %c0_i32_1 : i32, i32, i32
  }
  func.func @transform_15(%arg0: i32) -> (i32, i32) {
    %c0_i32 = arith.constant 0 : i32
    %c0_i32_0 = arith.constant 0 : i32
    %c0_i32_1 = arith.constant 0 : i32
    return %c0_i32, %c0_i32_0 : i32, i32
  }
  func.func @transform_16(%arg0: i32) -> (i32, i32) {
    %c0_i32 = arith.constant 0 : i32
    %c0_i32_0 = arith.constant 0 : i32
    %c0_i32_1 = arith.constant 0 : i32
    return %c0_i32, %c0_i32_0 : i32, i32
  }
  func.func @transform_17(%arg0: i32) -> (i32, i32) {
    %c0_i32 = arith.constant 0 : i32
    %c0_i32_0 = arith.constant 0 : i32
    %c0_i32_1 = arith.constant 0 : i32
    return %c0_i32, %c0_i32_0 : i32, i32
  }
  func.func @transform_18(%arg0: i32) -> (i32, i32) {
    %c0_i32 = arith.constant 0 : i32
    %c0_i32_0 = arith.constant 0 : i32
    %c0_i32_1 = arith.constant 0 : i32
    return %c0_i32, %c0_i32_0 : i32, i32
  }
  func.func @transform_19(%arg0: i32) -> (i32, i32) {
    %c0_i32 = arith.constant 0 : i32
    %c0_i32_0 = arith.constant 0 : i32
    %c0_i32_1 = arith.constant 0 : i32
    return %c0_i32, %c0_i32_0 : i32, i32
  }
  func.func @transform_20(%arg0: i32) -> (i32, i32, i32) {
    %c0_i32 = arith.constant 0 : i32
    %c0_i32_0 = arith.constant 0 : i32
    %c0_i32_1 = arith.constant 0 : i32
    return %arg0, %c0_i32, %c0_i32_0 : i32, i32, i32
  }
}

</mosaic_0001>

<bundles_post_ra>
// kernel: tpu_custom_call.1
= control target key start
LH: loop header
LB: loop body
LE: loop exit
PB: predicated region body
PF: predicated region fallthrough
CT: control target
= control target key end

     0   :  { %s7898_s0 = inlined_call_operand.vmem [shape: f32[64,32], index: 0, kind: input, shape index: {}]   ;;  %s7899_s1 = inlined_call_operand.vmem [shape: f32[64,32], index: 1, kind: input, shape index: {}]   ;;  %s7900_s2 = inlined_call_operand.vmem [shape: f32[64,1], index: 2, kind: input, shape index: {}]   ;;  %s7901_s3 = inlined_call_operand.vmem [shape: f32[1,1,64], index: 3, kind: input, shape index: {}]   ;;  %s7902_s4 = inlined_call_operand.vmem [shape: s32[64,1], index: 4, kind: input, shape index: {}]   ;;  %s7903_s5 = inlined_call_operand.vmem [shape: s32[1,64], index: 5, kind: input, shape index: {}]   ;;  %s7904_s6 = inlined_call_operand.vmem [shape: bf16[2,32,128], index: 6, kind: input, shape index: {}]   ;;  %s7905_s7 = inlined_call_operand.vmem [shape: f32[2,128], index: 7, kind: input, shape index: {}]   ;;  %s7906_s8 = inlined_call_operand.vmem [shape: bf16[2,32,32], index: 8, kind: input, shape index: {}]   ;;  %s7907_s9 = inlined_call_operand.vmem [shape: f32[2,32], index: 9, kind: input, shape index: {}]   ;;  %s7908_s10 = inlined_call_operand.vmem [shape: f32[2,32], index: 10, kind: input, shape index: {}]   ;;  %s7909_s11 = inlined_call_operand.vmem [shape: f32[2,32], index: 11, kind: input, shape index: {}]   ;;  %s7910_s12 = inlined_call_operand.vmem [shape: bf16[2,9,32,128], index: 12, kind: input, shape index: {}]   ;;  %s7911_s13 = inlined_call_operand.vmem [shape: f32[2,128], index: 13, kind: input, shape index: {}]   ;;  %s7912_s14 = inlined_call_operand.vmem [shape: bf16[2,128,32], index: 14, kind: input, shape index: {}]   ;;  %s7913_s15 = inlined_call_operand.vmem [shape: f32[2,32], index: 15, kind: input, shape index: {}]   ;;  %s7914_s16 = inlined_call_operand.vmem [shape: f32[2,32], index: 16, kind: input, shape index: {}]   ;;  %s7915_s17 = inlined_call_operand.vmem [shape: f32[2,32], index: 17, kind: input, shape index: {}]   ;;  %s7916_s18 = inlined_call_operand.vmem [shape: f32[1,32], index: 18, kind: input, shape index: {}]   ;;  %s7917_s19 = inlined_call_operand.<no memory space> [shape: f32[1,1], index: 19, kind: input, shape index: {}]   ;;  %s7918_s20 = inlined_call_operand.hbm [shape: f32[1,1,64], index: 20, kind: output, shape index: {}]  }
   0x1   :  { %7924 = sst [smem:[#allocation7_spill]] %s7898_s0  ;;  %v25_v0 = vstv %s7917_s19 }
   0x2   :  { %7925 = sst [smem:[#allocation8_spill]] %s7899_s1  ;;  %26 = vst [vmem:[#allocation3] sm:$0x1] %v25_v0 }
   0x3   :  { %7926 = sst [smem:[#allocation9_spill]] %s7900_s2 }
   0x4   :  { %7927 = sst [smem:[#allocation10_spill]] %s7901_s3 }
   0x5   :  { %7928 = sst [smem:[#allocation11_spill]] %s7902_s4 }
   0x6   :  { %s7929_s2 = sld [smem:[#allocation9_spill]]  ;;  %v6420_v3 = vmov 0   ;;  %v6143_v6 = vld [vmem:[%s7904_s6] sm:$0xff]   ;;  %v6144_v7 = vld [vmem:[%s7904_s6 + $0x8] sm:$0xff]  }
   0x7   :  { %6102 = vset.pattern.permute.xlu1 %v6420_v3  ;;  %6101 = vset.pattern.permute.xlu0 %v6420_v3 }
   0x8   :  { %5462 = vmatprep.subr.bf16.mxu0 %v6143_v6 }
   0x9   :  { %5463 = vmatpush3.bf16.msra.mxu0 %v6143_v6 }
   0xa   :  { %5464 = vmatprep.subr.bf16.mxu0 %v6144_v7 }
   0xc   :  { %v71_v1 = vld [vmem:[%s7929_s2 + $0x10] sm:$0xff]  ;;  %v69_v2 = vld [vmem:[%s7929_s2] sm:$0xff]  ;;  %v72_v4 = vld [vmem:[%s7929_s2 + $0x18] sm:$0xff] }
   0xd   :  { %191 = vperm.xlu1 %6102, %v71_v1   ;;  %181 = vperm.xlu0 %6101, %v69_v2   ;;  %v70_v5 = vld [vmem:[%s7929_s2 + $0x8] sm:$0xff]  ;;  %v73_v9 = vld [vmem:[%s7929_s2 + $0x20] sm:$0xff]  ;;  %v76_v10 = vld [vmem:[%s7929_s2 + $0x38] sm:$0xff] }
   0xe   :  { %v74_v8 = vld [vmem:[%s7929_s2 + $0x28] sm:$0xff]  ;;  %v75_v11 = vld [vmem:[%s7929_s2 + $0x30] sm:$0xff]  ;;  %5465 = vmatpush3.bf16.msra.mxu0 %v6144_v7 }
  0x11   :  { %196 = vperm.xlu1 %6102, %v72_v4   ;;  %186 = vperm.xlu0 %6101, %v70_v5  }
  0x15   :  { %206 = vperm.xlu1 %6102, %v74_v8   ;;  %201 = vperm.xlu0 %6101, %v73_v9  }
  0x19   :  { %216 = vperm.xlu1 %6102, %v76_v10   ;;  %211 = vperm.xlu0 %6101, %v75_v11  }
  0x1a   :  { %27 = vsyncpa [#allocation5], 0  ;;  %s7930_s28 = sld [smem:[#allocation8_spill]]  ;;  %s7931_s23 = sld [smem:[#allocation7_spill]]  ;;  %vm146_vm0 = vcmask 261120   ;;  %vm353_vm1 = vcmask 130048  }
  0x1b   :  { %v4936_v57 = vld [vmem:[%s7905_s7] ss:$0 sm:$0xff]  ;;  %s6421_s30 = smov 96   ;;  %s7932_s21 = sld [smem:[#allocation11_spill]]  ;;  %vm443_vm11 = vcmask 523264  }
  0x1c   :  { %s7933_s22 = sld [smem:[#allocation10_spill]]  ;;  %s6424_s3 = smov 80  }
  0x1d   :  { %s6425_s26 = smov 112   ;;  %s6426_s27 = smov 48  }
  0x20   :  { %v171_v14 = vld [vmem:[%s7930_s28] sm:$0xff]  ;;  %v173_v15 = vld [vmem:[%s7930_s28 + $0x10] sm:$0xff]  ;;  %v172_v16 = vld [vmem:[%s7930_s28 + $0x8] sm:$0xff] }
  0x21   :  { %v174_v17 = vld [vmem:[%s7930_s28 + $0x18] sm:$0xff]  ;;  %v163_v18 = vld [vmem:[%s7931_s23] sm:$0xff]  ;;  %v164_v23 = vld [vmem:[%s7931_s23 + $0x8] sm:$0xff] }
  0x22   :  { %v165_v24 = vld [vmem:[%s7931_s23 + $0x10] sm:$0xff]  ;;  %v166_v25 = vld [vmem:[%s7931_s23 + $0x18] sm:$0xff]  ;;  %v175_v28 = vld [vmem:[%s7930_s28 + $0x20] sm:$0xff] }
  0x23   :  { %v176_v29 = vld [vmem:[%s7930_s28 + $0x28] sm:$0xff]  ;;  %v167_v36 = vld [vmem:[%s7931_s23 + $0x20] sm:$0xff]  ;;  %v177_v42 = vld [vmem:[%s7930_s28 + $0x30] sm:$0xff] }
  0x24   :  { %v168_v37 = vld [vmem:[%s7931_s23 + $0x28] sm:$0xff]  ;;  %v178_v43 = vld [vmem:[%s7930_s28 + $0x38] sm:$0xff]  ;;  %v169_v48 = vld [vmem:[%s7931_s23 + $0x30] sm:$0xff] }
  0x25   :  { %v170_v49 = vld [vmem:[%s7931_s23 + $0x38] sm:$0xff]  ;;  %s6427_s23 = smov 16  }
  0x8c   :  { %v6572_v12 = vpop.permute.xlu1 %191  ;;  %v6574_v13 = vpop.permute.xlu0 %181 }
  0x8d   :  { %v219_v19 = vmul.f32 %v6574_v13, %v171_v14  ;;  %v221_v20 = vmul.f32 %v6572_v12, %v173_v15 }
  0x8f   :  { %v6614_v30 = vadd.f32 %v219_v19, %v163_v18  ;;  %v6618_v32 = vadd.f32 %v221_v20, %v165_v24  ;;  %v81_v18 = vld [vmem:[%s7932_s21 + $0x18] sm:$0xff]  ;;  %v80_v19 = vld [vmem:[%s7932_s21 + $0x10] sm:$0xff]  ;;  %v83_v20 = vld [vmem:[%s7932_s21 + $0x28] sm:$0xff] }
  0x90   :  { %v6593_v21 = vpop.permute.xlu1 %196  ;;  %v6595_v22 = vpop.permute.xlu0 %186  ;;  %v85_v24 = vld [vmem:[%s7932_s21 + $0x38] sm:$0xff] }
  0x91   :  { %v220_v26 = vmul.f32 %v6595_v22, %v172_v16  ;;  %v222_v27 = vmul.f32 %v6593_v21, %v174_v17  ;;  %v79_v16 = vld [vmem:[%s7932_s21 + $0x8] sm:$0xff]  ;;  %v78_v17 = vld [vmem:[%s7932_s21] sm:$0xff] }
  0x93   :  { %v6616_v31 = vadd.f32 %v220_v26, %v164_v23  ;;  %v6620_v33 = vadd.f32 %v222_v27, %v166_v25  ;;  %v82_v23 = vld [vmem:[%s7932_s21 + $0x20] sm:$0xff]  ;;  %v84_v25 = vld [vmem:[%s7932_s21 + $0x30] sm:$0xff] }
  0x94   :  { %v6622_v34 = vpop.permute.xlu1 %206  ;;  %v6624_v35 = vpop.permute.xlu0 %201 }
  0x95   :  { %v235_v38 = vpack.c.bf16 %v6616_v31, %v6614_v30  ;;  %v236_v39 = vpack.c.bf16 %v6620_v33, %v6618_v32  ;;  %v223_v40 = vmul.f32 %v6624_v35, %v175_v28  ;;  %v224_v41 = vmul.f32 %v6622_v34, %v176_v29 }
  0x97   :  { %5466 = vmatprep.mubr.msk.bf16.mxu0 %vm146_vm0, %v235_v38  ;;  %v6645_v44 = vadd.f32 %v223_v40, %v167_v36  ;;  %v6647_v45 = vadd.f32 %v224_v41, %v168_v37  ;;  %v125_v40 = vlaneseq }
  0x98   :  { %v6649_v46 = vpop.permute.xlu1 %216  ;;  %5467 = vmatmul.mubr.msk.bf16.vlgmr.msra.gmra.mrb[0].mxu0 %vm146_vm0, %v236_v39  ;;  %v6652_v47 = vpop.permute.xlu0 %211 }
  0x99   :  { %v237_v50 = vpack.c.bf16 %v6647_v45, %v6645_v44  ;;  %v225_v51 = vmul.f32 %v6652_v47, %v177_v42  ;;  %v226_v52 = vmul.f32 %v6649_v46, %v178_v43  ;;  %v77_v42 = vld [vmem:[%s7933_s22] sm:$0x1]  ;;  %v6734_v43 = vshrl.u32 %v125_v40, 7 }
  0x9a   :  { %vm123_vm2 = vcmp.gt.f32.partialorder %v77_v42, 0.5 }
  0x9b   :  { %5470 = vmatprep.mubr.msk.bf16.mxu0 %vm146_vm0, %v237_v50  ;;  %v6665_v53 = vadd.f32 %v225_v51, %v169_v48  ;;  %v6667_v54 = vadd.f32 %v226_v52, %v170_v49  ;;  %v127_v50 = vsub.s32 0, %v6734_v43  ;;  %v124_v51 = vsel %vm123_vm2, 1, %v6420_v3 }
  0x9c   :  { %v6422_v3 = vmov -1e+09  }
  0x9d   :  { %v238_v55 = vpack.c.bf16 %v6667_v54, %v6665_v53  ;;  %v128_v52 = vrot.slane %v124_v51, %v127_v50 }
  0x9f   :  { %vm129_vm4 = vcmp.eq.s32.totalorder %v128_v52, 1 }
  0xa0   :  { %5471 = vmatmul.mubr.msk.bf16.gmra.mrb[4].mxu0 %vm146_vm0, %v238_v55  ;;  %v4935_v55 = vld [vmem:[%s7903_s5] ss:$0 sm:$0xff]  ;;  %s6423_s5 = smov 64  }
 0x16b   :  { %v5468_v56 = vpop.f32.mrb[0].mxu0 }
 0x16c   :  { %v306_v58 = vpop.f32.mrb[1].mxu0  ;;  %v315_v60 = vadd.f32 %v5468_v56, %v4936_v57 }
 0x16d   :  { %v5469_v59 = vpop.f32.mrb[2].mxu0  ;;  %v307_v63 = vadd.f32 %v4936_v57, %v306_v58 }
 0x16e   :  { %v318_v61 = vadd.f32 %v5469_v59, %v4936_v57  ;;  %v309_v62 = vpop.f32.mrb[3].mxu0 }
 0x16f   :  { %v310_v0 = vadd.f32 %v4936_v57, %v309_v62 }
 0x170   :  { %v6675_v1 = vpack.c.bf16 %v318_v61, %v315_v60 }
 0x171   :  { %v6677_v2 = vpack.c.bf16 %v310_v0, %v307_v63 }
 0x172   :  { %347 = vrot.lane.b32.xlu1 %v6675_v1, %s6421_s30 }
 0x173   :  { %345 = vrot.lane.b32.xlu0 %v6677_v2, %s6421_s30  ;;  %v5472_v4 = vpop.f32.mrb[4].mxu0  ;;  %5482 = vmatprep.mubr.msk.bf16.mxu0 %vm353_vm1, %v6677_v2 }
 0x174   :  { %v322_v5 = vpop.f32.mrb[5].mxu0  ;;  %v331_v7 = vadd.f32 %v5472_v4, %v4936_v57 }
 0x175   :  { %v5473_v6 = vpop.f32.mrb[6].mxu0  ;;  %v323_v10 = vadd.f32 %v4936_v57, %v322_v5 }
 0x176   :  { %v334_v8 = vadd.f32 %v5473_v6, %v4936_v57  ;;  %v325_v9 = vpop.f32.mrb[7].mxu0 }
 0x177   :  { %v326_v11 = vadd.f32 %v4936_v57, %v325_v9 }
 0x178   :  { %v6685_v14 = vpack.c.bf16 %v334_v8, %v331_v7 }
 0x179   :  { %v6687_v15 = vpack.c.bf16 %v326_v11, %v323_v10 }
 0x17a   :  { %351 = vrot.lane.b32.xlu1 %v6685_v14, %s6421_s30 }
 0x17b   :  { %349 = vrot.lane.b32.xlu0 %v6687_v15, %s6421_s30 }
 0x17e   :  { %91 = vperm.xlu1 %6102, %v79_v16  }
 0x17f   :  { %88 = vperm.xlu0 %6101, %v78_v17  }
 0x182   :  { %97 = vperm.xlu1 %6102, %v81_v18  }
 0x183   :  { %94 = vperm.xlu0 %6101, %v80_v19  }
 0x186   :  { %103 = vperm.xlu1 %6102, %v83_v20  }
 0x187   :  { %100 = vperm.xlu0 %6101, %v82_v23  }
 0x18a   :  { %109 = vperm.xlu1 %6102, %v85_v24  }
 0x18b   :  { %106 = vperm.xlu0 %6101, %v84_v25  }
 0x1e4   :  { %v348_v28 = vpop.permute.xlu1 %347 }
 0x1e5   :  { %v346_v26 = vpop.permute.xlu0 %345  ;;  %v370_v29 = vsel %vm353_vm1, %v348_v28, 0 }
 0x1e6   :  { %6073 = vmatprep.subr.msk.bf16.mxu0 %vm353_vm1, %v346_v26  ;;  %v367_v27 = vsel %vm353_vm1, %v346_v26, 0 }
 0x1e7   :  { %5475 = vmatpush3.bf16.xpose.msra.mxu0 %v367_v27 }
 0x1e8   :  { %6074 = vmatprep.subr.msk.bf16.mxu0 %vm353_vm1, %v348_v28 }
 0x1ec   :  { %v352_v38 = vpop.permute.xlu1 %351 }
 0x1ed   :  { %v350_v36 = vpop.permute.xlu0 %349  ;;  %v376_v39 = vsel %vm353_vm1, %v352_v38, 0 }
 0x1ee   :  { %v373_v37 = vsel %vm353_vm1, %v350_v36, 0 }
 0x1ef   :  { %5477 = vmatpush3.bf16.xpose.msra.mxu0 %v370_v29 }
 0x1f0   :  { %6075 = vmatprep.subr.msk.bf16.mxu0 %vm353_vm1, %v350_v36 }
 0x1f7   :  { %5479 = vmatpush3.bf16.xpose.msra.mxu0 %v373_v37 }
 0x1f8   :  { %6076 = vmatprep.subr.msk.bf16.mxu0 %vm353_vm1, %v352_v38 }
 0x1fd   :  { %v92_v48 = vpop.permute.xlu1 %91 }
 0x1fe   :  { %v89_v41 = vpop.permute.xlu0 %88  ;;  %vm116_vm6 = vcmp.eq.s32.totalorder %v92_v48, %v4935_v55 }
 0x1ff   :  { %5481 = vmatpush3.bf16.xpose.msra.mxu0 %v376_v39  ;;  %vm115_vm5 = vcmp.eq.s32.totalorder %v89_v41, %v4935_v55  ;;  %vm131_vm9 = vmand %vm116_vm6, %vm129_vm4 }
 0x200   :  { %vm130_vm8 = vmand %vm115_vm5, %vm129_vm4  ;;  %v6751_v5 = vsel %vm131_vm9, 0.0, %v6422_v3 }
 0x201   :  { %v98_v56 = vpop.permute.xlu1 %97  ;;  %v6749_v0 = vsel %vm130_vm8, 0.0, %v6422_v3  ;;  %vm4919_vm8 = vcmask 516096  }
 0x202   :  { %v95_v49 = vpop.permute.xlu0 %94  ;;  %vm118_vm10 = vcmp.eq.s32.totalorder %v98_v56, %v4935_v55 }
 0x203   :  { %vm117_vm3 = vcmp.eq.s32.totalorder %v95_v49, %v4935_v55  ;;  %vm133_vm13 = vmand %vm118_vm10, %vm129_vm4 }
 0x204   :  { %vm132_vm7 = vmand %vm117_vm3, %vm129_vm4  ;;  %v6758_v11 = vsel %vm133_vm13, 0.0, %v6422_v3 }
 0x205   :  { %v104_v58 = vpop.permute.xlu1 %103  ;;  %v6746_v60 = vsel %vm132_vm7, 0.0, %v6422_v3 }
 0x206   :  { %5483 = vmatmul.mubr.msk.bf16.vlgmr.msra.gmra.mrb[8].mxu0 %vm353_vm1, %v6675_v1  ;;  %v101_v57 = vpop.permute.xlu0 %100  ;;  %vm120_vm15 = vcmp.eq.s32.totalorder %v104_v58, %v4935_v55 }
 0x207   :  { %5486 = vmatprep.mubr.msk.bf16.mxu0 %vm353_vm1, %v6687_v15  ;;  %vm119_vm14 = vcmp.eq.s32.totalorder %v101_v57, %v4935_v55  ;;  %vm135_vm5 = vmand %vm120_vm15, %vm129_vm4 }
 0x208   :  { %vm134_vm3 = vmand %vm119_vm14, %vm129_vm4  ;;  %v6770_v27 = vsel %vm135_vm5, 0.0, %v6422_v3 }
 0x209   :  { %v110_v10 = vpop.permute.xlu1 %109  ;;  %v6768_v25 = vsel %vm134_vm3, 0.0, %v6422_v3 }
 0x20a   :  { %v107_v59 = vpop.permute.xlu0 %106  ;;  %vm122_vm6 = vcmp.eq.s32.totalorder %v110_v10, %v4935_v55 }
 0x20b   :  { %vm121_vm12 = vcmp.eq.s32.totalorder %v107_v59, %v4935_v55  ;;  %vm137_vm7 = vmand %vm122_vm6, %vm129_vm4 }
 0x20c   :  { %vm136_vm2 = vmand %vm121_vm12, %vm129_vm4  ;;  %v6779_v39 = vsel %vm137_vm7, 0.0, %v6422_v3 }
 0x20d   :  { %v6765_v19 = vsel %vm136_vm2, 0.0, %v6422_v3  ;;  %vm7852_vm4 = vmpackc.low %vm146_vm0, %vm146_vm0 }
 0x20e   :  { %5487 = vmatmul.mubr.msk.bf16.gmra.mrb[12].mxu0 %vm353_vm1, %v6685_v14 }
 0x2d9   :  { %v5484_v61 = vpop.f32.mrb[8].mxu0 }
 0x2da   :  { %v421_v62 = vadd.f32 %v5484_v61, %v6746_v60  ;;  %v412_v63 = vpop.f32.mrb[9].mxu0 }
 0x2db   :  { %v5485_v4 = vpop.f32.mrb[10].mxu0  ;;  %v413_v6 = vadd.f32 %v412_v63, %v6749_v0 }
 0x2dc   :  { %v415_v7 = vpop.f32.mrb[11].mxu0  ;;  %v450_v8 = vsel %vm443_vm11, %v421_v62, -inf  ;;  %v424_v17 = vadd.f32 %v5485_v4, %v6758_v11 }
 0x2dd   :  { %v416_v9 = vadd.f32 %v415_v7, %v6751_v5  ;;  %451 = vmax.xlane.f32.xlu0 %v450_v8  ;;  %v444_v18 = vsel %vm443_vm11, %v413_v6, -inf }
 0x2de   :  { %v453_v36 = vsel %vm443_vm11, %v424_v17, -inf }
 0x2df   :  { %v447_v16 = vsel %vm443_vm11, %v416_v9, -inf }
 0x2e0   :  { %448 = vmax.xlane.f32.xlu1 %v447_v16 }
 0x2e1   :  { %v5488_v20 = vpop.f32.mrb[12].mxu0  ;;  %445 = vmax.xlane.f32.xlu0 %v444_v18 }
 0x2e2   :  { %v437_v23 = vadd.f32 %v5488_v20, %v6765_v19  ;;  %v428_v24 = vpop.f32.mrb[13].mxu0 }
 0x2e3   :  { %v5489_v26 = vpop.f32.mrb[14].mxu0  ;;  %v429_v28 = vadd.f32 %v428_v24, %v6768_v25 }
 0x2e4   :  { %v431_v29 = vpop.f32.mrb[15].mxu0  ;;  %v462_v37 = vsel %vm443_vm11, %v437_v23, -inf  ;;  %v440_v41 = vadd.f32 %v5489_v26, %v6779_v39 }
 0x2e5   :  { %v6777_v38 = vadd.f32 %v431_v29, %v6770_v27  ;;  %454 = vmax.xlane.f32.xlu0 %v453_v36  ;;  %463 = vmax.xlane.f32.xlu1 %v462_v37  ;;  %v456_v42 = vsel %vm443_vm11, %v429_v28, -inf }
 0x2e6   :  { %v465_v48 = vsel %vm443_vm11, %v440_v41, -inf }
 0x2e7   :  { %v459_v40 = vsel %vm443_vm11, %v6777_v38, -inf }
 0x2e9   :  { %460 = vmax.xlane.f32.xlu0 %v459_v40  ;;  %457 = vmax.xlane.f32.xlu1 %v456_v42 }
 0x2ed   :  { %466 = vmax.xlane.f32.xlu0 %v465_v48 }
 0x2fa   :  { %536 = vrot.lane.b32.xlu1 %v6677_v2, %s6423_s5 }
 0x2fe   :  { %540 = vrot.lane.b32.xlu1 %v6687_v15, %s6423_s5 }
 0x302   :  { %542 = vrot.lane.b32.xlu1 %v6685_v14, %s6423_s5 }
 0x303   :  { %538 = vrot.lane.b32.xlu0 %v6675_v1, %s6423_s5 }
 0x306   :  { %633 = vrot.lane.b32.xlu1 %v6677_v2, %s6424_s3 }
 0x36a   :  { %v452_v49 = vpop.xlane.xlu0 %451 }
 0x36b   :  { %v470_v51 = vsub.f32 %v421_v62, %v452_v49 }
 0x36d   :  { %v480_v52 = vmul.f32 1.442695, %v470_v51  ;;  %v449_v55 = vpop.xlane.xlu1 %448 }
 0x36e   :  { %v446_v56 = vpop.xlane.xlu0 %445  ;;  %v469_v59 = vsub.f32 %v416_v9, %v449_v55 }
 0x36f   :  { %6203 = vpow2.f32 %v480_v52  ;;  %v468_v57 = vsub.f32 %v413_v6, %v446_v56 }
 0x370   :  { %v478_v7 = vmul.f32 1.442695, %v469_v59 }
 0x371   :  { %v476_v58 = vmul.f32 1.442695, %v468_v57 }
 0x372   :  { %v464_v3 = vpop.xlane.xlu1 %463  ;;  %v455_v61 = vpop.xlane.xlu0 %454 }
 0x373   :  { %6205 = vpow2.f32 %v476_v58  ;;  %v471_v63 = vsub.f32 %v424_v17, %v455_v61  ;;  %v474_v8 = vsub.f32 %v437_v23, %v464_v3 }
 0x375   :  { %v482_v4 = vmul.f32 1.442695, %v471_v63  ;;  %v488_v62 = vmul.f32 1.442695, %v474_v8 }
 0x376   :  { %v458_v10 = vpop.xlane.xlu1 %457  ;;  %v461_v16 = vpop.xlane.xlu0 %460 }
 0x377   :  { %6207 = vpow2.f32 %v482_v4  ;;  %v472_v20 = vsub.f32 %v429_v28, %v458_v10  ;;  %v473_v3 = vsub.f32 %v6777_v38, %v461_v16 }
 0x378   :  { %6209 = vpow2.f32 %v478_v7 }
 0x379   :  { %v6796_v18 = vpop.eup %6203  ;;  %6211 = vpow2.f32 %v488_v62  ;;  %v484_v17 = vmul.f32 1.442695, %v472_v20  ;;  %v486_v61 = vmul.f32 1.442695, %v473_v3 }
 0x37a   :  { %v537_v24 = vpop.permute.xlu1 %536  ;;  %v467_v26 = vpop.xlane.xlu0 %466  ;;  %v498_v6 = vsel %vm443_vm11, %v6796_v18, 0.0 }
 0x37b   :  { %5490 = vmatprep.subr.bf16.mxu0 %v537_v24  ;;  %499 = vadd.xlane.f32.xlu1 %v498_v6  ;;  %v475_v23 = vsub.f32 %v440_v41, %v467_v26  ;;  %6213 = vpow2.f32 %v484_v17 }
 0x37c   :  { %5491 = vmatpush3.bf16.msra.mxu0 %v537_v24 }
 0x37d   :  { %v6800_v9 = vpop.eup %6205  ;;  %v490_v40 = vmul.f32 1.442695, %v475_v23 }
 0x37e   :  { %v541_v29 = vpop.permute.xlu1 %540  ;;  %v539_v36 = vpop.permute.xlu0 %538  ;;  %v492_v37 = vsel %vm443_vm11, %v6800_v9, 0.0 }
 0x37f   :  { %493 = vadd.xlane.f32.xlu1 %v492_v37  ;;  %5492 = vmatprep.subr.bf16.mxu0 %v539_v36  ;;  %6215 = vpow2.f32 %v490_v40 }
 0x380   :  { %5493 = vmatpush3.bf16.msra.mxu0 %v539_v36  ;;  %6217 = vpow2.f32 %v486_v61 }
 0x381   :  { %5494 = vmatprep.subr.bf16.mxu0 %v541_v29  ;;  %v6208_v28 = vpop.eup %6207 }
 0x382   :  { %v543_v42 = vpop.permute.xlu1 %542  ;;  %v501_v48 = vsel %vm443_vm11, %v6208_v28, 0.0  ;;  %v6210_v49 = vpop.eup %6209 }
 0x383   :  { %502 = vadd.xlane.f32.xlu0 %v501_v48  ;;  %v495_v41 = vsel %vm443_vm11, %v6210_v49, 0.0  ;;  %v6806_v51 = vpop.eup %6211 }
 0x384   :  { %5495 = vmatpush3.bf16.msra.mxu0 %v541_v29  ;;  %v510_v55 = vsel %vm443_vm11, %v6806_v51, 0.0 }
 0x385   :  { %5496 = vmatprep.subr.bf16.mxu0 %v543_v42  ;;  %v6811_v56 = vpop.eup %6213 }
 0x386   :  { %v634_v52 = vpop.permute.xlu1 %633  ;;  %v504_v57 = vsel %vm443_vm11, %v6811_v56, 0.0 }
 0x387   :  { %496 = vadd.xlane.f32.xlu0 %v495_v41  ;;  %v654_v41 = vsel %vm353_vm1, %v634_v52, 0 }
 0x388   :  { %5497 = vmatpush3.bf16.msra.mxu0 %v543_v42 }
 0x389   :  { %6077 = vmatprep.subr.msk.bf16.mxu0 %vm353_vm1, %v634_v52  ;;  %v6815_v58 = vpop.eup %6215 }
 0x38a   :  { %v513_v59 = vsel %vm443_vm11, %v6815_v58, 0.0  ;;  %v6218_v63 = vpop.eup %6217 }
 0x38b   :  { %511 = vadd.xlane.f32.xlu0 %v510_v55  ;;  %v507_v4 = vsel %vm443_vm11, %v6218_v63, 0.0 }
 0x38f   :  { %505 = vadd.xlane.f32.xlu0 %v504_v57 }
 0x390   :  { %637 = vrot.lane.b32.xlu1 %v6687_v15, %s6424_s3 }
 0x393   :  { %514 = vadd.xlane.f32.xlu0 %v513_v59 }
 0x3a9   :  { %635 = vrot.lane.b32.xlu0 %v6675_v1, %s6424_s3 }
 0x3ad   :  { %625 = vrot.lane.b32.xlu0 %v6677_v2, %s6425_s26 }
 0x3b1   :  { %629 = vrot.lane.b32.xlu0 %v6687_v15, %s6425_s26 }
 0x3b4   :  { %508 = vadd.xlane.f32.xlu1 %v507_v4 }
 0x3c5   :  { %639 = vrot.lane.b32.xlu1 %v6685_v14, %s6424_s3 }
 0x3c9   :  { %627 = vrot.lane.b32.xlu1 %v6675_v1, %s6425_s26 }
 0x3cd   :  { %631 = vrot.lane.b32.xlu1 %v6685_v14, %s6425_s26 }
 0x408   :  { %v500_v38 = vpop.xlane.xlu1 %499 }
 0x40c   :  { %v494_v7 = vpop.xlane.xlu1 %493 }
 0x410   :  { %v503_v8 = vpop.xlane.xlu0 %502  ;;  %v638_v55 = vpop.permute.xlu1 %637 }
 0x411   :  { %6219 = vrcp.f32 %v503_v8 }
 0x412   :  { %6221 = vrcp.f32 %v494_v7 }
 0x413   :  { %6223 = vrcp.f32 %v500_v38 }
 0x414   :  { %v497_v10 = vpop.xlane.xlu0 %496 }
 0x415   :  { %6225 = vrcp.f32 %v497_v10 }
 0x418   :  { %v512_v16 = vpop.xlane.xlu0 %511 }
 0x41b   :  { %v6220_v62 = vpop.eup %6219 }
 0x41c   :  { %v506_v20 = vpop.xlane.xlu0 %505  ;;  %v6222_v24 = vpop.eup %6221  ;;  %v527_v17 = vmul.f32 %v6220_v62, %v6208_v28 }
 0x41d   :  { %v6224_v26 = vpop.eup %6223  ;;  %v524_v29 = vmul.f32 %v6222_v24, %v6800_v9 }
 0x41e   :  { %v526_v37 = vmul.f32 %v6224_v26, %v6796_v18  ;;  %v660_v18 = vsel %vm353_vm1, %v638_v55, 0 }
 0x41f   :  { %v6226_v6 = vpop.eup %6225 }
 0x420   :  { %v515_v23 = vpop.xlane.xlu0 %514  ;;  %v525_v36 = vmul.f32 %v6226_v6, %v6210_v49  ;;  %v533_v42 = vpack.c.bf16 %v527_v17, %v526_v37 }
 0x421   :  { %6227 = vrcp.f32 %v515_v23 }
 0x422   :  { %v532_v40 = vpack.c.bf16 %v525_v36, %v524_v29  ;;  %6229 = vrcp.f32 %v506_v20 }
 0x423   :  { %6231 = vrcp.f32 %v512_v16 }
 0x424   :  { %5498 = vmatprep.mubr.msk.bf16.mxu0 %vm443_vm11, %v532_v40  ;;  %v636_v48 = vpop.permute.xlu0 %635 }
 0x425   :  { %5499 = vmatmul.mubr.msk.bf16.vlgmr.msra.gmra.mrb[16].mxu0 %vm443_vm11, %v533_v42  ;;  %v657_v28 = vsel %vm353_vm1, %v636_v48, 0 }
 0x426   :  { %5507 = vmatpush3.bf16.xpose.msra.mxu0 %v654_v41 }
 0x427   :  { %6078 = vmatprep.subr.msk.bf16.mxu0 %vm353_vm1, %v636_v48 }
 0x428   :  { %v626_v62 = vpop.permute.xlu0 %625 }
 0x42b   :  { %v6228_v57 = vpop.eup %6227 }
 0x42c   :  { %v6230_v59 = vpop.eup %6229  ;;  %v531_v4 = vmul.f32 %v6228_v57, %v6815_v58  ;;  %v630_v24 = vpop.permute.xlu0 %629 }
 0x42d   :  { %v6232_v3 = vpop.eup %6231  ;;  %v528_v38 = vmul.f32 %v6230_v59, %v6811_v56 }
 0x42e   :  { %5509 = vmatpush3.bf16.xpose.msra.mxu0 %v657_v28  ;;  %v530_v8 = vmul.f32 %v6232_v3, %v6806_v51 }
 0x42f   :  { %6079 = vmatprep.subr.msk.bf16.mxu0 %vm353_vm1, %v638_v55 }
 0x430   :  { %v535_v16 = vpack.c.bf16 %v531_v4, %v530_v8 }
 0x436   :  { %5511 = vmatpush3.bf16.xpose.msra.mxu0 %v660_v18 }
 0x441   :  { %v509_v9 = vpop.xlane.xlu1 %508 }
 0x442   :  { %6233 = vrcp.f32 %v509_v9 }
 0x445   :  { %v640_v49 = vpop.permute.xlu1 %639 }
 0x446   :  { %6080 = vmatprep.subr.msk.bf16.mxu0 %vm353_vm1, %v640_v49  ;;  %v663_v52 = vsel %vm353_vm1, %v640_v49, 0 }
 0x447   :  { %5513 = vmatpush3.bf16.xpose.msra.mxu0 %v663_v52 }
 0x449   :  { %v628_v20 = vpop.permute.xlu1 %627 }
 0x44c   :  { %v6234_v61 = vpop.eup %6233 }
 0x44d   :  { %v529_v7 = vmul.f32 %v6234_v61, %v6218_v63  ;;  %v632_v58 = vpop.permute.xlu1 %631 }
 0x44f   :  { %v534_v10 = vpack.c.bf16 %v529_v7, %v528_v38 }
 0x451   :  { %5502 = vmatprep.mubr.msk.bf16.mxu0 %vm443_vm11, %v534_v10 }
 0x452   :  { %5503 = vmatmul.mubr.msk.bf16.gmra.mrb[20].mxu0 %vm443_vm11, %v535_v16 }
 0x453   :  { %5514 = vmatprep.mubr.msk.bf16.mxu0 %vm353_vm1, %v626_v62 }
 0x45a   :  { %5515 = vmatmul.mubr.msk.bf16.vlgmr.msra.gmra.mrb[24].mxu0 %vm353_vm1, %v628_v20 }
 0x45b   :  { %5518 = vmatprep.mubr.msk.bf16.mxu0 %vm353_vm1, %v630_v24 }
 0x462   :  { %5519 = vmatmul.mubr.msk.bf16.gmra.mrb[28].mxu0 %vm353_vm1, %v632_v58 }
 0x4f8   :  { %v6855_v56 = vpop.f32.mrb[16].mxu0 }
 0x4f9   :  { %v6857_v51 = vpop.f32.mrb[17].mxu0 }
 0x4fa   :  { %v6859_v63 = vpop.f32.mrb[18].mxu0 }
 0x4fb   :  { %v6861_v26 = vpop.f32.mrb[19].mxu0 }
 0x525   :  { %v6863_v6 = vpop.f32.mrb[20].mxu0 }
 0x526   :  { %v6865_v17 = vpop.f32.mrb[21].mxu0 }
 0x527   :  { %v6867_v23 = vpop.f32.mrb[22].mxu0 }
 0x528   :  { %v6869_v29 = vpop.f32.mrb[23].mxu0 }
 0x52d   :  { %v5516_v36 = vpop.f32.mrb[24].mxu0 }
 0x52e   :  { %v699_v37 = vpop.f32.mrb[25].mxu0  ;;  %v708_v41 = vadd.f32 %v5516_v36, %v6746_v60 }
 0x52f   :  { %v700_v40 = vadd.f32 %v699_v37, %v6749_v0  ;;  %v5517_v42 = vpop.f32.mrb[26].mxu0 }
 0x530   :  { %v702_v48 = vpop.f32.mrb[27].mxu0  ;;  %v711_v9 = vadd.f32 %v5517_v42, %v6758_v11  ;;  %v736_v52 = vsel %vm443_vm11, %v708_v41, -inf }
 0x531   :  { %v703_v28 = vadd.f32 %v702_v48, %v6751_v5  ;;  %v730_v55 = vsel %vm443_vm11, %v700_v40, -inf }
 0x532   :  { %731 = vmax.xlane.f32.xlu0 %v730_v55  ;;  %v739_v7 = vsel %vm443_vm11, %v711_v9, -inf }
 0x533   :  { %v733_v18 = vsel %vm443_vm11, %v703_v28, -inf }
 0x534   :  { %734 = vmax.xlane.f32.xlu1 %v733_v18 }
 0x535   :  { %v5520_v49 = vpop.f32.mrb[28].mxu0 }
 0x536   :  { %737 = vmax.xlane.f32.xlu0 %v736_v52  ;;  %v715_v57 = vpop.f32.mrb[29].mxu0  ;;  %v724_v4 = vadd.f32 %v5520_v49, %v6765_v19 }
 0x537   :  { %v716_v59 = vadd.f32 %v715_v57, %v6768_v25  ;;  %v5521_v3 = vpop.f32.mrb[30].mxu0 }
 0x538   :  { %v718_v61 = vpop.f32.mrb[31].mxu0  ;;  %v727_v10 = vadd.f32 %v5521_v3, %v6779_v39  ;;  %v748_v62 = vsel %vm443_vm11, %v724_v4, -inf }
 0x539   :  { %v719_v38 = vadd.f32 %v718_v61, %v6770_v27  ;;  %v742_v8 = vsel %vm443_vm11, %v716_v59, -inf }
 0x53a   :  { %740 = vmax.xlane.f32.xlu0 %v739_v7  ;;  %743 = vmax.xlane.f32.xlu1 %v742_v8  ;;  %v751_v20 = vsel %vm443_vm11, %v727_v10, -inf }
 0x53b   :  { %v745_v16 = vsel %vm443_vm11, %v719_v38, -inf }
 0x53e   :  { %746 = vmax.xlane.f32.xlu0 %v745_v16  ;;  %749 = vmax.xlane.f32.xlu1 %v748_v62 }
 0x542   :  { %752 = vmax.xlane.f32.xlu0 %v751_v20 }
 0x54f   :  { %822 = vrot.lane.b32.xlu1 %v6677_v2, %s6426_s27 }
 0x5bf   :  { %v732_v24 = vpop.xlane.xlu0 %731 }
 0x5c0   :  { %v754_v58 = vsub.f32 %v700_v40, %v732_v24 }
 0x5c1   :  { %v735_v36 = vpop.xlane.xlu1 %734 }
 0x5c2   :  { %v762_v48 = vmul.f32 1.442695, %v754_v58  ;;  %v755_v18 = vsub.f32 %v703_v28, %v735_v36 }
 0x5c3   :  { %v738_v37 = vpop.xlane.xlu0 %737 }
 0x5c4   :  { %v756_v42 = vsub.f32 %v708_v41, %v738_v37  ;;  %v764_v7 = vmul.f32 1.442695, %v755_v18 }
 0x5c6   :  { %v766_v55 = vmul.f32 1.442695, %v756_v42 }
 0x5c7   :  { %v744_v49 = vpop.xlane.xlu1 %743  ;;  %v741_v52 = vpop.xlane.xlu0 %740 }
 0x5c8   :  { %6235 = vpow2.f32 %v766_v55  ;;  %v757_v57 = vsub.f32 %v711_v9, %v741_v52  ;;  %v758_v3 = vsub.f32 %v716_v59, %v744_v49 }
 0x5c9   :  { %6237 = vpow2.f32 %v762_v48 }
 0x5ca   :  { %v768_v61 = vmul.f32 1.442695, %v757_v57  ;;  %v770_v2 = vmul.f32 1.442695, %v758_v3 }
 0x5cb   :  { %v750_v8 = vpop.xlane.xlu1 %749  ;;  %v747_v16 = vpop.xlane.xlu0 %746 }
 0x5cc   :  { %v760_v62 = vsub.f32 %v724_v4, %v750_v8  ;;  %6239 = vpow2.f32 %v768_v61  ;;  %v759_v20 = vsub.f32 %v719_v38, %v747_v16 }
 0x5cd   :  { %6241 = vpow2.f32 %v764_v7 }
 0x5ce   :  { %v774_v40 = vmul.f32 1.442695, %v760_v62  ;;  %v772_v58 = vmul.f32 1.442695, %v759_v20 }
 0x5cf   :  { %v823_v41 = vpop.permute.xlu1 %822  ;;  %v753_v24 = vpop.xlane.xlu0 %752 }
 0x5d0   :  { %6243 = vpow2.f32 %v774_v40  ;;  %v761_v28 = vsub.f32 %v727_v10, %v753_v24  ;;  %5522 = vmatprep.subr.bf16.mxu0 %v823_v41  ;;  %5937 = vmatprep.subr.bf16.mxu1 %v823_v41 }
 0x5d1   :  { %5523 = vmatpush3.bf16.msra.mxu0 %v823_v41  ;;  %5941 = vmatpush3.bf16.msra.mxu1 %v823_v41  ;;  %6245 = vpow2.f32 %v770_v2 }
 0x5d2   :  { %v6889_v9 = vpop.eup %6235  ;;  %v776_v59 = vmul.f32 1.442695, %v761_v28 }
 0x5d3   :  { %v784_v4 = vsel %vm443_vm11, %v6889_v9, 0.0  ;;  %v6238_v36 = vpop.eup %6237 }
 0x5d4   :  { %6247 = vpow2.f32 %v776_v59  ;;  %785 = vadd.xlane.f32.xlu1 %v784_v4  ;;  %v778_v10 = vsel %vm443_vm11, %v6238_v36, 0.0 }
 0x5d5   :  { %6249 = vpow2.f32 %v772_v58 }
 0x5d6   :  { %v6893_v38 = vpop.eup %6239 }
 0x5d7   :  { %v787_v37 = vsel %vm443_vm11, %v6893_v38, 0.0  ;;  %v6242_v42 = vpop.eup %6241 }
 0x5d8   :  { %779 = vadd.xlane.f32.xlu1 %v778_v10  ;;  %788 = vadd.xlane.f32.xlu0 %v787_v37  ;;  %v781_v49 = vsel %vm443_vm11, %v6242_v42, 0.0 }
 0x5da   :  { %v6898_v48 = vpop.eup %6243 }
 0x5db   :  { %v796_v55 = vsel %vm443_vm11, %v6898_v48, 0.0  ;;  %v6246_v18 = vpop.eup %6245 }
 0x5dc   :  { %797 = vadd.xlane.f32.xlu1 %v796_v55  ;;  %782 = vadd.xlane.f32.xlu0 %v781_v49  ;;  %v790_v57 = vsel %vm443_vm11, %v6246_v18, 0.0 }
 0x5de   :  { %v6248_v52 = vpop.eup %6247 }
 0x5df   :  { %v799_v3 = vsel %vm443_vm11, %v6248_v52, 0.0  ;;  %v6250_v61 = vpop.eup %6249 }
 0x5e0   :  { %791 = vadd.xlane.f32.xlu1 %v790_v57  ;;  %800 = vadd.xlane.f32.xlu0 %v799_v3  ;;  %v793_v7 = vsel %vm443_vm11, %v6250_v61, 0.0 }
 0x5e4   :  { %794 = vadd.xlane.f32.xlu0 %v793_v7 }
 0x5f1   :  { %826 = vrot.lane.b32.xlu1 %v6687_v15, %s6426_s27 }
 0x5f5   :  { %828 = vrot.lane.b32.xlu1 %v6685_v14, %s6426_s27 }
 0x5fa   :  { %824 = vrot.lane.b32.xlu0 %v6675_v1, %s6426_s27 }
 0x661   :  { %v786_v8 = vpop.xlane.xlu1 %785 }
 0x665   :  { %v780_v16 = vpop.xlane.xlu1 %779  ;;  %v789_v62 = vpop.xlane.xlu0 %788 }
 0x666   :  { %6251 = vrcp.f32 %v780_v16 }
 0x669   :  { %v798_v2 = vpop.xlane.xlu1 %797  ;;  %v783_v40 = vpop.xlane.xlu0 %782 }
 0x66a   :  { %6253 = vrcp.f32 %v783_v40 }
 0x66b   :  { %6255 = vrcp.f32 %v786_v8 }
 0x66c   :  { %6257 = vrcp.f32 %v789_v62 }
 0x66d   :  { %v792_v20 = vpop.xlane.xlu1 %791  ;;  %v801_v41 = vpop.xlane.xlu0 %800 }
 0x66e   :  { %6259 = vrcp.f32 %v801_v41 }
 0x66f   :  { %6261 = vrcp.f32 %v792_v20 }
 0x670   :  { %6263 = vrcp.f32 %v798_v2  ;;  %v6252_v24 = vpop.eup %6251 }
 0x671   :  { %v795_v15 = vpop.xlane.xlu0 %794  ;;  %v827_v28 = vpop.permute.xlu1 %826  ;;  %v810_v59 = vmul.f32 %v6252_v24, %v6238_v36 }
 0x672   :  { %6265 = vrcp.f32 %v795_v15 }
 0x674   :  { %v6254_v14 = vpop.eup %6253 }
 0x675   :  { %v825_v1 = vpop.permute.xlu0 %824  ;;  %v811_v58 = vmul.f32 %v6254_v14, %v6242_v42  ;;  %v6256_v4 = vpop.eup %6255 }
 0x676   :  { %5524 = vmatprep.subr.bf16.mxu0 %v825_v1  ;;  %5938 = vmatprep.subr.bf16.mxu1 %v825_v1  ;;  %v6258_v37 = vpop.eup %6257  ;;  %v829_v3 = vpop.permute.xlu1 %828  ;;  %v812_v62 = vmul.f32 %v6256_v4, %v6889_v9  ;;  %v6146_v9 = vld [vmem:[%s7906_s8 + $0x8] sm:$0xff]  }
 0x677   :  { %5525 = vmatpush3.bf16.msra.mxu0 %v825_v1  ;;  %5942 = vmatpush3.bf16.msra.mxu1 %v825_v1  ;;  %v818_v10 = vpack.c.bf16 %v811_v58, %v810_v59  ;;  %v813_v36 = vmul.f32 %v6258_v37, %v6893_v38  ;;  %v6145_v38 = vld [vmem:[%s7906_s8] sm:$0xff]  }
 0x678   :  { %5526 = vmatprep.subr.bf16.mxu0 %v827_v28  ;;  %5939 = vmatprep.subr.bf16.mxu1 %v827_v28  ;;  %v6260_v55 = vpop.eup %6259 }
 0x679   :  { %5530 = vmatprep.mubr.msk.bf16.mxu0 %vm443_vm11, %v818_v10  ;;  %v6262_v49 = vpop.eup %6261  ;;  %v817_v42 = vmul.f32 %v6260_v55, %v6248_v52  ;;  %v819_v20 = vpack.c.bf16 %v813_v36, %v812_v62 }
 0x67a   :  { %v6264_v57 = vpop.eup %6263  ;;  %v814_v8 = vmul.f32 %v6262_v49, %v6246_v18 }
 0x67b   :  { %5527 = vmatpush3.bf16.msra.mxu0 %v827_v28  ;;  %5943 = vmatpush3.bf16.msra.mxu1 %v827_v28  ;;  %v816_v2 = vmul.f32 %v6264_v57, %v6898_v48 }
 0x67c   :  { %v6266_v7 = vpop.eup %6265  ;;  %5528 = vmatprep.subr.bf16.mxu0 %v829_v3  ;;  %5940 = vmatprep.subr.bf16.mxu1 %v829_v3 }
 0x67d   :  { %v815_v16 = vmul.f32 %v6266_v7, %v6250_v61  ;;  %v821_v41 = vpack.c.bf16 %v817_v42, %v816_v2 }
 0x67f   :  { %5529 = vmatpush3.bf16.msra.mxu0 %v829_v3  ;;  %5944 = vmatpush3.bf16.msra.mxu1 %v829_v3  ;;  %v820_v40 = vpack.c.bf16 %v815_v16, %v814_v8 }
 0x680   :  { %5538 = vmatprep.subr.bf16.mxu1 %v6145_v38 }
 0x681   :  { %5534 = vmatprep.mubr.msk.bf16.mxu1 %vm443_vm11, %v820_v40 }
 0x682   :  { %5531 = vmatmul.mubr.msk.bf16.vlgmr.msra.gmra.mrb[32].mxu0 %vm443_vm11, %v819_v20  ;;  %5535 = vmatmul.mubr.msk.bf16.vlgmr.msra.gmra.mrb[0].mxu1 %vm443_vm11, %v821_v41 }
 0x683   :  { %5539 = vmatpush3.bf16.msra.mxu1 %v6145_v38 }
 0x684   :  { %5540 = vmatprep.subr.bf16.mxu1 %v6146_v9 }
 0x687   :  { %5541 = vmatpush3.bf16.msra.mxu1 %v6146_v9 }
 0x755   :  { %v5532_v48 = vpop.f32.mrb[32].mxu0  ;;  %v5536_v18 = vpop.f32.mrb[0].mxu1 }
 0x756   :  { %v880_v52 = vpop.f32.mrb[33].mxu0  ;;  %v896_v61 = vpop.f32.mrb[1].mxu1 }
 0x757   :  { %v5533_v15 = vpop.f32.mrb[34].mxu0  ;;  %v5537_v24 = vpop.f32.mrb[2].mxu1 }
 0x758   :  { %v6108_v14 = vpack.i.bf16 %v5533_v15, %v5532_v48  ;;  %v6118_v28 = vpack.i.bf16 %v5537_v24, %v5536_v18  ;;  %v883_v1 = vpop.f32.mrb[35].mxu0  ;;  %v899_v59 = vpop.f32.mrb[3].mxu1 }
 0x759   :  { %v6103_v58 = vpack.i.bf16 %v883_v1, %v880_v52  ;;  %v6113_v4 = vpack.i.bf16 %v899_v59, %v896_v61 }
 0x75a   :  { %6109 = vrot.lane.b32.xlu1 %v6108_v14, %s6427_s23 }
 0x75b   :  { %6104 = vrot.lane.b32.xlu0 %v6103_v58, %s6427_s23 }
 0x75e   :  { %6119 = vrot.lane.b32.xlu1 %v6118_v28, %s6427_s23 }
 0x75f   :  { %6114 = vrot.lane.b32.xlu0 %v6113_v4, %s6427_s23 }
 0x7cc   :  { %v6110_v10 = vpop.permute.xlu1 %6109 }
 0x7cd   :  { %v6112_v37 = vunpack.i.h.bf16 %v6110_v10  ;;  %v6111_v55 = vunpack.i.l.bf16 %v6110_v10  ;;  %v6105_v49 = vpop.permute.xlu0 %6104 }
 0x7ce   :  { %v6107_v57 = vunpack.i.h.bf16 %v6105_v49  ;;  %v6106_v3 = vunpack.i.l.bf16 %v6105_v49 }
 0x7cf   :  { %v946_v7 = vsel %vm353_vm1, %v6859_v63, %v6112_v37  ;;  %v945_v36 = vsel %vm353_vm1, %v6855_v56, %v6111_v55 }
 0x7d0   :  { %v952_v42 = vpack.c.bf16 %v946_v7, %v945_v36  ;;  %v944_v8 = vsel %vm353_vm1, %v6861_v26, %v6107_v57  ;;  %v943_v16 = vsel %vm353_vm1, %v6857_v51, %v6106_v3  ;;  %v6120_v62 = vpop.permute.xlu1 %6119 }
 0x7d1   :  { %v6122_v2 = vunpack.i.h.bf16 %v6120_v62  ;;  %v6121_v40 = vunpack.i.l.bf16 %v6120_v62  ;;  %v6115_v20 = vpop.permute.xlu0 %6114  ;;  %v951_v41 = vpack.c.bf16 %v944_v8, %v943_v16 }
 0x7d2   :  { %v6117_v38 = vunpack.i.h.bf16 %v6115_v20  ;;  %v6116_v9 = vunpack.i.l.bf16 %v6115_v20  ;;  %v6428_v20 = vmov 0.0  }
 0x7d3   :  { %v950_v63 = vsel %vm353_vm1, %v6867_v23, %v6122_v2  ;;  %v949_v56 = vsel %vm353_vm1, %v6863_v6, %v6121_v40  ;;  %5542 = vmatprep.mubr.msk.bf16.mxu1 %vm146_vm0, %v951_v41  ;;  %v4959_v6 = vld [vmem:[%s7907_s9] ss:$0 sm:$0xff]  ;;  %147 = vst.msk [vmem:[#allocation2] sm:$0xff] %vm146_vm0, %v6428_v20  ;;  %148 = vst.msk [vmem:[#allocation2 + $0x8] sm:$0xff] %vm146_vm0, %v6428_v20 }
 0x7d4   :  { %v948_v26 = vsel %vm353_vm1, %v6869_v29, %v6117_v38  ;;  %v947_v51 = vsel %vm353_vm1, %v6865_v17, %v6116_v9  ;;  %5543 = vmatmul.mubr.msk.bf16.vlgmr.msra.gmra.mrb[4].mxu1 %vm146_vm0, %v952_v42  ;;  %v954_v48 = vpack.c.bf16 %v950_v63, %v949_v56  ;;  %149 = vst.msk [vmem:[#allocation2 + $0x10] sm:$0xff] %vm146_vm0, %v6428_v20  ;;  %150 = vst.msk [vmem:[#allocation2 + $0x18] sm:$0xff] %vm146_vm0, %v6428_v20 }
 0x7d5   :  { %v953_v18 = vpack.c.bf16 %v948_v26, %v947_v51  ;;  %151 = vst.msk [vmem:[#allocation2 + $0x20] sm:$0xff] %vm146_vm0, %v6428_v20  ;;  %152 = vst.msk [vmem:[#allocation2 + $0x28] sm:$0xff] %vm146_vm0, %v6428_v20 }
 0x7d6   :  { %153 = vst.msk [vmem:[#allocation2 + $0x30] sm:$0xff] %vm146_vm0, %v6428_v20  ;;  %154 = vst.msk [vmem:[#allocation2 + $0x38] sm:$0xff] %vm146_vm0, %v6428_v20 }
 0x7d7   :  { %5546 = vmatprep.mubr.msk.bf16.mxu1 %vm146_vm0, %v953_v18  ;;  %155 = vst.msk [vmem:[#allocation2 + $0x40] sm:$0xff] %vm146_vm0, %v6428_v20  ;;  %156 = vst.msk [vmem:[#allocation2 + $0x48] sm:$0xff] %vm146_vm0, %v6428_v20 }
 0x7d8   :  { %157 = vst.msk [vmem:[#allocation2 + $0x50] sm:$0xff] %vm146_vm0, %v6428_v20  ;;  %158 = vst.msk [vmem:[#allocation2 + $0x58] sm:$0xff] %vm146_vm0, %v6428_v20 }
 0x7d9   :  { %159 = vst.msk [vmem:[#allocation2 + $0x60] sm:$0xff] %vm146_vm0, %v6428_v20  ;;  %160 = vst.msk [vmem:[#allocation2 + $0x68] sm:$0xff] %vm146_vm0, %v6428_v20 }
 0x7da   :  { %161 = vst.msk [vmem:[#allocation2 + $0x70] sm:$0xff] %vm146_vm0, %v6428_v20  ;;  %162 = vst.msk [vmem:[#allocation2 + $0x78] sm:$0xff] %vm146_vm0, %v6428_v20 }
 0x7dc   :  { %5547 = vmatmul.mubr.msk.bf16.gmra.mrb[8].mxu1 %vm146_vm0, %v954_v48 }
 0x8a7   :  { %v5544_v23 = vpop.f32.mrb[4].mxu1 }
 0x8a8   :  { %v1022_v52 = vpop.f32.mrb[5].mxu1  ;;  %v1031_v61 = vadd.f32 %v5544_v23, %v4959_v6 }
 0x8a9   :  { %v1023_v15 = vadd.f32 %v4959_v6, %v1022_v52  ;;  %v5545_v29 = vpop.f32.mrb[6].mxu1 }
 0x8aa   :  { %v1025_v24 = vpop.f32.mrb[7].mxu1  ;;  %v1034_v28 = vadd.f32 %v5545_v29, %v4959_v6  ;;  %v1055_v58 = vadd.f32 %v1031_v61, %v6618_v32 }
 0x8ab   :  { %v1026_v14 = vadd.f32 %v4959_v6, %v1025_v24  ;;  %v1053_v17 = vadd.f32 %v1023_v15, %v6614_v30 }
 0x8ac   :  { %v1056_v55 = vadd.f32 %v1034_v28, %v6620_v33  ;;  %v1069_v30 = vsel %vm146_vm0, %v1055_v58, 0.0 }
 0x8ad   :  { %v1063_v1 = vsel %vm146_vm0, %v1053_v17, 0.0  ;;  %v1054_v59 = vadd.f32 %v1026_v14, %v6616_v31 }
 0x8ae   :  { %1064 = vadd.xlane.f32.xlu0 %v1063_v1  ;;  %v1072_v32 = vsel %vm146_vm0, %v1056_v55, 0.0 }
 0x8af   :  { %v5548_v4 = vpop.f32.mrb[8].mxu1  ;;  %v1066_v10 = vsel %vm146_vm0, %v1054_v59, 0.0 }
 0x8b0   :  { %v1038_v37 = vpop.f32.mrb[9].mxu1  ;;  %1067 = vadd.xlane.f32.xlu1 %v1066_v10  ;;  %v1047_v49 = vadd.f32 %v5548_v4, %v4959_v6 }
 0x8b1   :  { %v1039_v57 = vadd.f32 %v4959_v6, %v1038_v37  ;;  %v5549_v3 = vpop.f32.mrb[10].mxu1 }
 0x8b2   :  { %v1041_v7 = vpop.f32.mrb[11].mxu1  ;;  %1070 = vadd.xlane.f32.xlu0 %v1069_v30  ;;  %v1050_v42 = vadd.f32 %v5549_v3, %v4959_v6  ;;  %v1059_v16 = vadd.f32 %v1047_v49, %v6665_v53 }
 0x8b3   :  { %v1042_v36 = vadd.f32 %v4959_v6, %v1041_v7  ;;  %v1057_v31 = vadd.f32 %v1039_v57, %v6645_v44 }
 0x8b4   :  { %v1081_v33 = vsel %vm146_vm0, %v1059_v16, 0.0  ;;  %v1060_v40 = vadd.f32 %v1050_v42, %v6667_v54 }
 0x8b5   :  { %v1075_v8 = vsel %vm146_vm0, %v1057_v31, 0.0  ;;  %v1058_v62 = vadd.f32 %v1042_v36, %v6647_v45 }
 0x8b6   :  { %1076 = vadd.xlane.f32.xlu1 %v1075_v8  ;;  %1073 = vadd.xlane.f32.xlu0 %v1072_v32  ;;  %v1084_v44 = vsel %vm146_vm0, %v1060_v40, 0.0 }
 0x8b7   :  { %v1078_v2 = vsel %vm146_vm0, %v1058_v62, 0.0 }
 0x8ba   :  { %1082 = vadd.xlane.f32.xlu1 %v1081_v33  ;;  %1079 = vadd.xlane.f32.xlu0 %v1078_v2  ;;  %v6148_v33 = vld [vmem:[%s7910_s12 + $0x18] sm:$0xff]   ;;  %v7049_v2 = vld [vmem:[%s7910_s12] sm:$0xff]  }
 0x8be   :  { %1085 = vadd.xlane.f32.xlu0 %v1084_v44 }
 0x93b   :  { %v1065_v45 = vpop.xlane.xlu0 %1064 }
 0x93c   :  { %v1088_v53 = vmul.f32 0.03125, %v1065_v45 }
 0x93d   :  { %v1068_v54 = vpop.xlane.xlu1 %1067 }
 0x93e   :  { %v7000_v41 = vsub.f32 %v1053_v17, %v1088_v53  ;;  %v1089_v38 = vmul.f32 0.03125, %v1068_v54 }
 0x93f   :  { %v1071_v9 = vpop.xlane.xlu0 %1070 }
 0x940   :  { %v7002_v63 = vsub.f32 %v1054_v59, %v1089_v38  ;;  %v1090_v56 = vmul.f32 0.03125, %v1071_v9  ;;  %v1104_v26 = vmul.f32 %v7000_v41, %v7000_v41 }
 0x942   :  { %v7006_v51 = vsub.f32 %v1055_v58, %v1090_v56  ;;  %v1112_v48 = vsel %vm146_vm0, %v1104_v26, 0.0  ;;  %v1105_v18 = vmul.f32 %v7002_v63, %v7002_v63 }
 0x943   :  { %v1077_v6 = vpop.xlane.xlu1 %1076  ;;  %1113 = vadd.xlane.f32.xlu1 %v1112_v48  ;;  %v1074_v23 = vpop.xlane.xlu0 %1073 }
 0x944   :  { %v1092_v52 = vmul.f32 0.03125, %v1077_v6  ;;  %v1091_v61 = vmul.f32 0.03125, %v1074_v23  ;;  %v1115_v15 = vsel %vm146_vm0, %v1105_v18, 0.0  ;;  %v1106_v29 = vmul.f32 %v7006_v51, %v7006_v51 }
 0x945   :  { %1116 = vadd.xlane.f32.xlu0 %v1115_v15 }
 0x946   :  { %v7014_v24 = vsub.f32 %v1057_v31, %v1092_v52  ;;  %v7016_v14 = vsub.f32 %v1056_v55, %v1091_v61  ;;  %v1118_v17 = vsel %vm146_vm0, %v1106_v29, 0.0 }
 0x947   :  { %v1083_v28 = vpop.xlane.xlu1 %1082  ;;  %1119 = vadd.xlane.f32.xlu1 %v1118_v17  ;;  %v1080_v1 = vpop.xlane.xlu0 %1079 }
 0x948   :  { %v1094_v59 = vmul.f32 0.03125, %v1083_v28  ;;  %v1093_v58 = vmul.f32 0.03125, %v1080_v1  ;;  %v1108_v4 = vmul.f32 %v7014_v24, %v7014_v24  ;;  %v1107_v10 = vmul.f32 %v7016_v14, %v7016_v14 }
 0x94a   :  { %v7023_v37 = vsub.f32 %v1059_v16, %v1094_v59  ;;  %v7025_v49 = vsub.f32 %v1058_v62, %v1093_v58  ;;  %v1124_v55 = vsel %vm146_vm0, %v1108_v4, 0.0  ;;  %v1121_v57 = vsel %vm146_vm0, %v1107_v10, 0.0  ;;  %v6147_v62 = vld [vmem:[%s7910_s12 + $0x10] sm:$0xff]   ;;  %v4966_v59 = vld [vmem:[%s7908_s10] ss:$0 sm:$0xff] }
 0x94b   :  { %1125 = vadd.xlane.f32.xlu1 %v1124_v55  ;;  %1122 = vadd.xlane.f32.xlu0 %v1121_v57  ;;  %v1086_v3 = vpop.xlane.xlu0 %1085 }
 0x94c   :  { %v1095_v30 = vmul.f32 0.03125, %v1086_v3  ;;  %v1110_v7 = vmul.f32 %v7023_v37, %v7023_v37  ;;  %v1109_v36 = vmul.f32 %v7025_v49, %v7025_v49  ;;  %5550 = vmatprep.subr.bf16.mxu0 %v6147_v62  ;;  %v4967_v3 = vld [vmem:[%s7909_s11] ss:$0 sm:$0xff] }
 0x94d   :  { %5551 = vmatpush3.bf16.msra.mxu0 %v6147_v62 }
 0x94e   :  { %v7033_v31 = vsub.f32 %v1060_v40, %v1095_v30  ;;  %v1130_v32 = vsel %vm146_vm0, %v1110_v7, 0.0  ;;  %v1127_v42 = vsel %vm146_vm0, %v1109_v36, 0.0  ;;  %5552 = vmatprep.subr.bf16.mxu0 %v6148_v33 }
 0x94f   :  { %1131 = vadd.xlane.f32.xlu1 %v1130_v32  ;;  %1128 = vadd.xlane.f32.xlu0 %v1127_v42 }
 0x950   :  { %v1111_v8 = vmul.f32 %v7033_v31, %v7033_v31 }
 0x951   :  { %5553 = vmatpush3.bf16.msra.mxu0 %v6148_v33 }
 0x952   :  { %v1133_v16 = vsel %vm146_vm0, %v1111_v8, 0.0  ;;  %5562 = vmatprep.subr.bf16.mxu0 %v7049_v2 }
 0x953   :  { %1134 = vadd.xlane.f32.xlu0 %v1133_v16 }
 0x9d0   :  { %v1114_v40 = vpop.xlane.xlu1 %1113 }
 0x9d1   :  { %v1136_v44 = vmul.f32 0.03125, %v1114_v40 }
 0x9d2   :  { %v1117_v45 = vpop.xlane.xlu0 %1116 }
 0x9d3   :  { %v1144_v53 = vadd.f32 1e-05, %v1136_v44  ;;  %v1137_v54 = vmul.f32 0.03125, %v1117_v45 }
 0x9d4   :  { %v1120_v38 = vpop.xlane.xlu1 %1119 }
 0x9d5   :  { %6267 = vrsqrt.f32 %v1144_v53  ;;  %v1145_v9 = vadd.f32 1e-05, %v1137_v54  ;;  %v1138_v56 = vmul.f32 0.03125, %v1120_v38 }
 0x9d7   :  { %6269 = vrsqrt.f32 %v1145_v9  ;;  %v1146_v26 = vadd.f32 1e-05, %v1138_v56 }
 0x9d8   :  { %v1126_v48 = vpop.xlane.xlu1 %1125  ;;  %v1123_v18 = vpop.xlane.xlu0 %1122 }
 0x9d9   :  { %6271 = vrsqrt.f32 %v1146_v26  ;;  %v1140_v6 = vmul.f32 0.03125, %v1126_v48  ;;  %v1139_v23 = vmul.f32 0.03125, %v1123_v18 }
 0x9db   :  { %v1148_v52 = vadd.f32 1e-05, %v1140_v6  ;;  %v1147_v61 = vadd.f32 1e-05, %v1139_v23 }
 0x9dc   :  { %v1132_v15 = vpop.xlane.xlu1 %1131  ;;  %v1129_v29 = vpop.xlane.xlu0 %1128 }
 0x9dd   :  { %6273 = vrsqrt.f32 %v1148_v52  ;;  %v1142_v17 = vmul.f32 0.03125, %v1132_v15  ;;  %v1141_v28 = vmul.f32 0.03125, %v1129_v29 }
 0x9de   :  { %6275 = vrsqrt.f32 %v1147_v61 }
 0x9df   :  { %v6268_v1 = vpop.eup %6267  ;;  %v1150_v58 = vadd.f32 1e-05, %v1142_v17  ;;  %v1149_v4 = vadd.f32 1e-05, %v1141_v28 }
 0x9e0   :  { %v1160_v10 = vmul.f32 %v6268_v1, %v7000_v41  ;;  %v1135_v55 = vpop.xlane.xlu0 %1134 }
 0x9e1   :  { %v6270_v57 = vpop.eup %6269  ;;  %6277 = vrsqrt.f32 %v1150_v58  ;;  %v1143_v30 = vmul.f32 0.03125, %v1135_v55 }
 0x9e2   :  { %v1172_v7 = vmul.f32 %v4966_v59, %v1160_v10  ;;  %v1161_v36 = vmul.f32 %v6270_v57, %v7002_v63  ;;  %6279 = vrsqrt.f32 %v1149_v4 }
 0x9e3   :  { %v6272_v32 = vpop.eup %6271  ;;  %v1151_v42 = vadd.f32 1e-05, %v1143_v30 }
 0x9e4   :  { %v1184_v8 = vadd.f32 %v4967_v3, %v1172_v7  ;;  %v1173_v16 = vmul.f32 %v4966_v59, %v1161_v36  ;;  %v1162_v62 = vmul.f32 %v6272_v32, %v7006_v51  ;;  %v6150_v36 = vld [vmem:[%s7910_s12 + $0x8] sm:$0xff]  }
 0x9e5   :  { %6281 = vrsqrt.f32 %v1151_v42 }
 0x9e6   :  { %v7062_v41 = vmul.f32 %v1184_v8, %v6574_v13  ;;  %v1185_v33 = vadd.f32 %v4967_v3, %v1173_v16  ;;  %v1174_v40 = vmul.f32 %v4966_v59, %v1162_v62  ;;  %v6151_v8 = vld [vmem:[%s7910_s12 + $0x20] sm:$0xff]  }
 0x9e7   :  { %v6274_v44 = vpop.eup %6273 }
 0x9e8   :  { %v6276_v45 = vpop.eup %6275  ;;  %1200 = vst.msk [vmem:[#allocation2 + $0x4] sm:$0xff] %vm146_vm0, %v7062_v41  ;;  %v7067_v63 = vmul.f32 %v1185_v33, %v6595_v22  ;;  %v1186_v53 = vadd.f32 %v4967_v3, %v1174_v40  ;;  %v1164_v54 = vmul.f32 %v6274_v44, %v7014_v24 }
 0x9e9   :  { %v1163_v38 = vmul.f32 %v6276_v45, %v7016_v14 }
 0x9ea   :  { %1201 = vst.msk [vmem:[#allocation2 + $0x14] sm:$0xff] %vm146_vm0, %v7067_v63  ;;  %v7074_v51 = vmul.f32 %v1186_v53, %v6572_v12  ;;  %v1176_v9 = vmul.f32 %v4966_v59, %v1164_v54  ;;  %v6165_v54 = vld [vmem:[%s7912_s14] sm:$0xff]  }
 0x9eb   :  { %v6278_v56 = vpop.eup %6277  ;;  %v1175_v26 = vmul.f32 %v4966_v59, %v1163_v38  ;;  %v6166_v38 = vld [vmem:[%s7912_s14 + $0x8] sm:$0xff]   ;;  %5658 = vmatprep.subr.bf16.mxu1 %v6165_v54 }
 0x9ec   :  { %v6280_v48 = vpop.eup %6279  ;;  %1202 = vst.msk [vmem:[#allocation2 + $0x24] sm:$0xff] %vm146_vm0, %v7074_v51  ;;  %v1188_v18 = vadd.f32 %v4967_v3, %v1176_v9  ;;  %v1166_v6 = vmul.f32 %v6278_v56, %v7023_v37  ;;  %5659 = vmatpush3.bf16.msra.mxu1 %v6165_v54  ;;  %v6156_v54 = vld [vmem:[%s7910_s12 + $0x48] sm:$0xff]  }
 0x9ed   :  { %v1187_v23 = vadd.f32 %v4967_v3, %v1175_v26  ;;  %v1165_v24 = vmul.f32 %v6280_v48, %v7025_v49  ;;  %v6152_v48 = vld [vmem:[%s7910_s12 + $0x28] sm:$0xff]   ;;  %5660 = vmatprep.subr.bf16.mxu1 %v6166_v38 }
 0x9ee   :  { %v7081_v14 = vmul.f32 %v1188_v18, %v6624_v35  ;;  %v1178_v52 = vmul.f32 %v4966_v59, %v1166_v6  ;;  %v6167_v6 = vld [vmem:[%s7912_s14 + $0x10] sm:$0xff]  }
 0x9ef   :  { %v6282_v61 = vpop.eup %6281  ;;  %v7084_v15 = vmul.f32 %v1187_v23, %v6593_v21  ;;  %v1177_v29 = vmul.f32 %v4966_v59, %v1165_v24  ;;  %v1224_v49 = vld [vmem:[#allocation2 + $0x1] sm:$0xff]  ;;  %v6153_v23 = vld [vmem:[%s7910_s12 + $0x30] sm:$0xff]  }
 0x9f0   :  { %1204 = vst.msk [vmem:[#allocation2 + $0x44] sm:$0xff] %vm146_vm0, %v7081_v14  ;;  %v1190_v17 = vadd.f32 %v4967_v3, %v1178_v52  ;;  %v1167_v28 = vmul.f32 %v6282_v61, %v7033_v31  ;;  %v1208_v44 = vld [vmem:[#allocation2] sm:$0xff]  ;;  %5661 = vmatpush3.bf16.msra.mxu1 %v6166_v38  ;;  %v6168_v61 = vld [vmem:[%s7912_s14 + $0x18] sm:$0xff]  }
 0x9f1   :  { %1203 = vst.msk [vmem:[#allocation2 + $0x34] sm:$0xff] %vm146_vm0, %v7084_v15  ;;  %v1189_v37 = vadd.f32 %v4967_v3, %v1177_v29  ;;  %v1225_v1 = vld [vmem:[#allocation2 + $0x11] sm:$0xff]  ;;  %5662 = vmatprep.subr.bf16.mxu1 %v6167_v6 }
 0x9f2   :  { %v7092_v58 = vmul.f32 %v1190_v17, %v6652_v47  ;;  %v1179_v4 = vmul.f32 %v4966_v59, %v1167_v28  ;;  %v1232_v10 = vpack.c.bf16 %v1225_v1, %v1224_v49  ;;  %v1209_v33 = vld [vmem:[#allocation2 + $0x10] sm:$0xff]  ;;  %v1419_v28 = vld [vmem:[#allocation2 + $0x2] sm:$0xff] }
 0x9f3   :  { %v7095_v55 = vmul.f32 %v1189_v37, %v6622_v34  ;;  %v1226_v59 = vld [vmem:[#allocation2 + $0x21] sm:$0xff]  ;;  %v1216_v45 = vpack.c.bf16 %v1209_v33, %v1208_v44  ;;  %v1420_v52 = vld [vmem:[#allocation2 + $0x12] sm:$0xff] }
 0x9f4   :  { %1206 = vst.msk [vmem:[#allocation2 + $0x64] sm:$0xff] %vm146_vm0, %v7092_v58  ;;  %v1191_v57 = vadd.f32 %v4967_v3, %v1179_v4  ;;  %5554 = vmatprep.mubr.msk.bf16.mxu0 %vm146_vm0, %v1232_v10  ;;  %v1210_v9 = vld [vmem:[#allocation2 + $0x20] sm:$0xff]  ;;  %v1427_v37 = vpack.c.bf16 %v1420_v52, %v1419_v28  ;;  %5663 = vmatpush3.bf16.msra.mxu1 %v6167_v6  ;;  %v6170_v10 = vld [vmem:[%s7912_s14 + $0x28] sm:$0xff]   ;;  %v6158_v28 = vld [vmem:[%s7910_s12 + $0x58] sm:$0xff]  }
 0x9f5   :  { %1205 = vst.msk [vmem:[#allocation2 + $0x54] sm:$0xff] %vm146_vm0, %v7095_v55  ;;  %5664 = vmatprep.subr.bf16.mxu1 %v6168_v61  ;;  %v6169_v49 = vld [vmem:[%s7912_s14 + $0x20] sm:$0xff]  }
 0x9f6   :  { %v7103_v31 = vmul.f32 %v1191_v57, %v6649_v46  ;;  %v1421_v57 = vld [vmem:[#allocation2 + $0x22] sm:$0xff] }
 0x9f7   :  { %v1228_v3 = vld [vmem:[#allocation2 + $0x41] sm:$0xff] }
 0x9f8   :  { %1207 = vst.msk [vmem:[#allocation2 + $0x74] sm:$0xff] %vm146_vm0, %v7103_v31  ;;  %v1227_v30 = vld [vmem:[#allocation2 + $0x31] sm:$0xff]  ;;  %v1212_v26 = vld [vmem:[#allocation2 + $0x40] sm:$0xff]  ;;  %5665 = vmatpush3.bf16.msra.mxu1 %v6168_v61 }
 0x9f9   :  { %v1233_v7 = vpack.c.bf16 %v1227_v30, %v1226_v59  ;;  %v1422_v1 = vld [vmem:[#allocation2 + $0x32] sm:$0xff]  ;;  %5666 = vmatprep.subr.bf16.mxu1 %v6169_v49  ;;  %v1423_v30 = vld [vmem:[#allocation2 + $0x42] sm:$0xff] }
 0x9fa   :  { %v1428_v59 = vpack.c.bf16 %v1422_v1, %v1421_v57  ;;  %v1647_v6 = vld [vmem:[#allocation2 + $0x4] sm:$0xff] }
 0x9fb   :  { %5555 = vmatmul.mubr.msk.bf16.vlgmr.msra.gmra.mrb[36].mxu0 %vm146_vm0, %v1233_v7  ;;  %v1230_v16 = vld [vmem:[#allocation2 + $0x61] sm:$0xff]  ;;  %v6154_v7 = vld [vmem:[%s7910_s12 + $0x38] sm:$0xff]  }
 0x9fc   :  { %5563 = vmatpush3.bf16.msra.mxu0 %v7049_v2  ;;  %v1229_v32 = vld [vmem:[#allocation2 + $0x51] sm:$0xff]  ;;  %v1214_v29 = vld [vmem:[#allocation2 + $0x60] sm:$0xff]  ;;  %5667 = vmatpush3.bf16.msra.mxu1 %v6169_v49 }
 0x9fd   :  { %v1234_v42 = vpack.c.bf16 %v1229_v32, %v1228_v3  ;;  %5564 = vmatprep.subr.bf16.mxu0 %v6150_v36  ;;  %v1211_v2 = vld [vmem:[#allocation2 + $0x30] sm:$0xff]  ;;  %5668 = vmatprep.subr.bf16.mxu1 %v6170_v10  ;;  %v6155_v3 = vld [vmem:[%s7910_s12 + $0x40] sm:$0xff]  }
 0x9fe   :  { %v1213_v53 = vld [vmem:[#allocation2 + $0x50] sm:$0xff]  ;;  %v1217_v56 = vpack.c.bf16 %v1211_v2, %v1210_v9  ;;  %v1649_v61 = vld [vmem:[#allocation2 + $0x24] sm:$0xff] }
 0x9ff   :  { %5558 = vmatprep.mubr.msk.bf16.mxu0 %vm146_vm0, %v1234_v42  ;;  %v1231_v62 = vld [vmem:[#allocation2 + $0x71] sm:$0xff]  ;;  %v1218_v18 = vpack.c.bf16 %v1213_v53, %v1212_v26  ;;  %v1537_v53 = vld [vmem:[#allocation2 + $0x43] sm:$0xff] }
 0xa00   :  { %v1235_v40 = vpack.c.bf16 %v1231_v62, %v1230_v16  ;;  %5565 = vmatpush3.bf16.msra.mxu0 %v6150_v36  ;;  %v1215_v24 = vld [vmem:[#allocation2 + $0x70] sm:$0xff]  ;;  %5669 = vmatpush3.bf16.msra.mxu1 %v6170_v10  ;;  %v1533_v62 = vld [vmem:[#allocation2 + $0x3] sm:$0xff] }
 0xa01   :  { %5574 = vmatprep.subr.bf16.mxu0 %v6151_v8  ;;  %v1219_v17 = vpack.c.bf16 %v1215_v24, %v1214_v29  ;;  %v1424_v4 = vld [vmem:[#allocation2 + $0x52] sm:$0xff]  ;;  %v6159_v49 = vld [vmem:[%s7910_s12 + $0x60] sm:$0xff]  }
 0xa02   :  { %v1429_v36 = vpack.c.bf16 %v1424_v4, %v1423_v30  ;;  %v1426_v32 = vld [vmem:[#allocation2 + $0x72] sm:$0xff]  ;;  %v1653_v10 = vld [vmem:[#allocation2 + $0x64] sm:$0xff] }
 0xa03   :  { %5559 = vmatmul.mubr.msk.bf16.gmra.mrb[40].mxu0 %vm146_vm0, %v1235_v40  ;;  %v1534_v42 = vld [vmem:[#allocation2 + $0x13] sm:$0xff] }
 0xa04   :  { %5566 = vmatprep.mubr.msk.bf16.mxu0 %vm146_vm0, %v1216_v45  ;;  %v1541_v33 = vpack.c.bf16 %v1534_v42, %v1533_v62  ;;  %v1536_v40 = vld [vmem:[#allocation2 + $0x33] sm:$0xff]  ;;  %v1535_v45 = vld [vmem:[#allocation2 + $0x23] sm:$0xff] }
 0xa05   :  { %v1538_v44 = vld [vmem:[#allocation2 + $0x53] sm:$0xff]  ;;  %v1542_v2 = vpack.c.bf16 %v1536_v40, %v1535_v45  ;;  %v1765_v42 = vld [vmem:[#allocation2 + $0x45] sm:$0xff] }
 0xa06   :  { %v1543_v38 = vpack.c.bf16 %v1538_v44, %v1537_v53  ;;  %v6157_v9 = vld [vmem:[%s7910_s12 + $0x50] sm:$0xff]   ;;  %v1767_v44 = vld [vmem:[#allocation2 + $0x65] sm:$0xff] }
 0xa07   :  { %v1648_v26 = vld [vmem:[#allocation2 + $0x14] sm:$0xff] }
 0xa08   :  { %v1650_v24 = vld [vmem:[#allocation2 + $0x34] sm:$0xff] }
 0xa09   :  { %v1652_v52 = vld [vmem:[#allocation2 + $0x54] sm:$0xff]  ;;  %v1656_v29 = vpack.c.bf16 %v1650_v24, %v1649_v61 }
 0xa0a   :  { %v1654_v1 = vld [vmem:[#allocation2 + $0x74] sm:$0xff] }
 0xa0b   :  { %5567 = vmatmul.mubr.msk.bf16.vlgmr.msra.gmra.mrb[36].mxu0 %vm146_vm0, %v1217_v56  ;;  %v1540_v56 = vld [vmem:[#allocation2 + $0x73] sm:$0xff]  ;;  %v1658_v57 = vpack.c.bf16 %v1654_v1, %v1653_v10  ;;  %v6164_v10 = vld [vmem:[%s7910_s12 + $0x88] sm:$0xff]  }
 0xa0c   :  { %5570 = vmatprep.mubr.msk.bf16.mxu0 %vm146_vm0, %v1218_v18  ;;  %5575 = vmatpush3.bf16.msra.mxu0 %v6151_v8  ;;  %v1425_v8 = vld [vmem:[#allocation2 + $0x62] sm:$0xff]  ;;  %v1762_v4 = vld [vmem:[#allocation2 + $0x15] sm:$0xff] }
 0xa0d   :  { %5576 = vmatprep.subr.bf16.mxu0 %v6152_v48  ;;  %v1430_v16 = vpack.c.bf16 %v1426_v32, %v1425_v8  ;;  %v6160_v8 = vld [vmem:[%s7910_s12 + $0x68] sm:$0xff]   ;;  %v6161_v62 = vld [vmem:[%s7910_s12 + $0x70] sm:$0xff]  }
 0xa0e   :  { %v1876_v40 = vld [vmem:[#allocation2 + $0x16] sm:$0xff] }
 0xa0f   :  { %v1990_v24 = vld [vmem:[#allocation2 + $0x17] sm:$0xff] }
 0xa10   :  { %5577 = vmatpush3.bf16.msra.mxu0 %v6152_v48  ;;  %v1539_v48 = vld [vmem:[#allocation2 + $0x63] sm:$0xff] }
 0xa11   :  { %5586 = vmatprep.subr.bf16.mxu0 %v6153_v23  ;;  %v1544_v18 = vpack.c.bf16 %v1540_v56, %v1539_v48  ;;  %v6162_v48 = vld [vmem:[%s7910_s12 + $0x78] sm:$0xff]  }
 0xa13   :  { %5571 = vmatmul.mubr.msk.bf16.gmra.mrb[40].mxu0 %vm146_vm0, %v1219_v17  ;;  %v1651_v17 = vld [vmem:[#allocation2 + $0x44] sm:$0xff] }
 0xa14   :  { %5578 = vmatprep.mubr.msk.bf16.mxu0 %vm146_vm0, %v1427_v37  ;;  %v1657_v37 = vpack.c.bf16 %v1652_v52, %v1651_v17  ;;  %v1881_v52 = vld [vmem:[#allocation2 + $0x66] sm:$0xff] }
 0xa1b   :  { %5579 = vmatmul.mubr.msk.bf16.vlgmr.msra.gmra.mrb[36].mxu0 %vm146_vm0, %v1428_v59  ;;  %v1761_v59 = vld [vmem:[#allocation2 + $0x5] sm:$0xff] }
 0xa1c   :  { %5582 = vmatprep.mubr.msk.bf16.mxu0 %vm146_vm0, %v1429_v36  ;;  %5587 = vmatpush3.bf16.msra.mxu0 %v6153_v23  ;;  %v1655_v23 = vpack.c.bf16 %v1648_v26, %v1647_v6  ;;  %v1769_v30 = vpack.c.bf16 %v1762_v4, %v1761_v59  ;;  %v1766_v36 = vld [vmem:[#allocation2 + $0x55] sm:$0xff]  ;;  %v1879_v26 = vld [vmem:[#allocation2 + $0x46] sm:$0xff] }
 0xa1d   :  { %5588 = vmatprep.subr.bf16.mxu0 %v6154_v7  ;;  %v6163_v6 = vld [vmem:[%s7910_s12 + $0x80] sm:$0xff]   ;;  %v1996_v59 = vld [vmem:[#allocation2 + $0x77] sm:$0xff] }
 0xa1e   :  { %v1993_v4 = vld [vmem:[#allocation2 + $0x47] sm:$0xff] }
 0xa20   :  { %5589 = vmatpush3.bf16.msra.mxu0 %v6154_v7  ;;  %v1764_v7 = vld [vmem:[#allocation2 + $0x35] sm:$0xff] }
 0xa21   :  { %5598 = vmatprep.subr.bf16.mxu0 %v6155_v3 }
 0xa23   :  { %5583 = vmatmul.mubr.msk.bf16.gmra.mrb[40].mxu0 %vm146_vm0, %v1430_v16  ;;  %v1771_v16 = vpack.c.bf16 %v1766_v36, %v1765_v42  ;;  %v2106_v42 = vld [vmem:[#allocation2 + $0x38] sm:$0xff] }
 0xa24   :  { %5590 = vmatprep.mubr.msk.bf16.mxu0 %vm146_vm0, %v1541_v33  ;;  %v1768_v33 = vld [vmem:[#allocation2 + $0x75] sm:$0xff] }
 0xa25   :  { %v1772_v45 = vpack.c.bf16 %v1768_v33, %v1767_v44  ;;  %v2107_v33 = vld [vmem:[#allocation2 + $0x48] sm:$0xff]  ;;  %v2110_v44 = vld [vmem:[#allocation2 + $0x78] sm:$0xff] }
 0xa2b   :  { %5591 = vmatmul.mubr.msk.bf16.vlgmr.msra.gmra.mrb[36].mxu0 %vm146_vm0, %v1542_v2  ;;  %v1875_v2 = vld [vmem:[#allocation2 + $0x6] sm:$0xff] }
 0xa2c   :  { %5594 = vmatprep.mubr.msk.bf16.mxu0 %vm146_vm0, %v1543_v38  ;;  %5599 = vmatpush3.bf16.msra.mxu0 %v6155_v3  ;;  %v1763_v3 = vld [vmem:[#allocation2 + $0x25] sm:$0xff]  ;;  %v1883_v53 = vpack.c.bf16 %v1876_v40, %v1875_v2  ;;  %v1880_v38 = vld [vmem:[#allocation2 + $0x56] sm:$0xff] }
 0xa2d   :  { %5600 = vmatprep.subr.bf16.mxu0 %v6156_v54  ;;  %v1770_v32 = vpack.c.bf16 %v1764_v7, %v1763_v3  ;;  %v1995_v7 = vld [vmem:[#allocation2 + $0x67] sm:$0xff] }
 0xa2e   :  { %v2000_v36 = vpack.c.bf16 %v1996_v59, %v1995_v7  ;;  %v2103_v3 = vld [vmem:[#allocation2 + $0x8] sm:$0xff] }
 0xa30   :  { %5601 = vmatpush3.bf16.msra.mxu0 %v6156_v54  ;;  %v1878_v54 = vld [vmem:[#allocation2 + $0x36] sm:$0xff] }
 0xa31   :  { %5610 = vmatprep.subr.bf16.mxu0 %v6157_v9 }
 0xa33   :  { %5595 = vmatmul.mubr.msk.bf16.gmra.mrb[40].mxu0 %vm146_vm0, %v1544_v18  ;;  %v1885_v18 = vpack.c.bf16 %v1880_v38, %v1879_v26  ;;  %v5054_v38 = vld [vmem:[%s7911_s13] ss:$0 sm:$0xff] }
 0xa34   :  { %5602 = vmatprep.mubr.msk.bf16.mxu0 %vm146_vm0, %v1655_v23  ;;  %v1882_v23 = vld [vmem:[#allocation2 + $0x76] sm:$0xff] }
 0xa35   :  { %v1886_v61 = vpack.c.bf16 %v1882_v23, %v1881_v52 }
 0xa3b   :  { %5603 = vmatmul.mubr.msk.bf16.vlgmr.msra.gmra.mrb[36].mxu0 %vm146_vm0, %v1656_v29  ;;  %v1989_v29 = vld [vmem:[#allocation2 + $0x7] sm:$0xff] }
 0xa3c   :  { %5606 = vmatprep.mubr.msk.bf16.mxu0 %vm146_vm0, %v1657_v37  ;;  %5611 = vmatpush3.bf16.msra.mxu0 %v6157_v9  ;;  %v1877_v9 = vld [vmem:[#allocation2 + $0x26] sm:$0xff]  ;;  %v1997_v17 = vpack.c.bf16 %v1990_v24, %v1989_v29  ;;  %v1994_v37 = vld [vmem:[#allocation2 + $0x57] sm:$0xff] }
 0xa3d   :  { %5612 = vmatprep.subr.bf16.mxu0 %v6158_v28  ;;  %v1884_v56 = vpack.c.bf16 %v1878_v54, %v1877_v9  ;;  %v6172_v54 = vld [vmem:[%s7912_s14 + $0x38] sm:$0xff]  }
 0xa40   :  { %5613 = vmatpush3.bf16.msra.mxu0 %v6158_v28  ;;  %v1992_v28 = vld [vmem:[#allocation2 + $0x37] sm:$0xff] }
 0xa41   :  { %5622 = vmatprep.subr.bf16.mxu0 %v6159_v49 }
 0xa43   :  { %5607 = vmatmul.mubr.msk.bf16.gmra.mrb[40].mxu0 %vm146_vm0, %v1658_v57  ;;  %v1999_v57 = vpack.c.bf16 %v1994_v37, %v1993_v4 }
 0xa44   :  { %5614 = vmatprep.mubr.msk.bf16.mxu0 %vm146_vm0, %v1769_v30  ;;  %v2104_v30 = vld [vmem:[#allocation2 + $0x18] sm:$0xff] }
 0xa4b   :  { %5615 = vmatmul.mubr.msk.bf16.vlgmr.msra.gmra.mrb[36].mxu0 %vm146_vm0, %v1770_v32  ;;  %v2111_v32 = vpack.c.bf16 %v2104_v30, %v2103_v3 }
 0xa4c   :  { %5618 = vmatprep.mubr.msk.bf16.mxu0 %vm146_vm0, %v1771_v16  ;;  %5623 = vmatpush3.bf16.msra.mxu0 %v6159_v49  ;;  %v1991_v49 = vld [vmem:[#allocation2 + $0x27] sm:$0xff] }
 0xa4d   :  { %5624 = vmatprep.subr.bf16.mxu0 %v6160_v8  ;;  %v1998_v1 = vpack.c.bf16 %v1992_v28, %v1991_v49  ;;  %v2105_v16 = vld [vmem:[#allocation2 + $0x28] sm:$0xff] }
 0xa50   :  { %5625 = vmatpush3.bf16.msra.mxu0 %v6160_v8  ;;  %v2108_v8 = vld [vmem:[#allocation2 + $0x58] sm:$0xff] }
 0xa51   :  { %5634 = vmatprep.subr.bf16.mxu0 %v6161_v62  ;;  %v2113_v40 = vpack.c.bf16 %v2108_v8, %v2107_v33 }
 0xa53   :  { %5619 = vmatmul.mubr.msk.bf16.gmra.mrb[40].mxu0 %vm146_vm0, %v1772_v45  ;;  %v2109_v45 = vld [vmem:[#allocation2 + $0x68] sm:$0xff] }
 0xa54   :  { %5626 = vmatprep.mubr.msk.bf16.mxu0 %vm146_vm0, %v1883_v53  ;;  %v2114_v2 = vpack.c.bf16 %v2110_v44, %v2109_v45  ;;  %v6171_v53 = vld [vmem:[%s7912_s14 + $0x30] sm:$0xff]  }
 0xa55   :  { %5670 = vmatprep.subr.bf16.mxu1 %v6171_v53 }
 0xa56   :  { %5671 = vmatpush3.bf16.msra.mxu1 %v6171_v53 }
 0xa57   :  { %5672 = vmatprep.subr.bf16.mxu1 %v6172_v54 }
 0xa5a   :  { %5673 = vmatpush3.bf16.msra.mxu1 %v6172_v54 }
 0xa5b   :  { %5627 = vmatmul.mubr.msk.bf16.vlgmr.msra.gmra.mrb[36].mxu0 %vm146_vm0, %v1884_v56 }
 0xa5c   :  { %5630 = vmatprep.mubr.msk.bf16.mxu0 %vm146_vm0, %v1885_v18  ;;  %5635 = vmatpush3.bf16.msra.mxu0 %v6161_v62  ;;  %v2112_v62 = vpack.c.bf16 %v2106_v42, %v2105_v16 }
 0xa5d   :  { %5636 = vmatprep.subr.bf16.mxu0 %v6162_v48 }
 0xa60   :  { %5637 = vmatpush3.bf16.msra.mxu0 %v6162_v48 }
 0xa61   :  { %5646 = vmatprep.subr.bf16.mxu0 %v6163_v6 }
 0xa63   :  { %5631 = vmatmul.mubr.msk.bf16.gmra.mrb[40].mxu0 %vm146_vm0, %v1886_v61 }
 0xa64   :  { %5638 = vmatprep.mubr.msk.bf16.mxu0 %vm146_vm0, %v1997_v17 }
 0xa6b   :  { %5639 = vmatmul.mubr.msk.bf16.vlgmr.msra.gmra.mrb[36].mxu0 %vm146_vm0, %v1998_v1 }
 0xa6c   :  { %5642 = vmatprep.mubr.msk.bf16.mxu0 %vm146_vm0, %v1999_v57  ;;  %5647 = vmatpush3.bf16.msra.mxu0 %v6163_v6 }
 0xa6d   :  { %5648 = vmatprep.subr.bf16.mxu0 %v6164_v10 }
 0xa70   :  { %5649 = vmatpush3.bf16.msra.mxu0 %v6164_v10 }
 0xa73   :  { %5643 = vmatmul.mubr.msk.bf16.gmra.mrb[40].mxu0 %vm146_vm0, %v2000_v36 }
 0xa74   :  { %5650 = vmatprep.mubr.msk.bf16.mxu0 %vm146_vm0, %v2111_v32 }
 0xa7b   :  { %5651 = vmatmul.mubr.msk.bf16.vlgmr.msra.gmra.mrb[36].mxu0 %vm146_vm0, %v2112_v62  ;;  %v5055_v62 = vld [vmem:[%s7913_s15] ss:$0 sm:$0xff] }
 0xa7c   :  { %5654 = vmatprep.mubr.msk.bf16.mxu0 %vm146_vm0, %v2113_v40 }
 0xa83   :  { %5655 = vmatmul.mubr.msk.bf16.gmra.mrb[40].mxu0 %vm146_vm0, %v2114_v2 }
 0xb4e   :  { %v5652_v9 = vpop.f32.mrb[36].mxu0 }
 0xb4f   :  { %v2224_v56 = vadd.f32 %v5652_v9, %v5054_v38  ;;  %v2178_v26 = vpop.f32.mrb[37].mxu0 }
 0xb50   :  { %v2222_v48 = vadd.f32 %v5054_v38, %v2178_v26  ;;  %v5653_v18 = vpop.f32.mrb[38].mxu0 }
 0xb51   :  { %v2225_v6 = vadd.f32 %v5653_v18, %v5054_v38  ;;  %v2181_v23 = vpop.f32.mrb[39].mxu0  ;;  %v2232_v52 = vmax.f32 %v2224_v56, 0.0 }
 0xb52   :  { %v2223_v24 = vadd.f32 %v5054_v38, %v2181_v23  ;;  %v2230_v29 = vmax.f32 %v2222_v48, 0.0 }
 0xb53   :  { %v2233_v61 = vmax.f32 %v2225_v6, 0.0 }
 0xb54   :  { %v2231_v17 = vmax.f32 %v2223_v24, 0.0 }
 0xb55   :  { %v2239_v28 = vpack.c.bf16 %v2233_v61, %v2232_v52 }
 0xb56   :  { %v2238_v37 = vpack.c.bf16 %v2231_v17, %v2230_v29  ;;  %v5656_v49 = vpop.f32.mrb[40].mxu0 }
 0xb57   :  { %v2228_v1 = vadd.f32 %v5656_v49, %v5054_v38  ;;  %v2194_v4 = vpop.f32.mrb[41].mxu0 }
 0xb58   :  { %v2226_v10 = vadd.f32 %v5054_v38, %v2194_v4  ;;  %v5657_v57 = vpop.f32.mrb[42].mxu0  ;;  %5674 = vmatprep.mubr.bf16.mxu1 %v2238_v37 }
 0xb59   :  { %v2229_v59 = vadd.f32 %v5657_v57, %v5054_v38  ;;  %v2197_v30 = vpop.f32.mrb[43].mxu0  ;;  %5675 = vmatmul.mubr.bf16.vlgmr.msra.gmra.mrb[12].mxu1 %v2239_v28  ;;  %v2236_v36 = vmax.f32 %v2228_v1, 0.0 }
 0xb5a   :  { %v2227_v7 = vadd.f32 %v5054_v38, %v2197_v30  ;;  %v2234_v32 = vmax.f32 %v2226_v10, 0.0 }
 0xb5b   :  { %v2237_v3 = vmax.f32 %v2229_v59, 0.0 }
 0xb5c   :  { %v2235_v42 = vmax.f32 %v2227_v7, 0.0 }
 0xb5d   :  { %v2241_v8 = vpack.c.bf16 %v2237_v3, %v2236_v36 }
 0xb5e   :  { %v2240_v16 = vpack.c.bf16 %v2235_v42, %v2234_v32 }
 0xb60   :  { %5678 = vmatprep.mubr.bf16.mxu1 %v2240_v16 }
 0xb61   :  { %5679 = vmatmul.mubr.bf16.gmra.mrb[16].mxu1 %v2241_v8 }
 0xc2c   :  { %v5676_v33 = vpop.f32.mrb[12].mxu1 }
 0xc2d   :  { %v2345_v40 = vpop.f32.mrb[13].mxu1  ;;  %v2354_v44 = vadd.f32 %v5676_v33, %v5055_v62 }
 0xc2e   :  { %v2346_v45 = vadd.f32 %v5055_v62, %v2345_v40  ;;  %v5677_v2 = vpop.f32.mrb[14].mxu1 }
 0xc2f   :  { %v2348_v53 = vpop.f32.mrb[15].mxu1  ;;  %v2357_v54 = vadd.f32 %v5677_v2, %v5055_v62  ;;  %v2378_v48 = vadd.f32 %v2354_v44, %v7074_v51 }
 0xc30   :  { %v2349_v38 = vadd.f32 %v5055_v62, %v2348_v53  ;;  %v2376_v9 = vadd.f32 %v2346_v45, %v7062_v41 }
 0xc31   :  { %v2379_v23 = vadd.f32 %v2357_v54, %v7084_v15  ;;  %v2392_v17 = vsel %vm146_vm0, %v2378_v48, 0.0 }
 0xc32   :  { %v2386_v56 = vsel %vm146_vm0, %v2376_v9, 0.0  ;;  %v2377_v26 = vadd.f32 %v2349_v38, %v7067_v63 }
 0xc33   :  { %2387 = vadd.xlane.f32.xlu1 %v2386_v56  ;;  %v2395_v63 = vsel %vm146_vm0, %v2379_v23, 0.0 }
 0xc34   :  { %v5680_v18 = vpop.f32.mrb[16].mxu1  ;;  %v2389_v6 = vsel %vm146_vm0, %v2377_v26, 0.0 }
 0xc35   :  { %2390 = vadd.xlane.f32.xlu0 %v2389_v6  ;;  %v2361_v24 = vpop.f32.mrb[17].mxu1  ;;  %v2370_v52 = vadd.f32 %v5680_v18, %v5055_v62 }
 0xc36   :  { %v2362_v61 = vadd.f32 %v5055_v62, %v2361_v24  ;;  %v5681_v29 = vpop.f32.mrb[18].mxu1 }
 0xc37   :  { %2393 = vadd.xlane.f32.xlu1 %v2392_v17  ;;  %v2364_v41 = vpop.f32.mrb[19].mxu1  ;;  %v2373_v28 = vadd.f32 %v5681_v29, %v5055_v62  ;;  %v2382_v1 = vadd.f32 %v2370_v52, %v7092_v58 }
 0xc38   :  { %v2365_v37 = vadd.f32 %v5055_v62, %v2364_v41  ;;  %v2380_v51 = vadd.f32 %v2362_v61, %v7081_v14 }
 0xc39   :  { %2396 = vadd.xlane.f32.xlu0 %v2395_v63  ;;  %v2383_v10 = vadd.f32 %v2373_v28, %v7103_v31  ;;  %v2404_v57 = vsel %vm146_vm0, %v2382_v1, 0.0 }
 0xc3a   :  { %v2398_v49 = vsel %vm146_vm0, %v2380_v51, 0.0  ;;  %v2381_v15 = vadd.f32 %v2365_v37, %v7095_v55 }
 0xc3b   :  { %2399 = vadd.xlane.f32.xlu1 %v2398_v49  ;;  %v2407_v59 = vsel %vm146_vm0, %v2383_v10, 0.0 }
 0xc3c   :  { %v2401_v4 = vsel %vm146_vm0, %v2381_v15, 0.0 }
 0xc3d   :  { %2402 = vadd.xlane.f32.xlu0 %v2401_v4  ;;  %v6174_v4 = vld [vmem:[%s7904_s6 + $0x18] sm:$0xff]  }
 0xc3f   :  { %2405 = vadd.xlane.f32.xlu1 %v2404_v57 }
 0xc41   :  { %2408 = vadd.xlane.f32.xlu0 %v2407_v59 }
 0xcc0   :  { %v2388_v14 = vpop.xlane.xlu1 %2387 }
 0xcc1   :  { %v2410_v30 = vmul.f32 0.03125, %v2388_v14 }
 0xcc2   :  { %v2391_v7 = vpop.xlane.xlu0 %2390 }
 0xcc3   :  { %v7234_v36 = vsub.f32 %v2376_v9, %v2410_v30  ;;  %v2411_v55 = vmul.f32 0.03125, %v2391_v7 }
 0xcc4   :  { %v2394_v3 = vpop.xlane.xlu1 %2393 }
 0xcc5   :  { %v7236_v58 = vsub.f32 %v2377_v26, %v2411_v55  ;;  %v2412_v32 = vmul.f32 0.03125, %v2394_v3  ;;  %v2426_v31 = vmul.f32 %v7234_v36, %v7234_v36 }
 0xcc6   :  { %v2397_v42 = vpop.xlane.xlu0 %2396 }
 0xcc7   :  { %v7240_v8 = vsub.f32 %v2378_v48, %v2412_v32  ;;  %v2413_v16 = vmul.f32 0.03125, %v2397_v42  ;;  %v2434_v62 = vsel %vm146_vm0, %v2426_v31, 0.0  ;;  %v2427_v33 = vmul.f32 %v7236_v58, %v7236_v58 }
 0xcc8   :  { %2435 = vadd.xlane.f32.xlu1 %v2434_v62  ;;  %v2400_v40 = vpop.xlane.xlu1 %2399 }
 0xcc9   :  { %v7245_v44 = vsub.f32 %v2379_v23, %v2413_v16  ;;  %v2414_v45 = vmul.f32 0.03125, %v2400_v40  ;;  %v2437_v2 = vsel %vm146_vm0, %v2427_v33, 0.0  ;;  %v2428_v53 = vmul.f32 %v7240_v8, %v7240_v8 }
 0xcca   :  { %2438 = vadd.xlane.f32.xlu0 %v2437_v2  ;;  %v2403_v54 = vpop.xlane.xlu0 %2402 }
 0xccb   :  { %v7250_v38 = vsub.f32 %v2380_v51, %v2414_v45  ;;  %v2415_v9 = vmul.f32 0.03125, %v2403_v54  ;;  %v2440_v56 = vsel %vm146_vm0, %v2428_v53, 0.0  ;;  %v2429_v26 = vmul.f32 %v7245_v44, %v7245_v44 }
 0xccc   :  { %2441 = vadd.xlane.f32.xlu1 %v2440_v56  ;;  %v2406_v48 = vpop.xlane.xlu1 %2405 }
 0xccd   :  { %v7255_v18 = vsub.f32 %v2381_v15, %v2415_v9  ;;  %v2416_v6 = vmul.f32 0.03125, %v2406_v48  ;;  %v2443_v23 = vsel %vm146_vm0, %v2429_v26, 0.0  ;;  %v2430_v24 = vmul.f32 %v7250_v38, %v7250_v38  ;;  %v5064_v48 = vld [vmem:[%s7914_s16] ss:$0 sm:$0xff] }
 0xcce   :  { %2444 = vadd.xlane.f32.xlu0 %v2443_v23  ;;  %v2409_v52 = vpop.xlane.xlu0 %2408 }
 0xccf   :  { %v7260_v61 = vsub.f32 %v2382_v1, %v2416_v6  ;;  %v2417_v29 = vmul.f32 0.03125, %v2409_v52  ;;  %v2446_v17 = vsel %vm146_vm0, %v2430_v24, 0.0  ;;  %v2431_v41 = vmul.f32 %v7255_v18, %v7255_v18  ;;  %v6173_v1 = vld [vmem:[%s7904_s6 + $0x10] sm:$0xff]  }
 0xcd0   :  { %2447 = vadd.xlane.f32.xlu1 %v2446_v17  ;;  %5682 = vmatprep.subr.bf16.mxu1 %v6173_v1 }
 0xcd1   :  { %v7265_v28 = vsub.f32 %v2383_v10, %v2417_v29  ;;  %v2449_v37 = vsel %vm146_vm0, %v2431_v41, 0.0  ;;  %v2432_v63 = vmul.f32 %v7260_v61, %v7260_v61  ;;  %5683 = vmatpush3.bf16.msra.mxu1 %v6173_v1  ;;  %v5065_v29 = vld [vmem:[%s7915_s17] ss:$0 sm:$0xff] }
 0xcd2   :  { %2450 = vadd.xlane.f32.xlu0 %v2449_v37  ;;  %5684 = vmatprep.subr.bf16.mxu1 %v6174_v4 }
 0xcd3   :  { %v2452_v51 = vsel %vm146_vm0, %v2432_v63, 0.0  ;;  %v2433_v49 = vmul.f32 %v7265_v28, %v7265_v28 }
 0xcd4   :  { %2453 = vadd.xlane.f32.xlu1 %v2452_v51 }
 0xcd5   :  { %v2455_v15 = vsel %vm146_vm0, %v2433_v49, 0.0  ;;  %5685 = vmatpush3.bf16.msra.mxu1 %v6174_v4 }
 0xcd6   :  { %2456 = vadd.xlane.f32.xlu0 %v2455_v15 }
 0xd55   :  { %v2436_v10 = vpop.xlane.xlu1 %2435 }
 0xd56   :  { %v2458_v57 = vmul.f32 0.03125, %v2436_v10 }
 0xd57   :  { %v2439_v59 = vpop.xlane.xlu0 %2438 }
 0xd58   :  { %v2466_v14 = vadd.f32 1e-05, %v2458_v57  ;;  %v2459_v30 = vmul.f32 0.03125, %v2439_v59 }
 0xd59   :  { %v2442_v7 = vpop.xlane.xlu1 %2441 }
 0xd5a   :  { %6283 = vrsqrt.f32 %v2466_v14  ;;  %v2467_v55 = vadd.f32 1e-05, %v2459_v30  ;;  %v2460_v3 = vmul.f32 0.03125, %v2442_v7 }
 0xd5b   :  { %v2445_v32 = vpop.xlane.xlu0 %2444 }
 0xd5c   :  { %6285 = vrsqrt.f32 %v2467_v55  ;;  %v2468_v31 = vadd.f32 1e-05, %v2460_v3  ;;  %v2461_v42 = vmul.f32 0.03125, %v2445_v32 }
 0xd5d   :  { %v2448_v16 = vpop.xlane.xlu1 %2447 }
 0xd5e   :  { %6287 = vrsqrt.f32 %v2468_v31  ;;  %v2469_v62 = vadd.f32 1e-05, %v2461_v42  ;;  %v2462_v33 = vmul.f32 0.03125, %v2448_v16 }
 0xd5f   :  { %v2451_v40 = vpop.xlane.xlu0 %2450 }
 0xd60   :  { %6289 = vrsqrt.f32 %v2469_v62  ;;  %v2470_v45 = vadd.f32 1e-05, %v2462_v33  ;;  %v2463_v2 = vmul.f32 0.03125, %v2451_v40 }
 0xd61   :  { %v2454_v53 = vpop.xlane.xlu1 %2453 }
 0xd62   :  { %6291 = vrsqrt.f32 %v2470_v45  ;;  %v2471_v54 = vadd.f32 1e-05, %v2463_v2  ;;  %v2464_v9 = vmul.f32 0.03125, %v2454_v53 }
 0xd63   :  { %v2457_v56 = vpop.xlane.xlu0 %2456 }
 0xd64   :  { %v6284_v26 = vpop.eup %6283  ;;  %6293 = vrsqrt.f32 %v2471_v54  ;;  %v2472_v6 = vadd.f32 1e-05, %v2464_v9  ;;  %v2465_v23 = vmul.f32 0.03125, %v2457_v56 }
 0xd65   :  { %v2482_v24 = vmul.f32 %v6284_v26, %v7234_v36 }
 0xd66   :  { %v6286_v52 = vpop.eup %6285  ;;  %6295 = vrsqrt.f32 %v2472_v6  ;;  %v2473_v17 = vadd.f32 1e-05, %v2465_v23 }
 0xd67   :  { %v2483_v41 = vmul.f32 %v6286_v52, %v7236_v58  ;;  %v2494_v37 = vmul.f32 %v5064_v48, %v2482_v24 }
 0xd68   :  { %v6288_v63 = vpop.eup %6287  ;;  %6297 = vrsqrt.f32 %v2473_v17 }
 0xd69   :  { %v2484_v51 = vmul.f32 %v6288_v63, %v7240_v8  ;;  %v2495_v49 = vmul.f32 %v5064_v48, %v2483_v41  ;;  %v2506_v15 = vadd.f32 %v5065_v29, %v2494_v37 }
 0xd6a   :  { %v6290_v1 = vpop.eup %6289 }
 0xd6b   :  { %v2496_v4 = vmul.f32 %v5064_v48, %v2484_v51  ;;  %v2485_v36 = vmul.f32 %v6290_v1, %v7245_v44  ;;  %v2507_v10 = vadd.f32 %v5065_v29, %v2495_v49  ;;  %v7291_v59 = vmul.f32 %v2506_v15, %v6574_v13 }
 0xd6c   :  { %v6292_v57 = vpop.eup %6291 }
 0xd6d   :  { %v2508_v14 = vadd.f32 %v5065_v29, %v2496_v4  ;;  %v2497_v30 = vmul.f32 %v5064_v48, %v2485_v36  ;;  %v2486_v58 = vmul.f32 %v6292_v57, %v7250_v38  ;;  %v7295_v7 = vmul.f32 %v2507_v10, %v6595_v22 }
 0xd6e   :  { %v6294_v55 = vpop.eup %6293 }
 0xd6f   :  { %v2509_v8 = vadd.f32 %v5065_v29, %v2497_v30  ;;  %v2487_v3 = vmul.f32 %v6294_v55, %v7255_v18  ;;  %v2522_v32 = vpack.c.bf16 %v7295_v7, %v7291_v59  ;;  %v2498_v31 = vmul.f32 %v5064_v48, %v2486_v58 }
 0xd70   :  { %v6296_v44 = vpop.eup %6295  ;;  %v7301_v42 = vmul.f32 %v2508_v14, %v6572_v12 }
 0xd71   :  { %v7304_v16 = vmul.f32 %v2509_v8, %v6593_v21  ;;  %v2488_v38 = vmul.f32 %v6296_v44, %v7260_v61  ;;  %5686 = vmatprep.mubr.msk.bf16.mxu1 %vm146_vm0, %v2522_v32  ;;  %v2499_v62 = vmul.f32 %v5064_v48, %v2487_v3  ;;  %v2510_v40 = vadd.f32 %v5065_v29, %v2498_v31 }
 0xd72   :  { %v6298_v33 = vpop.eup %6297 }
 0xd73   :  { %v2489_v18 = vmul.f32 %v6298_v33, %v7265_v28  ;;  %v2523_v45 = vpack.c.bf16 %v7304_v16, %v7301_v42  ;;  %v2511_v2 = vadd.f32 %v5065_v29, %v2499_v62  ;;  %v2500_v53 = vmul.f32 %v5064_v48, %v2488_v38 }
 0xd74   :  { %v7313_v54 = vmul.f32 %v2510_v40, %v6624_v35 }
 0xd75   :  { %5687 = vmatmul.mubr.msk.bf16.vlgmr.msra.gmra.mrb[20].mxu1 %vm146_vm0, %v2523_v45  ;;  %v7316_v9 = vmul.f32 %v2511_v2, %v6622_v34  ;;  %v2501_v61 = vmul.f32 %v5064_v48, %v2489_v18  ;;  %v2512_v56 = vadd.f32 %v5065_v29, %v2500_v53  ;;  %v5070_v48 = vld [vmem:[%s7905_s7 + $0x1] ss:$0 sm:$0xff]  ;;  %s6431_s7 = smov [#allocation4]  }
 0xd77   :  { %v2524_v26 = vpack.c.bf16 %v7316_v9, %v7313_v54  ;;  %v2513_v6 = vadd.f32 %v5065_v29, %v2501_v61  ;;  %v7322_v28 = vmul.f32 %v2512_v56, %v6652_v47 }
 0xd79   :  { %5690 = vmatprep.mubr.msk.bf16.mxu1 %vm146_vm0, %v2524_v26  ;;  %v7325_v23 = vmul.f32 %v2513_v6, %v6649_v46 }
 0xd7b   :  { %v2525_v24 = vpack.c.bf16 %v7325_v23, %v7322_v28 }
 0xd7d   :  { %5691 = vmatmul.mubr.msk.bf16.gmra.mrb[24].mxu1 %vm146_vm0, %v2525_v24 }
 0xe48   :  { %v5688_v52 = vpop.f32.mrb[20].mxu1 }
 0xe49   :  { %v2594_v17 = vpop.f32.mrb[21].mxu1  ;;  %v2603_v41 = vadd.f32 %v5688_v52, %v5070_v48 }
 0xe4a   :  { %v5689_v29 = vpop.f32.mrb[22].mxu1  ;;  %v2595_v51 = vadd.f32 %v5070_v48, %v2594_v17 }
 0xe4b   :  { %v2606_v37 = vadd.f32 %v5689_v29, %v5070_v48  ;;  %v2597_v63 = vpop.f32.mrb[23].mxu1 }
 0xe4c   :  { %v2598_v49 = vadd.f32 %v5070_v48, %v2597_v63 }
 0xe4d   :  { %v7333_v15 = vpack.c.bf16 %v2606_v37, %v2603_v41 }
 0xe4e   :  { %v7335_v1 = vpack.c.bf16 %v2598_v49, %v2595_v51 }
 0xe4f   :  { %2635 = vrot.lane.b32.xlu0 %v7333_v15, %s6421_s30 }
 0xe50   :  { %2633 = vrot.lane.b32.xlu1 %v7335_v1, %s6421_s30  ;;  %v5692_v4 = vpop.f32.mrb[24].mxu1  ;;  %5702 = vmatprep.mubr.msk.bf16.mxu1 %vm353_vm1, %v7335_v1 }
 0xe51   :  { %v2610_v36 = vpop.f32.mrb[25].mxu1  ;;  %v2619_v57 = vadd.f32 %v5692_v4, %v5070_v48 }
 0xe52   :  { %v5693_v10 = vpop.f32.mrb[26].mxu1  ;;  %v2611_v58 = vadd.f32 %v5070_v48, %v2610_v36 }
 0xe53   :  { %v2622_v14 = vadd.f32 %v5693_v10, %v5070_v48  ;;  %v2613_v30 = vpop.f32.mrb[27].mxu1 }
 0xe54   :  { %v2614_v55 = vadd.f32 %v5070_v48, %v2613_v30 }
 0xe55   :  { %v7343_v8 = vpack.c.bf16 %v2622_v14, %v2619_v57 }
 0xe56   :  { %v7345_v3 = vpack.c.bf16 %v2614_v55, %v2611_v58 }
 0xe58   :  { %2637 = vrot.lane.b32.xlu1 %v7345_v3, %s6421_s30 }
 0xe5c   :  { %2639 = vrot.lane.b32.xlu1 %v7343_v8, %s6421_s30  ;;  %s4927_s30 = sshll.u32 %s6431_s7, 4  ;;  %s4928_s30 = int_to_ptr.vmem [resolvable:$true] %s4927_s30 }
 0xe5d   :  { %p6401_p1 = scmp.lt.s32.totalorder %s4928_s30, %s4928_s30 }
 0xec1   :  { %v2636_v31 = vpop.permute.xlu0 %2635 }
 0xec2   :  { %v2634_v32 = vpop.permute.xlu1 %2633  ;;  %v2657_v38 = vsel %vm353_vm1, %v2636_v31, 0 }
 0xec3   :  { %v2654_v44 = vsel %vm353_vm1, %v2634_v32, 0  ;;  %6081 = vmatprep.subr.msk.bf16.mxu1 %vm353_vm1, %v2634_v32 }
 0xec4   :  { %5695 = vmatpush3.bf16.xpose.msra.mxu1 %v2654_v44 }
 0xec5   :  { %6082 = vmatprep.subr.msk.bf16.mxu1 %vm353_vm1, %v2636_v31 }
 0xeca   :  { %v2638_v62 = vpop.permute.xlu1 %2637 }
 0xecb   :  { %v2660_v33 = vsel %vm353_vm1, %v2638_v62, 0 }
 0xecc   :  { %5697 = vmatpush3.bf16.xpose.msra.mxu1 %v2657_v38 }
 0xecd   :  { %6083 = vmatprep.subr.msk.bf16.mxu1 %vm353_vm1, %v2638_v62 }
 0xece   :  { %v2640_v40 = vpop.permute.xlu1 %2639 }
 0xecf   :  { %v2663_v18 = vsel %vm353_vm1, %v2640_v40, 0 }
 0xed4   :  { %5699 = vmatpush3.bf16.xpose.msra.mxu1 %v2660_v33 }
 0xed5   :  { %6084 = vmatprep.subr.msk.bf16.mxu1 %vm353_vm1, %v2640_v40 }
 0xedc   :  { %5701 = vmatpush3.bf16.xpose.msra.mxu1 %v2663_v18 }
 0xee3   :  { %5703 = vmatmul.mubr.msk.bf16.vlgmr.msra.gmra.mrb[28].mxu1 %vm353_vm1, %v7333_v15 }
 0xee4   :  { %5706 = vmatprep.mubr.msk.bf16.mxu1 %vm353_vm1, %v7345_v3 }
 0xeeb   :  { %5707 = vmatmul.mubr.msk.bf16.gmra.mrb[32].mxu1 %vm353_vm1, %v7343_v8 }
 0xfb6   :  { %v5704_v45 = vpop.f32.mrb[28].mxu1 }
 0xfb7   :  { %v2708_v2 = vadd.f32 %v5704_v45, %v6746_v60  ;;  %v2699_v53 = vpop.f32.mrb[29].mxu1 }
 0xfb8   :  { %v5705_v61 = vpop.f32.mrb[30].mxu1  ;;  %v2700_v56 = vadd.f32 %v2699_v53, %v6749_v0 }
 0xfb9   :  { %v2702_v26 = vpop.f32.mrb[31].mxu1  ;;  %v2736_v6 = vsel %vm443_vm11, %v2708_v2, -inf  ;;  %v2711_v48 = vadd.f32 %v5705_v61, %v6758_v11 }
 0xfba   :  { %v2703_v24 = vadd.f32 %v2702_v26, %v6751_v5  ;;  %2737 = vmax.xlane.f32.xlu0 %v2736_v6  ;;  %v2730_v17 = vsel %vm443_vm11, %v2700_v56, -inf }
 0xfbb   :  { %v2739_v36 = vsel %vm443_vm11, %v2711_v48, -inf }
 0xfbc   :  { %v2733_v52 = vsel %vm443_vm11, %v2703_v24, -inf }
 0xfbd   :  { %2734 = vmax.xlane.f32.xlu1 %v2733_v52 }
 0xfbe   :  { %v5708_v29 = vpop.f32.mrb[32].mxu1  ;;  %2731 = vmax.xlane.f32.xlu0 %v2730_v17 }
 0xfbf   :  { %v2724_v41 = vadd.f32 %v5708_v29, %v6765_v19  ;;  %v2715_v37 = vpop.f32.mrb[33].mxu1 }
 0xfc0   :  { %v5709_v63 = vpop.f32.mrb[34].mxu1  ;;  %v2716_v51 = vadd.f32 %v2715_v37, %v6768_v25 }
 0xfc1   :  { %v2718_v49 = vpop.f32.mrb[35].mxu1  ;;  %v2748_v4 = vsel %vm443_vm11, %v2724_v41, -inf  ;;  %v2727_v14 = vadd.f32 %v5709_v63, %v6779_v39 }
 0xfc2   :  { %v7377_v10 = vadd.f32 %v2718_v49, %v6770_v27  ;;  %2749 = vmax.xlane.f32.xlu1 %v2748_v4  ;;  %2740 = vmax.xlane.f32.xlu0 %v2739_v36  ;;  %v2742_v30 = vsel %vm443_vm11, %v2716_v51, -inf }
 0xfc3   :  { %v2751_v58 = vsel %vm443_vm11, %v2727_v14, -inf }
 0xfc4   :  { %v2745_v57 = vsel %vm443_vm11, %v7377_v10, -inf }
 0xfc6   :  { %2743 = vmax.xlane.f32.xlu1 %v2742_v30  ;;  %2746 = vmax.xlane.f32.xlu0 %v2745_v57 }
 0xfca   :  { %2752 = vmax.xlane.f32.xlu0 %v2751_v58 }
 0xfd7   :  { %2822 = vrot.lane.b32.xlu1 %v7335_v1, %s6423_s5 }
 0xfdb   :  { %2826 = vrot.lane.b32.xlu1 %v7345_v3, %s6423_s5 }
 0xfdf   :  { %2828 = vrot.lane.b32.xlu1 %v7343_v8, %s6423_s5 }
 0xfe0   :  { %2824 = vrot.lane.b32.xlu0 %v7333_v15, %s6423_s5 }
 0xfe3   :  { %2919 = vrot.lane.b32.xlu1 %v7335_v1, %s6424_s3 }
0x1047   :  { %v2738_v55 = vpop.xlane.xlu0 %2737 }
0x1048   :  { %v2756_v32 = vsub.f32 %v2708_v2, %v2738_v55 }
0x104a   :  { %v2766_v44 = vmul.f32 1.442695, %v2756_v32  ;;  %v2735_v31 = vpop.xlane.xlu1 %2734 }
0x104b   :  { %v2732_v38 = vpop.xlane.xlu0 %2731  ;;  %v2755_v40 = vsub.f32 %v2703_v24, %v2735_v31 }
0x104c   :  { %6299 = vpow2.f32 %v2766_v44  ;;  %v2754_v62 = vsub.f32 %v2700_v56, %v2732_v38 }
0x104d   :  { %v2764_v26 = vmul.f32 1.442695, %v2755_v40 }
0x104e   :  { %v2762_v33 = vmul.f32 1.442695, %v2754_v62 }
0x104f   :  { %v2750_v18 = vpop.xlane.xlu1 %2749  ;;  %v2741_v45 = vpop.xlane.xlu0 %2740 }
0x1050   :  { %6301 = vpow2.f32 %v2762_v33  ;;  %v2757_v53 = vsub.f32 %v2711_v48, %v2741_v45  ;;  %v2760_v6 = vsub.f32 %v2724_v41, %v2750_v18 }
0x1052   :  { %v2768_v61 = vmul.f32 1.442695, %v2757_v53  ;;  %v2774_v2 = vmul.f32 1.442695, %v2760_v6 }
0x1053   :  { %v2744_v52 = vpop.xlane.xlu1 %2743  ;;  %v2747_v17 = vpop.xlane.xlu0 %2746 }
0x1054   :  { %6303 = vpow2.f32 %v2768_v61  ;;  %v2758_v37 = vsub.f32 %v2716_v51, %v2744_v52  ;;  %v2759_v45 = vsub.f32 %v7377_v10, %v2747_v17 }
0x1055   :  { %6305 = vpow2.f32 %v2764_v26 }
0x1056   :  { %v7394_v29 = vpop.eup %6299  ;;  %6307 = vpow2.f32 %v2774_v2  ;;  %v2770_v48 = vmul.f32 1.442695, %v2758_v37  ;;  %v2772_v53 = vmul.f32 1.442695, %v2759_v45 }
0x1057   :  { %v2823_v63 = vpop.permute.xlu1 %2822  ;;  %v2753_v49 = vpop.xlane.xlu0 %2752  ;;  %v2784_v56 = vsel %vm443_vm11, %v7394_v29, 0.0 }
0x1058   :  { %2785 = vadd.xlane.f32.xlu1 %v2784_v56  ;;  %5710 = vmatprep.subr.bf16.mxu1 %v2823_v63  ;;  %v2761_v41 = vsub.f32 %v2727_v14, %v2753_v49  ;;  %6309 = vpow2.f32 %v2770_v48 }
0x1059   :  { %5711 = vmatpush3.bf16.msra.mxu1 %v2823_v63 }
0x105a   :  { %v7398_v24 = vpop.eup %6301  ;;  %v2776_v30 = vmul.f32 1.442695, %v2761_v41 }
0x105b   :  { %v2827_v4 = vpop.permute.xlu1 %2826  ;;  %v2825_v36 = vpop.permute.xlu0 %2824  ;;  %v2778_v57 = vsel %vm443_vm11, %v7398_v24, 0.0 }
0x105c   :  { %2779 = vadd.xlane.f32.xlu1 %v2778_v57  ;;  %5712 = vmatprep.subr.bf16.mxu1 %v2825_v36  ;;  %6311 = vpow2.f32 %v2776_v30 }
0x105d   :  { %5713 = vmatpush3.bf16.msra.mxu1 %v2825_v36  ;;  %6313 = vpow2.f32 %v2772_v53 }
0x105e   :  { %5714 = vmatprep.subr.bf16.mxu1 %v2827_v4  ;;  %v6304_v51 = vpop.eup %6303 }
0x105f   :  { %v2829_v58 = vpop.permute.xlu1 %2828  ;;  %v2787_v55 = vsel %vm443_vm11, %v6304_v51, 0.0  ;;  %v6306_v32 = vpop.eup %6305 }
0x1060   :  { %2788 = vadd.xlane.f32.xlu0 %v2787_v55  ;;  %v2781_v14 = vsel %vm443_vm11, %v6306_v32, 0.0  ;;  %v7404_v44 = vpop.eup %6307 }
0x1061   :  { %5715 = vmatpush3.bf16.msra.mxu1 %v2827_v4  ;;  %v2796_v38 = vsel %vm443_vm11, %v7404_v44, 0.0 }
0x1062   :  { %5716 = vmatprep.subr.bf16.mxu1 %v2829_v58  ;;  %v7409_v62 = vpop.eup %6309 }
0x1063   :  { %v2920_v31 = vpop.permute.xlu1 %2919  ;;  %v2790_v33 = vsel %vm443_vm11, %v7409_v62, 0.0 }
0x1064   :  { %2782 = vadd.xlane.f32.xlu0 %v2781_v14 }
0x1065   :  { %5717 = vmatpush3.bf16.msra.mxu1 %v2829_v58 }
0x1066   :  { %6085 = vmatprep.subr.msk.bf16.mxu1 %vm353_vm1, %v2920_v31  ;;  %v7413_v40 = vpop.eup %6311 }
0x1067   :  { %v2799_v18 = vsel %vm443_vm11, %v7413_v40, 0.0  ;;  %v6314_v61 = vpop.eup %6313 }
0x1068   :  { %2797 = vadd.xlane.f32.xlu0 %v2796_v38  ;;  %v2793_v26 = vsel %vm443_vm11, %v6314_v61, 0.0  ;;  %v2940_v38 = vsel %vm353_vm1, %v2920_v31, 0 }
0x106c   :  { %2791 = vadd.xlane.f32.xlu0 %v2790_v33 }
0x106d   :  { %2923 = vrot.lane.b32.xlu1 %v7345_v3, %s6424_s3 }
0x1070   :  { %2800 = vadd.xlane.f32.xlu0 %v2799_v18 }
0x1086   :  { %2921 = vrot.lane.b32.xlu0 %v7333_v15, %s6424_s3 }
0x108a   :  { %2911 = vrot.lane.b32.xlu0 %v7335_v1, %s6425_s26 }
0x108e   :  { %2915 = vrot.lane.b32.xlu0 %v7345_v3, %s6425_s26 }
0x1091   :  { %2794 = vadd.xlane.f32.xlu1 %v2793_v26 }
0x10a2   :  { %2925 = vrot.lane.b32.xlu1 %v7343_v8, %s6424_s3 }
0x10a6   :  { %2913 = vrot.lane.b32.xlu1 %v7333_v15, %s6425_s26 }
0x10aa   :  { %2917 = vrot.lane.b32.xlu1 %v7343_v8, %s6425_s26 }
0x10e5   :  { %v2786_v10 = vpop.xlane.xlu1 %2785 }
0x10e9   :  { %v2780_v6 = vpop.xlane.xlu1 %2779 }
0x10ed   :  { %v2789_v52 = vpop.xlane.xlu0 %2788  ;;  %v2924_v33 = vpop.permute.xlu1 %2923 }
0x10ee   :  { %6315 = vrcp.f32 %v2789_v52 }
0x10ef   :  { %6317 = vrcp.f32 %v2780_v6 }
0x10f0   :  { %6319 = vrcp.f32 %v2786_v10 }
0x10f1   :  { %v2783_v17 = vpop.xlane.xlu0 %2782 }
0x10f2   :  { %6321 = vrcp.f32 %v2783_v17 }
0x10f5   :  { %v2798_v2 = vpop.xlane.xlu0 %2797 }
0x10f8   :  { %v6316_v37 = vpop.eup %6315 }
0x10f9   :  { %v2792_v63 = vpop.xlane.xlu0 %2791  ;;  %v6318_v49 = vpop.eup %6317  ;;  %v2813_v41 = vmul.f32 %v6316_v37, %v6304_v51 }
0x10fa   :  { %v6320_v56 = vpop.eup %6319  ;;  %v2810_v36 = vmul.f32 %v6318_v49, %v7398_v24 }
0x10fb   :  { %v2812_v30 = vmul.f32 %v6320_v56, %v7394_v29  ;;  %v2946_v29 = vsel %vm353_vm1, %v2924_v33, 0 }
0x10fc   :  { %v6322_v48 = vpop.eup %6321 }
0x10fd   :  { %v2801_v4 = vpop.xlane.xlu0 %2800  ;;  %v2811_v57 = vmul.f32 %v6322_v48, %v6306_v32  ;;  %v2819_v55 = vpack.c.bf16 %v2813_v41, %v2812_v30 }
0x10fe   :  { %6323 = vrcp.f32 %v2801_v4 }
0x10ff   :  { %v2818_v58 = vpack.c.bf16 %v2811_v57, %v2810_v36  ;;  %6325 = vrcp.f32 %v2792_v63 }
0x1100   :  { %6327 = vrcp.f32 %v2798_v2 }
0x1101   :  { %5718 = vmatprep.mubr.msk.bf16.mxu1 %vm443_vm11, %v2818_v58  ;;  %v2922_v14 = vpop.permute.xlu0 %2921 }
0x1102   :  { %5719 = vmatmul.mubr.msk.bf16.vlgmr.msra.gmra.mrb[36].mxu1 %vm443_vm11, %v2819_v55  ;;  %v2943_v51 = vsel %vm353_vm1, %v2922_v14, 0 }
0x1103   :  { %5727 = vmatpush3.bf16.xpose.msra.mxu1 %v2940_v38 }
0x1104   :  { %6086 = vmatprep.subr.msk.bf16.mxu1 %vm353_vm1, %v2922_v14 }
0x1105   :  { %v2912_v63 = vpop.permute.xlu0 %2911 }
0x1108   :  { %v6324_v18 = vpop.eup %6323 }
0x1109   :  { %v6326_v45 = vpop.eup %6325  ;;  %v2817_v10 = vmul.f32 %v6324_v18, %v7413_v40  ;;  %v2916_v56 = vpop.permute.xlu0 %2915 }
0x110a   :  { %v6328_v53 = vpop.eup %6327  ;;  %v2814_v6 = vmul.f32 %v6326_v45, %v7409_v62 }
0x110b   :  { %5729 = vmatpush3.bf16.xpose.msra.mxu1 %v2943_v51  ;;  %v2816_v17 = vmul.f32 %v6328_v53, %v7404_v44 }
0x110c   :  { %6087 = vmatprep.subr.msk.bf16.mxu1 %vm353_vm1, %v2924_v33 }
0x110d   :  { %v2821_v37 = vpack.c.bf16 %v2817_v10, %v2816_v17 }
0x1113   :  { %5731 = vmatpush3.bf16.xpose.msra.mxu1 %v2946_v29 }
0x111e   :  { %v2795_v24 = vpop.xlane.xlu1 %2794 }
0x111f   :  { %6329 = vrcp.f32 %v2795_v24 }
0x1122   :  { %v2926_v32 = vpop.permute.xlu1 %2925 }
0x1123   :  { %v2949_v31 = vsel %vm353_vm1, %v2926_v32, 0  ;;  %6088 = vmatprep.subr.msk.bf16.mxu1 %vm353_vm1, %v2926_v32 }
0x1124   :  { %5733 = vmatpush3.bf16.xpose.msra.mxu1 %v2949_v31 }
0x1126   :  { %v2914_v49 = vpop.permute.xlu1 %2913 }
0x1129   :  { %v6330_v26 = vpop.eup %6329 }
0x112a   :  { %v2815_v52 = vmul.f32 %v6330_v26, %v6314_v61  ;;  %v2918_v40 = vpop.permute.xlu1 %2917 }
0x112c   :  { %v2820_v2 = vpack.c.bf16 %v2815_v52, %v2814_v6 }
0x112e   :  { %5722 = vmatprep.mubr.msk.bf16.mxu1 %vm443_vm11, %v2820_v2 }
0x112f   :  { %5723 = vmatmul.mubr.msk.bf16.gmra.mrb[40].mxu1 %vm443_vm11, %v2821_v37 }
0x1130   :  { %5734 = vmatprep.mubr.msk.bf16.mxu1 %vm353_vm1, %v2912_v63 }
0x1137   :  { %5735 = vmatmul.mubr.msk.bf16.vlgmr.msra.gmra.mrb[44].mxu1 %vm353_vm1, %v2914_v49 }
0x1138   :  { %5738 = vmatprep.mubr.msk.bf16.mxu1 %vm353_vm1, %v2916_v56 }
0x113f   :  { %5739 = vmatmul.mubr.msk.bf16.gmra.mrb[48].mxu1 %vm353_vm1, %v2918_v40 }
0x11d5   :  { %v7453_v62 = vpop.f32.mrb[36].mxu1 }
0x11d6   :  { %v7455_v44 = vpop.f32.mrb[37].mxu1 }
0x11d7   :  { %v7457_v61 = vpop.f32.mrb[38].mxu1 }
0x11d8   :  { %v7459_v48 = vpop.f32.mrb[39].mxu1 }
0x1202   :  { %v7461_v41 = vpop.f32.mrb[40].mxu1 }
0x1203   :  { %v7463_v4 = vpop.f32.mrb[41].mxu1 }
0x1204   :  { %v7465_v36 = vpop.f32.mrb[42].mxu1 }
0x1205   :  { %v7467_v57 = vpop.f32.mrb[43].mxu1 }
0x120a   :  { %v5736_v30 = vpop.f32.mrb[44].mxu1 }
0x120b   :  { %v2985_v58 = vpop.f32.mrb[45].mxu1  ;;  %v2994_v51 = vadd.f32 %v5736_v30, %v6746_v60 }
0x120c   :  { %v2986_v55 = vadd.f32 %v2985_v58, %v6749_v0  ;;  %v5737_v14 = vpop.f32.mrb[46].mxu1 }
0x120d   :  { %v2988_v38 = vpop.f32.mrb[47].mxu1  ;;  %v2997_v32 = vadd.f32 %v5737_v14, %v6758_v11  ;;  %v3022_v18 = vsel %vm443_vm11, %v2994_v51, -inf }
0x120e   :  { %v2989_v33 = vadd.f32 %v2988_v38, %v6751_v5  ;;  %v3016_v29 = vsel %vm443_vm11, %v2986_v55, -inf }
0x120f   :  { %3017 = vmax.xlane.f32.xlu0 %v3016_v29  ;;  %v3025_v10 = vsel %vm443_vm11, %v2997_v32, -inf }
0x1210   :  { %v3019_v24 = vsel %vm443_vm11, %v2989_v33, -inf }
0x1211   :  { %3020 = vmax.xlane.f32.xlu1 %v3019_v24 }
0x1212   :  { %v5740_v31 = vpop.f32.mrb[48].mxu1 }
0x1213   :  { %3023 = vmax.xlane.f32.xlu0 %v3022_v18  ;;  %v3001_v45 = vpop.f32.mrb[49].mxu1  ;;  %v3010_v60 = vadd.f32 %v5740_v31, %v6765_v19 }
0x1214   :  { %v3002_v0 = vadd.f32 %v3001_v45, %v6768_v25  ;;  %v5741_v53 = vpop.f32.mrb[50].mxu1 }
0x1215   :  { %v3004_v26 = vpop.f32.mrb[51].mxu1  ;;  %v3013_v11 = vadd.f32 %v5741_v53, %v6779_v39  ;;  %v3034_v17 = vsel %vm443_vm11, %v3010_v60, -inf }
0x1216   :  { %v3005_v5 = vadd.f32 %v3004_v26, %v6770_v27  ;;  %v3028_v6 = vsel %vm443_vm11, %v3002_v0, -inf }
0x1217   :  { %3026 = vmax.xlane.f32.xlu0 %v3025_v10  ;;  %3029 = vmax.xlane.f32.xlu1 %v3028_v6  ;;  %v3037_v25 = vsel %vm443_vm11, %v3013_v11, -inf }
0x1218   :  { %v3031_v52 = vsel %vm443_vm11, %v3005_v5, -inf }
0x121b   :  { %3032 = vmax.xlane.f32.xlu0 %v3031_v52  ;;  %3035 = vmax.xlane.f32.xlu1 %v3034_v17 }
0x121f   :  { %3038 = vmax.xlane.f32.xlu0 %v3037_v25 }
0x122c   :  { %3108 = vrot.lane.b32.xlu1 %v7335_v1, %s6426_s27 }
0x129c   :  { %v3018_v19 = vpop.xlane.xlu0 %3017 }
0x129d   :  { %v3040_v27 = vsub.f32 %v2986_v55, %v3018_v19 }
0x129e   :  { %v3021_v2 = vpop.xlane.xlu1 %3020 }
0x129f   :  { %v3048_v49 = vmul.f32 1.442695, %v3040_v27  ;;  %v3041_v39 = vsub.f32 %v2989_v33, %v3021_v2 }
0x12a0   :  { %v3024_v37 = vpop.xlane.xlu0 %3023 }
0x12a1   :  { %v3042_v63 = vsub.f32 %v2994_v51, %v3024_v37  ;;  %v3050_v29 = vmul.f32 1.442695, %v3041_v39 }
0x12a3   :  { %v3052_v56 = vmul.f32 1.442695, %v3042_v63 }
0x12a4   :  { %v3030_v40 = vpop.xlane.xlu1 %3029  ;;  %v3027_v30 = vpop.xlane.xlu0 %3026 }
0x12a5   :  { %6331 = vpow2.f32 %v3052_v56  ;;  %v3043_v58 = vsub.f32 %v2997_v32, %v3027_v30  ;;  %v3044_v14 = vsub.f32 %v3002_v0, %v3030_v40 }
0x12a6   :  { %6333 = vpow2.f32 %v3048_v49 }
0x12a7   :  { %v3054_v38 = vmul.f32 1.442695, %v3043_v58  ;;  %v3056_v1 = vmul.f32 1.442695, %v3044_v14 }
0x12a8   :  { %v3036_v24 = vpop.xlane.xlu1 %3035  ;;  %v3033_v31 = vpop.xlane.xlu0 %3032 }
0x12a9   :  { %v3046_v18 = vsub.f32 %v3010_v60, %v3036_v24  ;;  %6335 = vpow2.f32 %v3054_v38  ;;  %v3045_v45 = vsub.f32 %v3005_v5, %v3033_v31 }
0x12aa   :  { %6337 = vpow2.f32 %v3050_v29 }
0x12ab   :  { %v3060_v55 = vmul.f32 1.442695, %v3046_v18  ;;  %v3058_v0 = vmul.f32 1.442695, %v3045_v45 }
0x12ac   :  { %v3109_v51 = vpop.permute.xlu1 %3108  ;;  %v3039_v53 = vpop.xlane.xlu0 %3038 }
0x12ad   :  { %6339 = vpow2.f32 %v3060_v55  ;;  %v3047_v33 = vsub.f32 %v3013_v11, %v3039_v53  ;;  %5742 = vmatprep.subr.bf16.mxu1 %v3109_v51 }
0x12ae   :  { %5743 = vmatpush3.bf16.msra.mxu1 %v3109_v51  ;;  %6341 = vpow2.f32 %v3056_v1 }
0x12af   :  { %v7487_v26 = vpop.eup %6331  ;;  %v3062_v32 = vmul.f32 1.442695, %v3047_v33 }
0x12b0   :  { %v3070_v10 = vsel %vm443_vm11, %v7487_v26, 0.0  ;;  %v6334_v60 = vpop.eup %6333 }
0x12b1   :  { %6343 = vpow2.f32 %v3062_v32  ;;  %3071 = vadd.xlane.f32.xlu1 %v3070_v10  ;;  %v3064_v5 = vsel %vm443_vm11, %v6334_v60, 0.0 }
0x12b2   :  { %6345 = vpow2.f32 %v3058_v0 }
0x12b3   :  { %v6336_v6 = vpop.eup %6335 }
0x12b4   :  { %v3073_v11 = vsel %vm443_vm11, %v6336_v6, 0.0  ;;  %v6338_v52 = vpop.eup %6337 }
0x12b5   :  { %3065 = vadd.xlane.f32.xlu1 %v3064_v5  ;;  %3074 = vadd.xlane.f32.xlu0 %v3073_v11  ;;  %v3067_v27 = vsel %vm443_vm11, %v6338_v52, 0.0 }
0x12b7   :  { %v7493_v17 = vpop.eup %6339 }
0x12b8   :  { %v3082_v25 = vsel %vm443_vm11, %v7493_v17, 0.0  ;;  %v6342_v19 = vpop.eup %6341 }
0x12b9   :  { %3083 = vadd.xlane.f32.xlu1 %v3082_v25  ;;  %3068 = vadd.xlane.f32.xlu0 %v3067_v27  ;;  %v3076_v37 = vsel %vm443_vm11, %v6342_v19, 0.0 }
0x12bb   :  { %v6344_v2 = vpop.eup %6343 }
0x12bc   :  { %v3085_v63 = vsel %vm443_vm11, %v6344_v2, 0.0  ;;  %v6346_v49 = vpop.eup %6345 }
0x12bd   :  { %3077 = vadd.xlane.f32.xlu1 %v3076_v37  ;;  %3086 = vadd.xlane.f32.xlu0 %v3085_v63  ;;  %v3079_v56 = vsel %vm443_vm11, %v6346_v49, 0.0 }
0x12c1   :  { %3080 = vadd.xlane.f32.xlu0 %v3079_v56 }
0x12ce   :  { %3112 = vrot.lane.b32.xlu1 %v7345_v3, %s6426_s27 }
0x12d2   :  { %3114 = vrot.lane.b32.xlu1 %v7343_v8, %s6426_s27 }
0x12d7   :  { %3110 = vrot.lane.b32.xlu0 %v7333_v15, %s6426_s27 }
0x133e   :  { %v3072_v39 = vpop.xlane.xlu1 %3071 }
0x1342   :  { %v3066_v40 = vpop.xlane.xlu1 %3065  ;;  %v3075_v30 = vpop.xlane.xlu0 %3074 }
0x1343   :  { %6347 = vrcp.f32 %v3066_v40 }
0x1346   :  { %v3084_v58 = vpop.xlane.xlu1 %3083  ;;  %v3069_v14 = vpop.xlane.xlu0 %3068 }
0x1347   :  { %6349 = vrcp.f32 %v3069_v14 }
0x1348   :  { %6351 = vrcp.f32 %v3075_v30 }
0x1349   :  { %6353 = vrcp.f32 %v3072_v39 }
0x134a   :  { %v3087_v38 = vpop.xlane.xlu0 %3086  ;;  %v3078_v29 = vpop.xlane.xlu1 %3077 }
0x134b   :  { %6355 = vrcp.f32 %v3078_v29 }
0x134d   :  { %v6348_v3 = vpop.eup %6347 }
0x134e   :  { %v3081_v24 = vpop.xlane.xlu0 %3080  ;;  %v3113_v8 = vpop.permute.xlu1 %3112  ;;  %v3096_v1 = vmul.f32 %v6348_v3, %v6334_v60 }
0x134f   :  { %6357 = vrcp.f32 %v3081_v24 }
0x1350   :  { %6359 = vrcp.f32 %v3087_v38 }
0x1351   :  { %v6350_v31 = vpop.eup %6349  ;;  %6361 = vrcp.f32 %v3084_v58 }
0x1352   :  { %v3111_v18 = vpop.permute.xlu0 %3110  ;;  %v3097_v15 = vmul.f32 %v6350_v31, %v6338_v52  ;;  %v6352_v45 = vpop.eup %6351 }
0x1353   :  { %5744 = vmatprep.subr.bf16.mxu1 %v3111_v18  ;;  %v6354_v51 = vpop.eup %6353  ;;  %v3115_v33 = vpop.permute.xlu1 %3114  ;;  %v3099_v0 = vmul.f32 %v6352_v45, %v6336_v6  ;;  %v6176_v6 = vld [vmem:[%s7906_s8 + $0x18] sm:$0xff]  }
0x1354   :  { %5745 = vmatpush3.bf16.msra.mxu1 %v3111_v18  ;;  %v3104_v55 = vpack.c.bf16 %v3097_v15, %v3096_v1  ;;  %v3098_v60 = vmul.f32 %v6354_v51, %v7487_v26  ;;  %v6175_v26 = vld [vmem:[%s7906_s8 + $0x10] sm:$0xff]   ;;  %s6400_s8 = scalar_lea.vmem %s4928_s30, 32 }
0x1355   :  { %5746 = vmatprep.subr.bf16.mxu1 %v3113_v8  ;;  %v6356_v53 = vpop.eup %6355  ;;  %5758 = vmatprep.subr.bf16.mxu0 %v6175_v26 }
0x1356   :  { %5750 = vmatprep.mubr.msk.bf16.mxu1 %vm443_vm11, %v3104_v55  ;;  %v3100_v5 = vmul.f32 %v6356_v53, %v6342_v19  ;;  %v3105_v11 = vpack.c.bf16 %v3099_v0, %v3098_v60  ;;  %5759 = vmatpush3.bf16.msra.mxu0 %v6175_v26 }
0x1357   :  { %5760 = vmatprep.subr.bf16.mxu0 %v6176_v6 }
0x1358   :  { %5747 = vmatpush3.bf16.msra.mxu1 %v3113_v8 }
0x1359   :  { %v6358_v32 = vpop.eup %6357  ;;  %5748 = vmatprep.subr.bf16.mxu1 %v3115_v33 }
0x135a   :  { %v3101_v10 = vmul.f32 %v6358_v32, %v6346_v49  ;;  %v6360_v52 = vpop.eup %6359  ;;  %5761 = vmatpush3.bf16.msra.mxu0 %v6176_v6 }
0x135b   :  { %v6362_v27 = vpop.eup %6361  ;;  %v3103_v37 = vmul.f32 %v6360_v52, %v6344_v2 }
0x135c   :  { %5749 = vmatpush3.bf16.msra.mxu1 %v3115_v33  ;;  %v3106_v25 = vpack.c.bf16 %v3101_v10, %v3100_v5  ;;  %v3102_v63 = vmul.f32 %v6362_v27, %v7493_v17 }
0x135e   :  { %v3107_v56 = vpack.c.bf16 %v3103_v37, %v3102_v63  ;;  %v5097_v37 = vld [vmem:[%s7907_s9 + $0x1] ss:$0 sm:$0xff] }
0x135f   :  { %5751 = vmatmul.mubr.msk.bf16.vlgmr.msra.gmra.mrb[52].mxu1 %vm443_vm11, %v3105_v11 }
0x1360   :  { %5754 = vmatprep.mubr.msk.bf16.mxu1 %vm443_vm11, %v3106_v25 }
0x1367   :  { %5755 = vmatmul.mubr.msk.bf16.gmra.mrb[56].mxu1 %vm443_vm11, %v3107_v56 }
0x1432   :  { %v5752_v19 = vpop.f32.mrb[52].mxu1 }
0x1433   :  { %v3166_v49 = vpop.f32.mrb[53].mxu1 }
0x1434   :  { %v5753_v2 = vpop.f32.mrb[54].mxu1 }
0x1435   :  { %v6128_v39 = vpack.i.bf16 %v5753_v2, %v5752_v19  ;;  %v3169_v17 = vpop.f32.mrb[55].mxu1 }
0x1436   :  { %v6123_v40 = vpack.i.bf16 %v3169_v17, %v3166_v49 }
0x1437   :  { %6129 = vrot.lane.b32.xlu1 %v6128_v39, %s6427_s23 }
0x1438   :  { %6124 = vrot.lane.b32.xlu0 %v6123_v40, %s6427_s23 }
0x143a   :  { %v5756_v30 = vpop.f32.mrb[56].mxu1 }
0x143b   :  { %v3182_v58 = vpop.f32.mrb[57].mxu1 }
0x143c   :  { %v5757_v14 = vpop.f32.mrb[58].mxu1 }
0x143d   :  { %v6138_v38 = vpack.i.bf16 %v5757_v14, %v5756_v30  ;;  %v3185_v29 = vpop.f32.mrb[59].mxu1 }
0x143e   :  { %v6133_v24 = vpack.i.bf16 %v3185_v29, %v3182_v58 }
0x143f   :  { %6139 = vrot.lane.b32.xlu1 %v6138_v38, %s6427_s23 }
0x1440   :  { %6134 = vrot.lane.b32.xlu0 %v6133_v24, %s6427_s23 }
0x14a9   :  { %v6130_v3 = vpop.permute.xlu1 %6129 }
0x14aa   :  { %v6132_v31 = vunpack.i.h.bf16 %v6130_v3  ;;  %v6131_v8 = vunpack.i.l.bf16 %v6130_v3  ;;  %v6125_v18 = vpop.permute.xlu0 %6124 }
0x14ab   :  { %v6127_v1 = vunpack.i.h.bf16 %v6125_v18  ;;  %v6126_v15 = vunpack.i.l.bf16 %v6125_v18 }
0x14ac   :  { %v3232_v55 = vsel %vm353_vm1, %v7457_v61, %v6132_v31  ;;  %v3231_v45 = vsel %vm353_vm1, %v7453_v62, %v6131_v8 }
0x14ad   :  { %v3238_v51 = vpack.c.bf16 %v3232_v55, %v3231_v45  ;;  %v3230_v53 = vsel %vm353_vm1, %v7459_v48, %v6127_v1  ;;  %v3229_v33 = vsel %vm353_vm1, %v7455_v44, %v6126_v15 }
0x14ae   :  { %v3237_v32 = vpack.c.bf16 %v3230_v53, %v3229_v33 }
0x14b0   :  { %5762 = vmatprep.mubr.msk.bf16.mxu0 %vm146_vm0, %v3237_v32 }
0x14b1   :  { %5763 = vmatmul.mubr.msk.bf16.vlgmr.msra.gmra.mrb[44].mxu0 %vm146_vm0, %v3238_v51  ;;  %v6140_v0 = vpop.permute.xlu1 %6139 }
0x14b2   :  { %v6142_v10 = vunpack.i.h.bf16 %v6140_v0  ;;  %v6141_v60 = vunpack.i.l.bf16 %v6140_v0  ;;  %v6135_v5 = vpop.permute.xlu0 %6134 }
0x14b3   :  { %v6137_v61 = vunpack.i.h.bf16 %v6135_v5  ;;  %v6136_v11 = vunpack.i.l.bf16 %v6135_v5 }
0x14b4   :  { %v3236_v62 = vsel %vm353_vm1, %v7465_v36, %v6142_v10  ;;  %v3235_v48 = vsel %vm353_vm1, %v7461_v41, %v6141_v60 }
0x14b5   :  { %v3240_v52 = vpack.c.bf16 %v3236_v62, %v3235_v48  ;;  %v3234_v44 = vsel %vm353_vm1, %v7467_v57, %v6137_v61  ;;  %v3233_v25 = vsel %vm353_vm1, %v7463_v4, %v6136_v11  ;;  %vm6430_vm1 = vmmov 0  }
0x14b6   :  { %v3239_v27 = vpack.c.bf16 %v3234_v44, %v3233_v25 }
0x14b8   :  { %5766 = vmatprep.mubr.msk.bf16.mxu0 %vm146_vm0, %v3239_v27 }
0x14b9   :  { %5767 = vmatmul.mubr.msk.bf16.gmra.mrb[48].mxu0 %vm146_vm0, %v3240_v52 }
0x1584   :  { %v5764_v36 = vpop.f32.mrb[44].mxu0 }
0x1585   :  { %v3309_v63 = vpop.f32.mrb[45].mxu0  ;;  %v3318_v56 = vadd.f32 %v5764_v36, %v5097_v37 }
0x1586   :  { %v3310_v41 = vadd.f32 %v5097_v37, %v3309_v63  ;;  %v5765_v26 = vpop.f32.mrb[46].mxu0 }
0x1587   :  { %v3312_v6 = vpop.f32.mrb[47].mxu0  ;;  %v3321_v49 = vadd.f32 %v5765_v26, %v5097_v37  ;;  %v3342_v4 = vadd.f32 %v3318_v56, %v7301_v42 }
0x1588   :  { %v3340_v57 = vadd.f32 %v3310_v41, %v7291_v59  ;;  %v3313_v19 = vadd.f32 %v5097_v37, %v3312_v6 }
0x1589   :  { %v3343_v30 = vadd.f32 %v3321_v49, %v7304_v16  ;;  %v3356_v59 = vsel %vm146_vm0, %v3342_v4, 0.0 }
0x158a   :  { %v3341_v2 = vadd.f32 %v3313_v19, %v7295_v7  ;;  %v3350_v39 = vsel %vm146_vm0, %v3340_v57, 0.0 }
0x158b   :  { %3351 = vadd.xlane.f32.xlu0 %v3350_v39  ;;  %v3359_v3 = vsel %vm146_vm0, %v3343_v30, 0.0 }
0x158c   :  { %v5768_v17 = vpop.f32.mrb[48].mxu0  ;;  %v3353_v40 = vsel %vm146_vm0, %v3341_v2, 0.0 }
0x158d   :  { %3354 = vadd.xlane.f32.xlu1 %v3353_v40  ;;  %v3325_v58 = vpop.f32.mrb[49].mxu0  ;;  %v3334_v14 = vadd.f32 %v5768_v17, %v5097_v37 }
0x158e   :  { %v3326_v38 = vadd.f32 %v5097_v37, %v3325_v58  ;;  %v5769_v29 = vpop.f32.mrb[50].mxu0 }
0x158f   :  { %3357 = vadd.xlane.f32.xlu0 %v3356_v59  ;;  %v3328_v24 = vpop.f32.mrb[51].mxu0  ;;  %v3346_v31 = vadd.f32 %v3334_v14, %v7322_v28  ;;  %v3337_v8 = vadd.f32 %v5769_v29, %v5097_v37  ;;  %v6177_v59 = vld [vmem:[%s7910_s12 + $0xa0] sm:$0xff]  }
0x1590   :  { %v3344_v42 = vadd.f32 %v3326_v38, %v7313_v54  ;;  %v3329_v7 = vadd.f32 %v5097_v37, %v3328_v24  ;;  %v6178_v24 = vld [vmem:[%s7910_s12 + $0xa8] sm:$0xff]   ;;  %5770 = vmatprep.subr.bf16.mxu1 %v6177_v59 }
0x1591   :  { %v3347_v1 = vadd.f32 %v3337_v8, %v7325_v23  ;;  %v3368_v55 = vsel %vm146_vm0, %v3346_v31, 0.0  ;;  %5771 = vmatpush3.bf16.msra.mxu1 %v6177_v59 }
0x1592   :  { %v3345_v18 = vadd.f32 %v3329_v7, %v7316_v9  ;;  %v3362_v16 = vsel %vm146_vm0, %v3344_v42, 0.0  ;;  %5772 = vmatprep.subr.bf16.mxu1 %v6178_v24 }
0x1593   :  { %3360 = vadd.xlane.f32.xlu0 %v3359_v3  ;;  %3363 = vadd.xlane.f32.xlu1 %v3362_v16  ;;  %v3371_v54 = vsel %vm146_vm0, %v3347_v1, 0.0 }
0x1594   :  { %v3365_v15 = vsel %vm146_vm0, %v3345_v18, 0.0 }
0x1595   :  { %5773 = vmatpush3.bf16.msra.mxu1 %v6178_v24 }
0x1597   :  { %3366 = vadd.xlane.f32.xlu0 %v3365_v15  ;;  %3369 = vadd.xlane.f32.xlu1 %v3368_v55 }
0x159b   :  { %3372 = vadd.xlane.f32.xlu0 %v3371_v54 }
0x1618   :  { %v3352_v45 = vpop.xlane.xlu0 %3351 }
0x1619   :  { %v3374_v28 = vmul.f32 0.03125, %v3352_v45 }
0x161a   :  { %v3355_v51 = vpop.xlane.xlu1 %3354 }
0x161b   :  { %v7562_v53 = vsub.f32 %v3340_v57, %v3374_v28  ;;  %v3375_v9 = vmul.f32 0.03125, %v3355_v51 }
0x161c   :  { %v3358_v33 = vpop.xlane.xlu0 %3357 }
0x161d   :  { %v7564_v32 = vsub.f32 %v3341_v2, %v3375_v9  ;;  %v3376_v0 = vmul.f32 0.03125, %v3358_v33  ;;  %v3390_v23 = vmul.f32 %v7562_v53, %v7562_v53 }
0x161f   :  { %v7568_v10 = vsub.f32 %v3342_v4, %v3376_v0  ;;  %v3398_v60 = vsel %vm146_vm0, %v3390_v23, 0.0  ;;  %v3391_v5 = vmul.f32 %v7564_v32, %v7564_v32 }
0x1620   :  { %v3361_v61 = vpop.xlane.xlu0 %3360  ;;  %3399 = vadd.xlane.f32.xlu1 %v3398_v60  ;;  %v3364_v11 = vpop.xlane.xlu1 %3363 }
0x1621   :  { %v3377_v62 = vmul.f32 0.03125, %v3361_v61  ;;  %v3378_v48 = vmul.f32 0.03125, %v3364_v11  ;;  %v3401_v52 = vsel %vm146_vm0, %v3391_v5, 0.0  ;;  %v3392_v44 = vmul.f32 %v7568_v10, %v7568_v10  ;;  %v5104_v11 = vld [vmem:[%s7908_s10 + $0x1] ss:$0 sm:$0xff] }
0x1622   :  { %3402 = vadd.xlane.f32.xlu0 %v3401_v52 }
0x1623   :  { %v7576_v25 = vsub.f32 %v3343_v30, %v3377_v62  ;;  %v7578_v27 = vsub.f32 %v3344_v42, %v3378_v48  ;;  %v3404_v37 = vsel %vm146_vm0, %v3392_v44, 0.0  ;;  %v7611_v42 = vld [vmem:[%s7910_s12 + $0x90] sm:$0xff]  }
0x1624   :  { %v3367_v36 = vpop.xlane.xlu0 %3366  ;;  %3405 = vadd.xlane.f32.xlu1 %v3404_v37  ;;  %v3370_v63 = vpop.xlane.xlu1 %3369  ;;  %5782 = vmatprep.subr.bf16.mxu1 %v7611_v42 }
0x1625   :  { %v3379_v56 = vmul.f32 0.03125, %v3367_v36  ;;  %v3380_v41 = vmul.f32 0.03125, %v3370_v63  ;;  %v3393_v26 = vmul.f32 %v7576_v25, %v7576_v25  ;;  %v3394_v6 = vmul.f32 %v7578_v27, %v7578_v27  ;;  %v5105_v36 = vld [vmem:[%s7909_s11 + $0x1] ss:$0 sm:$0xff] }
0x1627   :  { %v7585_v57 = vsub.f32 %v3345_v18, %v3379_v56  ;;  %v7587_v19 = vsub.f32 %v3346_v31, %v3380_v41  ;;  %v3407_v49 = vsel %vm146_vm0, %v3393_v26, 0.0  ;;  %v3410_v4 = vsel %vm146_vm0, %v3394_v6, 0.0 }
0x1628   :  { %3408 = vadd.xlane.f32.xlu0 %v3407_v49  ;;  %v3373_v2 = vpop.xlane.xlu0 %3372  ;;  %3411 = vadd.xlane.f32.xlu1 %v3410_v4 }
0x1629   :  { %v3381_v39 = vmul.f32 0.03125, %v3373_v2  ;;  %v3395_v17 = vmul.f32 %v7585_v57, %v7585_v57  ;;  %v3396_v40 = vmul.f32 %v7587_v19, %v7587_v19 }
0x162b   :  { %v7595_v30 = vsub.f32 %v3347_v1, %v3381_v39  ;;  %v3413_v58 = vsel %vm146_vm0, %v3395_v17, 0.0  ;;  %v3416_v14 = vsel %vm146_vm0, %v3396_v40, 0.0 }
0x162c   :  { %3414 = vadd.xlane.f32.xlu0 %v3413_v58  ;;  %3417 = vadd.xlane.f32.xlu1 %v3416_v14 }
0x162d   :  { %v3397_v38 = vmul.f32 %v7595_v30, %v7595_v30 }
0x162f   :  { %v3419_v29 = vsel %vm146_vm0, %v3397_v38, 0.0 }
0x1630   :  { %3420 = vadd.xlane.f32.xlu0 %v3419_v29 }
0x16ad   :  { %v3400_v7 = vpop.xlane.xlu1 %3399 }
0x16ae   :  { %v3422_v3 = vmul.f32 0.03125, %v3400_v7 }
0x16af   :  { %v3403_v31 = vpop.xlane.xlu0 %3402 }
0x16b0   :  { %v3430_v8 = vadd.f32 1e-05, %v3422_v3  ;;  %v3423_v18 = vmul.f32 0.03125, %v3403_v31 }
0x16b1   :  { %v3406_v16 = vpop.xlane.xlu1 %3405 }
0x16b2   :  { %6363 = vrsqrt.f32 %v3430_v8  ;;  %v3431_v1 = vadd.f32 1e-05, %v3423_v18  ;;  %v3424_v15 = vmul.f32 0.03125, %v3406_v16 }
0x16b4   :  { %6365 = vrsqrt.f32 %v3431_v1  ;;  %v3432_v55 = vadd.f32 1e-05, %v3424_v15 }
0x16b5   :  { %v3409_v54 = vpop.xlane.xlu0 %3408  ;;  %v3412_v45 = vpop.xlane.xlu1 %3411 }
0x16b6   :  { %6367 = vrsqrt.f32 %v3432_v55  ;;  %v3425_v28 = vmul.f32 0.03125, %v3409_v54  ;;  %v3426_v51 = vmul.f32 0.03125, %v3412_v45 }
0x16b8   :  { %v3433_v9 = vadd.f32 1e-05, %v3425_v28  ;;  %v3434_v33 = vadd.f32 1e-05, %v3426_v51 }
0x16b9   :  { %v3415_v0 = vpop.xlane.xlu0 %3414  ;;  %v3418_v23 = vpop.xlane.xlu1 %3417 }
0x16ba   :  { %6369 = vrsqrt.f32 %v3433_v9  ;;  %v3427_v60 = vmul.f32 0.03125, %v3415_v0  ;;  %v3428_v5 = vmul.f32 0.03125, %v3418_v23 }
0x16bb   :  { %6371 = vrsqrt.f32 %v3434_v33 }
0x16bc   :  { %v6364_v61 = vpop.eup %6363  ;;  %v3435_v62 = vadd.f32 1e-05, %v3427_v60  ;;  %v3436_v48 = vadd.f32 1e-05, %v3428_v5 }
0x16bd   :  { %v3446_v52 = vmul.f32 %v6364_v61, %v7562_v53  ;;  %v3421_v44 = vpop.xlane.xlu0 %3420 }
0x16be   :  { %v6366_v37 = vpop.eup %6365  ;;  %6373 = vrsqrt.f32 %v3435_v62  ;;  %v3429_v63 = vmul.f32 0.03125, %v3421_v44  ;;  %v6181_v44 = vld [vmem:[%s7910_s12 + $0xb0] sm:$0xff]  }
0x16bf   :  { %v3458_v56 = vmul.f32 %v5104_v11, %v3446_v52  ;;  %v3447_v41 = vmul.f32 %v6366_v37, %v7564_v32  ;;  %6375 = vrsqrt.f32 %v3436_v48 }
0x16c0   :  { %v6368_v26 = vpop.eup %6367  ;;  %v3437_v6 = vadd.f32 1e-05, %v3429_v63 }
0x16c1   :  { %v3470_v49 = vadd.f32 %v5105_v36, %v3458_v56  ;;  %v3459_v4 = vmul.f32 %v5104_v11, %v3447_v41  ;;  %v3448_v2 = vmul.f32 %v6368_v26, %v7568_v10 }
0x16c2   :  { %6377 = vrsqrt.f32 %v3437_v6 }
0x16c3   :  { %v7624_v53 = vmul.f32 %v3470_v49, %v6574_v13  ;;  %v3471_v39 = vadd.f32 %v5105_v36, %v3459_v4  ;;  %v3460_v17 = vmul.f32 %v5104_v11, %v3448_v2  ;;  %v6195_v4 = vld [vmem:[%s7912_s14 + $0x40] sm:$0xff]  }
0x16c4   :  { %v6370_v40 = vpop.eup %6369  ;;  %5878 = vmatprep.subr.bf16.mxu0 %v6195_v4 }
0x16c5   :  { %v6372_v58 = vpop.eup %6371  ;;  %3486 = vst.msk [vmem:[#allocation2 + $0x4] sm:$0xff] %vm146_vm0, %v7624_v53  ;;  %v7629_v32 = vmul.f32 %v3471_v39, %v6595_v22  ;;  %v3472_v14 = vadd.f32 %v5105_v36, %v3460_v17  ;;  %v3449_v38 = vmul.f32 %v6370_v40, %v7576_v25  ;;  %v6182_v17 = vld [vmem:[%s7910_s12 + $0xb8] sm:$0xff]   ;;  %v6196_v40 = vld [vmem:[%s7912_s14 + $0x48] sm:$0xff]   ;;  %5879 = vmatpush3.bf16.msra.mxu0 %v6195_v4 }
0x16c6   :  { %v3450_v29 = vmul.f32 %v6372_v58, %v7578_v27  ;;  %5880 = vmatprep.subr.bf16.mxu0 %v6196_v40 }
0x16c7   :  { %3487 = vst.msk [vmem:[#allocation2 + $0x14] sm:$0xff] %vm146_vm0, %v7629_v32  ;;  %v7636_v10 = vmul.f32 %v3472_v14, %v6572_v12  ;;  %v3461_v59 = vmul.f32 %v5104_v11, %v3449_v38  ;;  %v6197_v14 = vld [vmem:[%s7912_s14 + $0x50] sm:$0xff]   ;;  %v6183_v38 = vld [vmem:[%s7910_s12 + $0xc0] sm:$0xff]  }
0x16c8   :  { %v6374_v24 = vpop.eup %6373  ;;  %v3462_v7 = vmul.f32 %v5104_v11, %v3450_v29 }
0x16c9   :  { %v6376_v3 = vpop.eup %6375  ;;  %3488 = vst.msk [vmem:[#allocation2 + $0x24] sm:$0xff] %vm146_vm0, %v7636_v10  ;;  %v3473_v31 = vadd.f32 %v5105_v36, %v3461_v59  ;;  %v3451_v8 = vmul.f32 %v6374_v24, %v7585_v57  ;;  %5881 = vmatpush3.bf16.msra.mxu0 %v6196_v40 }
0x16ca   :  { %v3474_v18 = vadd.f32 %v5105_v36, %v3462_v7  ;;  %v3452_v25 = vmul.f32 %v6376_v3, %v7587_v19  ;;  %5882 = vmatprep.subr.bf16.mxu0 %v6197_v14  ;;  %v6198_v7 = vld [vmem:[%s7912_s14 + $0x58] sm:$0xff]  }
0x16cb   :  { %v7643_v27 = vmul.f32 %v3473_v31, %v6593_v21  ;;  %v3463_v16 = vmul.f32 %v5104_v11, %v3451_v8 }
0x16cc   :  { %v6378_v1 = vpop.eup %6377  ;;  %v7646_v15 = vmul.f32 %v3474_v18, %v6624_v35  ;;  %v3464_v55 = vmul.f32 %v5104_v11, %v3452_v25  ;;  %v3511_v19 = vld [vmem:[#allocation2 + $0x1] sm:$0xff] }
0x16cd   :  { %3489 = vst.msk [vmem:[#allocation2 + $0x34] sm:$0xff] %vm146_vm0, %v7643_v27  ;;  %v3475_v54 = vadd.f32 %v5105_v36, %v3463_v16  ;;  %v3453_v45 = vmul.f32 %v6378_v1, %v7595_v30  ;;  %v3494_v41 = vld [vmem:[#allocation2] sm:$0xff]  ;;  %5883 = vmatpush3.bf16.msra.mxu0 %v6197_v14 }
0x16ce   :  { %3490 = vst.msk [vmem:[#allocation2 + $0x44] sm:$0xff] %vm146_vm0, %v7646_v15  ;;  %v3476_v57 = vadd.f32 %v5105_v36, %v3464_v55  ;;  %v3512_v28 = vld [vmem:[#allocation2 + $0x11] sm:$0xff]  ;;  %v3706_v31 = vld [vmem:[#allocation2 + $0x2] sm:$0xff]  ;;  %5884 = vmatprep.subr.bf16.mxu0 %v6198_v7 }
0x16cf   :  { %v7654_v51 = vmul.f32 %v3475_v54, %v6622_v34  ;;  %v3465_v9 = vmul.f32 %v5104_v11, %v3453_v45  ;;  %v3519_v33 = vpack.c.bf16 %v3512_v28, %v3511_v19  ;;  %v6180_v11 = vld [vmem:[%s7910_s12 + $0x98] sm:$0xff]   ;;  %v3495_v37 = vld [vmem:[#allocation2 + $0x10] sm:$0xff]  ;;  %v6199_v18 = vld [vmem:[%s7912_s14 + $0x60] sm:$0xff]  }
0x16d0   :  { %v7657_v0 = vmul.f32 %v3476_v57, %v6652_v47  ;;  %v3513_v60 = vld [vmem:[#allocation2 + $0x21] sm:$0xff]  ;;  %v3502_v26 = vpack.c.bf16 %v3495_v37, %v3494_v41  ;;  %v3707_v59 = vld [vmem:[#allocation2 + $0x12] sm:$0xff] }
0x16d1   :  { %3491 = vst.msk [vmem:[#allocation2 + $0x54] sm:$0xff] %vm146_vm0, %v7654_v51  ;;  %v3477_v23 = vadd.f32 %v5105_v36, %v3465_v9  ;;  %5774 = vmatprep.mubr.msk.bf16.mxu1 %vm146_vm0, %v3519_v33  ;;  %v3496_v49 = vld [vmem:[#allocation2 + $0x20] sm:$0xff]  ;;  %v3714_v8 = vpack.c.bf16 %v3707_v59, %v3706_v31  ;;  %5885 = vmatpush3.bf16.msra.mxu0 %v6198_v7  ;;  %v6184_v45 = vld [vmem:[%s7910_s12 + $0xc8] sm:$0xff]   ;;  %v6185_v28 = vld [vmem:[%s7910_s12 + $0xd0] sm:$0xff]  }
0x16d2   :  { %3492 = vst.msk [vmem:[#allocation2 + $0x64] sm:$0xff] %vm146_vm0, %v7657_v0  ;;  %v3708_v1 = vld [vmem:[#allocation2 + $0x22] sm:$0xff]  ;;  %5886 = vmatprep.subr.bf16.mxu0 %v6199_v18  ;;  %v3821_v33 = vld [vmem:[#allocation2 + $0x13] sm:$0xff] }
0x16d3   :  { %v7665_v30 = vmul.f32 %v3477_v23, %v6649_v46  ;;  %v6200_v57 = vld [vmem:[%s7912_s14 + $0x68] sm:$0xff]   ;;  %v6186_v37 = vld [vmem:[%s7910_s12 + $0xd8] sm:$0xff]  }
0x16d4   :  { %v3514_v5 = vld [vmem:[#allocation2 + $0x31] sm:$0xff] }
0x16d5   :  { %3493 = vst.msk [vmem:[#allocation2 + $0x74] sm:$0xff] %vm146_vm0, %v7665_v30  ;;  %v3520_v61 = vpack.c.bf16 %v3514_v5, %v3513_v60  ;;  %v3515_v62 = vld [vmem:[#allocation2 + $0x41] sm:$0xff]  ;;  %v3709_v25 = vld [vmem:[#allocation2 + $0x32] sm:$0xff]  ;;  %5887 = vmatpush3.bf16.msra.mxu0 %v6199_v18 }
0x16d6   :  { %v3498_v39 = vld [vmem:[#allocation2 + $0x40] sm:$0xff]  ;;  %v3715_v55 = vpack.c.bf16 %v3709_v25, %v3708_v1  ;;  %5888 = vmatprep.subr.bf16.mxu0 %v6200_v57  ;;  %v3935_v41 = vld [vmem:[#allocation2 + $0x14] sm:$0xff] }
0x16d7   :  { %5775 = vmatmul.mubr.msk.bf16.vlgmr.msra.gmra.mrb[60].mxu1 %vm146_vm0, %v3520_v61  ;;  %v3710_v54 = vld [vmem:[#allocation2 + $0x42] sm:$0xff]  ;;  %v3937_v4 = vld [vmem:[#allocation2 + $0x34] sm:$0xff] }
0x16d8   :  { %5783 = vmatpush3.bf16.msra.mxu1 %v7611_v42  ;;  %v3516_v48 = vld [vmem:[#allocation2 + $0x51] sm:$0xff]  ;;  %v3820_v5 = vld [vmem:[#allocation2 + $0x3] sm:$0xff] }
0x16d9   :  { %v3521_v52 = vpack.c.bf16 %v3516_v48, %v3515_v62  ;;  %5784 = vmatprep.subr.bf16.mxu1 %v6180_v11  ;;  %v3517_v36 = vld [vmem:[#allocation2 + $0x61] sm:$0xff]  ;;  %v3497_v42 = vld [vmem:[#allocation2 + $0x30] sm:$0xff]  ;;  %5889 = vmatpush3.bf16.msra.mxu0 %v6200_v57  ;;  %v3828_v61 = vpack.c.bf16 %v3821_v33, %v3820_v5 }
0x16da   :  { %v3499_v6 = vld [vmem:[#allocation2 + $0x50] sm:$0xff]  ;;  %v3503_v2 = vpack.c.bf16 %v3497_v42, %v3496_v49  ;;  %v3500_v24 = vld [vmem:[#allocation2 + $0x60] sm:$0xff] }
0x16db   :  { %5778 = vmatprep.mubr.msk.bf16.mxu1 %vm146_vm0, %v3521_v52  ;;  %v3504_v58 = vpack.c.bf16 %v3499_v6, %v3498_v39  ;;  %v3711_v16 = vld [vmem:[#allocation2 + $0x52] sm:$0xff]  ;;  %v3712_v23 = vld [vmem:[#allocation2 + $0x62] sm:$0xff] }
0x16dc   :  { %v3518_v63 = vld [vmem:[#allocation2 + $0x71] sm:$0xff]  ;;  %5785 = vmatpush3.bf16.msra.mxu1 %v6180_v11  ;;  %v3716_v19 = vpack.c.bf16 %v3711_v16, %v3710_v54  ;;  %v3822_v48 = vld [vmem:[#allocation2 + $0x23] sm:$0xff] }
0x16dd   :  { %v3522_v56 = vpack.c.bf16 %v3518_v63, %v3517_v36  ;;  %5794 = vmatprep.subr.bf16.mxu1 %v6181_v44  ;;  %v3501_v29 = vld [vmem:[#allocation2 + $0x70] sm:$0xff]  ;;  %v6187_v63 = vld [vmem:[%s7910_s12 + $0xe0] sm:$0xff]  }
0x16de   :  { %v3505_v3 = vpack.c.bf16 %v3501_v29, %v3500_v24  ;;  %v3713_v9 = vld [vmem:[#allocation2 + $0x72] sm:$0xff]  ;;  %v3934_v6 = vld [vmem:[#allocation2 + $0x4] sm:$0xff] }
0x16df   :  { %5779 = vmatmul.mubr.msk.bf16.gmra.mrb[64].mxu1 %vm146_vm0, %v3522_v56  ;;  %v3717_v60 = vpack.c.bf16 %v3713_v9, %v3712_v23  ;;  %v3823_v11 = vld [vmem:[#allocation2 + $0x33] sm:$0xff]  ;;  %v3942_v49 = vpack.c.bf16 %v3935_v41, %v3934_v6  ;;  %v3936_v39 = vld [vmem:[#allocation2 + $0x24] sm:$0xff] }
0x16e0   :  { %5786 = vmatprep.mubr.msk.bf16.mxu1 %vm146_vm0, %v3502_v26  ;;  %v3825_v62 = vld [vmem:[#allocation2 + $0x53] sm:$0xff]  ;;  %v3829_v52 = vpack.c.bf16 %v3823_v11, %v3822_v48  ;;  %v3826_v26 = vld [vmem:[#allocation2 + $0x63] sm:$0xff] }
0x16e1   :  { %v3827_v56 = vld [vmem:[#allocation2 + $0x73] sm:$0xff]  ;;  %v3938_v40 = vld [vmem:[#allocation2 + $0x44] sm:$0xff] }
0x16e2   :  { %v3831_v42 = vpack.c.bf16 %v3827_v56, %v3826_v26  ;;  %v3941_v29 = vld [vmem:[#allocation2 + $0x74] sm:$0xff]  ;;  %v3940_v24 = vld [vmem:[#allocation2 + $0x64] sm:$0xff] }
0x16e3   :  { %v4049_v59 = vld [vmem:[#allocation2 + $0x15] sm:$0xff]  ;;  %v3945_v7 = vpack.c.bf16 %v3941_v29, %v3940_v24  ;;  %v4050_v25 = vld [vmem:[#allocation2 + $0x25] sm:$0xff] }
0x16e4   :  { %v4053_v18 = vld [vmem:[#allocation2 + $0x55] sm:$0xff]  ;;  %v4052_v1 = vld [vmem:[#allocation2 + $0x45] sm:$0xff] }
0x16e5   :  { %v4058_v54 = vpack.c.bf16 %v4053_v18, %v4052_v1  ;;  %v4055_v57 = vld [vmem:[#allocation2 + $0x75] sm:$0xff]  ;;  %v4162_v33 = vld [vmem:[#allocation2 + $0x6] sm:$0xff] }
0x16e6   :  { %v4167_v5 = vld [vmem:[#allocation2 + $0x56] sm:$0xff]  ;;  %v6192_v48 = vld [vmem:[%s7910_s12 + $0x108] sm:$0xff]  }
0x16e7   :  { %5787 = vmatmul.mubr.msk.bf16.vlgmr.msra.gmra.mrb[60].mxu1 %vm146_vm0, %v3503_v2  ;;  %v3939_v2 = vld [vmem:[#allocation2 + $0x54] sm:$0xff]  ;;  %v4276_v41 = vld [vmem:[#allocation2 + $0x7] sm:$0xff] }
0x16e8   :  { %5790 = vmatprep.mubr.msk.bf16.mxu1 %vm146_vm0, %v3504_v58  ;;  %5795 = vmatpush3.bf16.msra.mxu1 %v6181_v44  ;;  %v3824_v44 = vld [vmem:[#allocation2 + $0x43] sm:$0xff]  ;;  %v3944_v14 = vpack.c.bf16 %v3939_v2, %v3938_v40  ;;  %v4281_v6 = vld [vmem:[#allocation2 + $0x57] sm:$0xff] }
0x16e9   :  { %5796 = vmatprep.subr.bf16.mxu1 %v6182_v17  ;;  %v3830_v36 = vpack.c.bf16 %v3825_v62, %v3824_v44  ;;  %v6188_v58 = vld [vmem:[%s7910_s12 + $0xe8] sm:$0xff]   ;;  %v6193_v44 = vld [vmem:[%s7910_s12 + $0x110] sm:$0xff]   ;;  %v4393_v24 = vld [vmem:[#allocation2 + $0x38] sm:$0xff] }
0x16ea   :  { %v4166_v62 = vld [vmem:[#allocation2 + $0x46] sm:$0xff]  ;;  %v4283_v40 = vld [vmem:[#allocation2 + $0x77] sm:$0xff] }
0x16eb   :  { %v4280_v2 = vld [vmem:[#allocation2 + $0x47] sm:$0xff] }
0x16ec   :  { %5797 = vmatpush3.bf16.msra.mxu1 %v6182_v17  ;;  %v3943_v17 = vpack.c.bf16 %v3937_v4, %v3936_v39  ;;  %v6194_v39 = vld [vmem:[%s7910_s12 + $0x118] sm:$0xff]   ;;  %v4390_v29 = vld [vmem:[#allocation2 + $0x8] sm:$0xff] }
0x16ed   :  { %5806 = vmatprep.subr.bf16.mxu1 %v6183_v38 }
0x16ef   :  { %5791 = vmatmul.mubr.msk.bf16.gmra.mrb[64].mxu1 %vm146_vm0, %v3505_v3  ;;  %v4048_v3 = vld [vmem:[#allocation2 + $0x5] sm:$0xff] }
0x16f0   :  { %5798 = vmatprep.mubr.msk.bf16.mxu1 %vm146_vm0, %v3714_v8  ;;  %v4056_v31 = vpack.c.bf16 %v4049_v59, %v4048_v3  ;;  %v4051_v8 = vld [vmem:[#allocation2 + $0x35] sm:$0xff]  ;;  %v4392_v3 = vld [vmem:[#allocation2 + $0x28] sm:$0xff] }
0x16f1   :  { %v4057_v16 = vpack.c.bf16 %v4051_v8, %v4050_v25  ;;  %v4394_v8 = vld [vmem:[#allocation2 + $0x48] sm:$0xff]  ;;  %v4397_v25 = vld [vmem:[#allocation2 + $0x78] sm:$0xff] }
0x16f7   :  { %5799 = vmatmul.mubr.msk.bf16.vlgmr.msra.gmra.mrb[60].mxu1 %vm146_vm0, %v3715_v55  ;;  %v6190_v55 = vld [vmem:[%s7910_s12 + $0xf8] sm:$0xff]  }
0x16f8   :  { %5802 = vmatprep.mubr.msk.bf16.mxu1 %vm146_vm0, %v3716_v19  ;;  %5807 = vmatpush3.bf16.msra.mxu1 %v6183_v38  ;;  %v6189_v38 = vld [vmem:[%s7910_s12 + $0xf0] sm:$0xff]  }
0x16f9   :  { %5808 = vmatprep.subr.bf16.mxu1 %v6184_v45  ;;  %v4163_v19 = vld [vmem:[#allocation2 + $0x16] sm:$0xff] }
0x16fa   :  { %v4170_v23 = vpack.c.bf16 %v4163_v19, %v4162_v33 }
0x16fc   :  { %5809 = vmatpush3.bf16.msra.mxu1 %v6184_v45  ;;  %v6191_v45 = vld [vmem:[%s7910_s12 + $0x100] sm:$0xff]  }
0x16fd   :  { %5818 = vmatprep.subr.bf16.mxu1 %v6185_v28 }
0x16ff   :  { %5803 = vmatmul.mubr.msk.bf16.gmra.mrb[64].mxu1 %vm146_vm0, %v3717_v60  ;;  %v4165_v60 = vld [vmem:[#allocation2 + $0x36] sm:$0xff] }
0x1700   :  { %5810 = vmatprep.mubr.msk.bf16.mxu1 %vm146_vm0, %v3828_v61  ;;  %v4164_v61 = vld [vmem:[#allocation2 + $0x26] sm:$0xff] }
0x1701   :  { %v4171_v11 = vpack.c.bf16 %v4165_v60, %v4164_v61 }
0x1707   :  { %5811 = vmatmul.mubr.msk.bf16.vlgmr.msra.gmra.mrb[60].mxu1 %vm146_vm0, %v3829_v52  ;;  %v4172_v52 = vpack.c.bf16 %v4167_v5, %v4166_v62 }
0x1708   :  { %5814 = vmatprep.mubr.msk.bf16.mxu1 %vm146_vm0, %v3830_v36  ;;  %5819 = vmatpush3.bf16.msra.mxu1 %v6185_v28  ;;  %v4054_v28 = vld [vmem:[#allocation2 + $0x65] sm:$0xff]  ;;  %v4277_v36 = vld [vmem:[#allocation2 + $0x17] sm:$0xff] }
0x1709   :  { %5820 = vmatprep.subr.bf16.mxu1 %v6186_v37  ;;  %v4059_v9 = vpack.c.bf16 %v4055_v57, %v4054_v28  ;;  %v4284_v26 = vpack.c.bf16 %v4277_v36, %v4276_v41 }
0x170c   :  { %5821 = vmatpush3.bf16.msra.mxu1 %v6186_v37  ;;  %v4169_v37 = vld [vmem:[#allocation2 + $0x76] sm:$0xff] }
0x170d   :  { %5830 = vmatprep.subr.bf16.mxu1 %v6187_v63 }
0x170f   :  { %5815 = vmatmul.mubr.msk.bf16.gmra.mrb[64].mxu1 %vm146_vm0, %v3831_v42  ;;  %v4279_v42 = vld [vmem:[#allocation2 + $0x37] sm:$0xff] }
0x1710   :  { %5822 = vmatprep.mubr.msk.bf16.mxu1 %vm146_vm0, %v3942_v49  ;;  %v4278_v49 = vld [vmem:[#allocation2 + $0x27] sm:$0xff] }
0x1711   :  { %v4285_v4 = vpack.c.bf16 %v4279_v42, %v4278_v49 }
0x1717   :  { %5823 = vmatmul.mubr.msk.bf16.vlgmr.msra.gmra.mrb[60].mxu1 %vm146_vm0, %v3943_v17  ;;  %v4286_v17 = vpack.c.bf16 %v4281_v6, %v4280_v2 }
0x1718   :  { %5826 = vmatprep.mubr.msk.bf16.mxu1 %vm146_vm0, %v3944_v14  ;;  %5831 = vmatpush3.bf16.msra.mxu1 %v6187_v63  ;;  %v4168_v63 = vld [vmem:[#allocation2 + $0x66] sm:$0xff] }
0x1719   :  { %5832 = vmatprep.subr.bf16.mxu1 %v6188_v58  ;;  %v4173_v56 = vpack.c.bf16 %v4169_v37, %v4168_v63  ;;  %v4282_v14 = vld [vmem:[#allocation2 + $0x67] sm:$0xff] }
0x171c   :  { %5833 = vmatpush3.bf16.msra.mxu1 %v6188_v58  ;;  %v4391_v58 = vld [vmem:[#allocation2 + $0x18] sm:$0xff] }
0x171d   :  { %5842 = vmatprep.subr.bf16.mxu1 %v6189_v38  ;;  %v4398_v59 = vpack.c.bf16 %v4391_v58, %v4390_v29  ;;  %v5213_v58 = vld [vmem:[%s7913_s15 + $0x1] ss:$0 sm:$0xff] }
0x171f   :  { %5827 = vmatmul.mubr.msk.bf16.gmra.mrb[64].mxu1 %vm146_vm0, %v3945_v7  ;;  %v4395_v7 = vld [vmem:[#allocation2 + $0x58] sm:$0xff] }
0x1720   :  { %5834 = vmatprep.mubr.msk.bf16.mxu1 %vm146_vm0, %v4056_v31  ;;  %v4399_v31 = vpack.c.bf16 %v4393_v24, %v4392_v3  ;;  %v4400_v18 = vpack.c.bf16 %v4395_v7, %v4394_v8 }
0x1727   :  { %5835 = vmatmul.mubr.msk.bf16.vlgmr.msra.gmra.mrb[60].mxu1 %vm146_vm0, %v4057_v16  ;;  %v4396_v16 = vld [vmem:[#allocation2 + $0x68] sm:$0xff] }
0x1728   :  { %5838 = vmatprep.mubr.msk.bf16.mxu1 %vm146_vm0, %v4058_v54  ;;  %5843 = vmatpush3.bf16.msra.mxu1 %v6189_v38  ;;  %v4287_v38 = vpack.c.bf16 %v4283_v40, %v4282_v14  ;;  %v4401_v1 = vpack.c.bf16 %v4397_v25, %v4396_v16  ;;  %v6202_v54 = vld [vmem:[%s7912_s14 + $0x78] sm:$0xff]  }
0x1729   :  { %5844 = vmatprep.subr.bf16.mxu1 %v6190_v55 }
0x172c   :  { %5845 = vmatpush3.bf16.msra.mxu1 %v6190_v55  ;;  %v6201_v55 = vld [vmem:[%s7912_s14 + $0x70] sm:$0xff]  }
0x172d   :  { %5854 = vmatprep.subr.bf16.mxu1 %v6191_v45  ;;  %5890 = vmatprep.subr.bf16.mxu0 %v6201_v55 }
0x172e   :  { %5891 = vmatpush3.bf16.msra.mxu0 %v6201_v55 }
0x172f   :  { %5839 = vmatmul.mubr.msk.bf16.gmra.mrb[64].mxu1 %vm146_vm0, %v4059_v9  ;;  %5892 = vmatprep.subr.bf16.mxu0 %v6202_v54 }
0x1730   :  { %5846 = vmatprep.mubr.msk.bf16.mxu1 %vm146_vm0, %v4170_v23 }
0x1732   :  { %5893 = vmatpush3.bf16.msra.mxu0 %v6202_v54 }
0x1737   :  { %5847 = vmatmul.mubr.msk.bf16.vlgmr.msra.gmra.mrb[60].mxu1 %vm146_vm0, %v4171_v11 }
0x1738   :  { %5850 = vmatprep.mubr.msk.bf16.mxu1 %vm146_vm0, %v4172_v52  ;;  %5855 = vmatpush3.bf16.msra.mxu1 %v6191_v45  ;;  %v5196_v45 = vld [vmem:[%s7911_s13 + $0x1] ss:$0 sm:$0xff] }
0x1739   :  { %5856 = vmatprep.subr.bf16.mxu1 %v6192_v48 }
0x173c   :  { %5857 = vmatpush3.bf16.msra.mxu1 %v6192_v48 }
0x173d   :  { %5866 = vmatprep.subr.bf16.mxu1 %v6193_v44 }
0x173f   :  { %5851 = vmatmul.mubr.msk.bf16.gmra.mrb[64].mxu1 %vm146_vm0, %v4173_v56 }
0x1740   :  { %5858 = vmatprep.mubr.msk.bf16.mxu1 %vm146_vm0, %v4284_v26 }
0x1747   :  { %5859 = vmatmul.mubr.msk.bf16.vlgmr.msra.gmra.mrb[60].mxu1 %vm146_vm0, %v4285_v4 }
0x1748   :  { %5862 = vmatprep.mubr.msk.bf16.mxu1 %vm146_vm0, %v4286_v17  ;;  %5867 = vmatpush3.bf16.msra.mxu1 %v6193_v44 }
0x1749   :  { %5868 = vmatprep.subr.bf16.mxu1 %v6194_v39 }
0x174c   :  { %5869 = vmatpush3.bf16.msra.mxu1 %v6194_v39 }
0x174f   :  { %5863 = vmatmul.mubr.msk.bf16.gmra.mrb[64].mxu1 %vm146_vm0, %v4287_v38 }
0x1750   :  { %5870 = vmatprep.mubr.msk.bf16.mxu1 %vm146_vm0, %v4398_v59 }
0x1757   :  { %5871 = vmatmul.mubr.msk.bf16.vlgmr.msra.gmra.mrb[60].mxu1 %vm146_vm0, %v4399_v31 }
0x1758   :  { %5874 = vmatprep.mubr.msk.bf16.mxu1 %vm146_vm0, %v4400_v18 }
0x175f   :  { %5875 = vmatmul.mubr.msk.bf16.gmra.mrb[64].mxu1 %vm146_vm0, %v4401_v1 }
0x182a   :  { %v5872_v57 = vpop.f32.mrb[60].mxu1 }
0x182b   :  { %v4511_v19 = vadd.f32 %v5872_v57, %v5196_v45  ;;  %v4465_v28 = vpop.f32.mrb[61].mxu1 }
0x182c   :  { %v4509_v9 = vadd.f32 %v5196_v45, %v4465_v28  ;;  %v5873_v33 = vpop.f32.mrb[62].mxu1 }
0x182d   :  { %v4512_v23 = vadd.f32 %v5873_v33, %v5196_v45  ;;  %v4468_v60 = vpop.f32.mrb[63].mxu1  ;;  %v4519_v61 = vmax.f32 %v4511_v19, 0.0 }
0x182e   :  { %v4510_v5 = vadd.f32 %v5196_v45, %v4468_v60  ;;  %v4517_v62 = vmax.f32 %v4509_v9, 0.0 }
0x182f   :  { %v4520_v11 = vmax.f32 %v4512_v23, 0.0 }
0x1830   :  { %v4518_v48 = vmax.f32 %v4510_v5, 0.0 }
0x1831   :  { %v4526_v52 = vpack.c.bf16 %v4520_v11, %v4519_v61 }
0x1832   :  { %v4525_v44 = vpack.c.bf16 %v4518_v48, %v4517_v62  ;;  %v5876_v37 = vpop.f32.mrb[64].mxu1 }
0x1833   :  { %v4515_v36 = vadd.f32 %v5876_v37, %v5196_v45  ;;  %v4481_v63 = vpop.f32.mrb[65].mxu1 }
0x1834   :  { %v4513_v56 = vadd.f32 %v5196_v45, %v4481_v63  ;;  %v5877_v41 = vpop.f32.mrb[66].mxu1  ;;  %5894 = vmatprep.mubr.bf16.mxu0 %v4525_v44 }
0x1835   :  { %v4516_v26 = vadd.f32 %v5877_v41, %v5196_v45  ;;  %v4484_v42 = vpop.f32.mrb[67].mxu1  ;;  %5895 = vmatmul.mubr.bf16.vlgmr.msra.gmra.mrb[52].mxu0 %v4526_v52  ;;  %v4523_v49 = vmax.f32 %v4515_v36, 0.0 }
0x1836   :  { %v4514_v6 = vadd.f32 %v5196_v45, %v4484_v42  ;;  %v4521_v2 = vmax.f32 %v4513_v56, 0.0 }
0x1837   :  { %v4524_v4 = vmax.f32 %v4516_v26, 0.0 }
0x1838   :  { %v4522_v39 = vmax.f32 %v4514_v6, 0.0 }
0x1839   :  { %v4528_v17 = vpack.c.bf16 %v4524_v4, %v4523_v49 }
0x183a   :  { %v4527_v40 = vpack.c.bf16 %v4522_v39, %v4521_v2 }
0x183c   :  { %5898 = vmatprep.mubr.bf16.mxu0 %v4527_v40 }
0x183d   :  { %5899 = vmatmul.mubr.bf16.gmra.mrb[56].mxu0 %v4528_v17 }
0x183e   :  { %5918 = vmatprep.mubr.msk.f32.mxu0 %vm6430_vm1, %v6428_v20 }
0x1908   :  { %v5896_v14 = vpop.f32.mrb[52].mxu0 }
0x1909   :  { %v4633_v38 = vpop.f32.mrb[53].mxu0  ;;  %v4642_v29 = vadd.f32 %v5896_v14, %v5213_v58 }
0x190a   :  { %v4634_v59 = vadd.f32 %v5213_v58, %v4633_v38  ;;  %v5897_v24 = vpop.f32.mrb[54].mxu0 }
0x190b   :  { %v4636_v7 = vpop.f32.mrb[55].mxu0  ;;  %v4645_v31 = vadd.f32 %v5897_v24, %v5213_v58  ;;  %v4666_v18 = vadd.f32 %v4642_v29, %v7636_v10 }
0x190c   :  { %v4664_v3 = vadd.f32 %v4634_v59, %v7624_v53  ;;  %v4637_v8 = vadd.f32 %v5213_v58, %v4636_v7 }
0x190d   :  { %v4667_v1 = vadd.f32 %v4645_v31, %v7643_v27  ;;  %v4680_v53 = vsel %vm146_vm0, %v4666_v18, 0.0 }
0x190e   :  { %v4665_v25 = vadd.f32 %v4637_v8, %v7629_v32  ;;  %v4674_v16 = vsel %vm146_vm0, %v4664_v3, 0.0 }
0x190f   :  { %4675 = vadd.xlane.f32.xlu1 %v4674_v16  ;;  %v4683_v23 = vsel %vm146_vm0, %v4667_v1, 0.0 }
0x1910   :  { %v5900_v55 = vpop.f32.mrb[56].mxu0  ;;  %v4677_v54 = vsel %vm146_vm0, %v4665_v25, 0.0 }
0x1911   :  { %4678 = vadd.xlane.f32.xlu0 %v4677_v54  ;;  %v4649_v45 = vpop.f32.mrb[57].mxu0  ;;  %v4658_v57 = vadd.f32 %v5900_v55, %v5213_v58 }
0x1912   :  { %v4650_v19 = vadd.f32 %v5213_v58, %v4649_v45  ;;  %v5901_v28 = vpop.f32.mrb[58].mxu0 }
0x1913   :  { %4681 = vadd.xlane.f32.xlu1 %v4680_v53  ;;  %v4652_v9 = vpop.f32.mrb[59].mxu0  ;;  %v4661_v32 = vadd.f32 %v5901_v28, %v5213_v58  ;;  %v4670_v27 = vadd.f32 %v4658_v57, %v7657_v0  ;;  %v4811_v53 = vld [vmem:[#allocation3] sm:$0x1] }
0x1914   :  { %v4668_v10 = vadd.f32 %v4650_v19, %v7646_v15  ;;  %v4653_v33 = vadd.f32 %v5213_v58, %v4652_v9  ;;  %v6429_v9 = vmov 0.0|0.0  }
0x1915   :  { %4684 = vadd.xlane.f32.xlu0 %v4683_v23  ;;  %v4671_v61 = vadd.f32 %v4661_v32, %v7665_v30  ;;  %v4692_v62 = vsel %vm146_vm0, %v4670_v27, 0.0  ;;  %5921 = vmatprep.subr.bf16.mxu0 %v6429_v9 }
0x1916   :  { %v4669_v60 = vadd.f32 %v4653_v33, %v7654_v51  ;;  %v4686_v5 = vsel %vm146_vm0, %v4668_v10, 0.0 }
0x1917   :  { %4687 = vadd.xlane.f32.xlu1 %v4686_v5  ;;  %v4695_v15 = vsel %vm146_vm0, %v4671_v61, 0.0 }
0x1918   :  { %v4689_v11 = vsel %vm146_vm0, %v4669_v60, 0.0 }
0x1919   :  { %4690 = vadd.xlane.f32.xlu0 %v4689_v11 }
0x191b   :  { %4693 = vadd.xlane.f32.xlu1 %v4692_v62 }
0x191d   :  { %4696 = vadd.xlane.f32.xlu0 %v4695_v15 }
0x199c   :  { %v4676_v48 = vpop.xlane.xlu1 %4675 }
0x199d   :  { %v4698_v52 = vmul.f32 0.03125, %v4676_v48 }
0x199e   :  { %v4679_v44 = vpop.xlane.xlu0 %4678 }
0x199f   :  { %v7796_v0 = vsub.f32 %v4664_v3, %v4698_v52  ;;  %v4699_v51 = vmul.f32 0.03125, %v4679_v44 }
0x19a0   :  { %v4682_v37 = vpop.xlane.xlu1 %4681 }
0x19a1   :  { %v7798_v36 = vsub.f32 %v4665_v25, %v4699_v51  ;;  %v4700_v63 = vmul.f32 0.03125, %v4682_v37  ;;  %v4714_v30 = vmul.f32 %v7796_v0, %v7796_v0 }
0x19a2   :  { %v4685_v56 = vpop.xlane.xlu0 %4684 }
0x19a3   :  { %v7802_v41 = vsub.f32 %v4666_v18, %v4700_v63  ;;  %v4701_v26 = vmul.f32 0.03125, %v4685_v56  ;;  %v4722_v42 = vsel %vm146_vm0, %v4714_v30, 0.0  ;;  %v4715_v6 = vmul.f32 %v7798_v36, %v7798_v36 }
0x19a4   :  { %4723 = vadd.xlane.f32.xlu1 %v4722_v42  ;;  %v4688_v49 = vpop.xlane.xlu1 %4687  ;;  %v5222_v42 = vld [vmem:[%s7914_s16 + $0x1] ss:$0 sm:$0xff] }
0x19a5   :  { %v7807_v4 = vsub.f32 %v4667_v1, %v4701_v26  ;;  %v4702_v2 = vmul.f32 0.03125, %v4688_v49  ;;  %v4725_v39 = vsel %vm146_vm0, %v4715_v6, 0.0  ;;  %v4716_v17 = vmul.f32 %v7802_v41, %v7802_v41 }
0x19a6   :  { %4726 = vadd.xlane.f32.xlu0 %v4725_v39  ;;  %v4691_v40 = vpop.xlane.xlu0 %4690 }
0x19a7   :  { %v7812_v58 = vsub.f32 %v4668_v10, %v4702_v2  ;;  %v4703_v14 = vmul.f32 0.03125, %v4691_v40  ;;  %v4728_v38 = vsel %vm146_vm0, %v4716_v17, 0.0  ;;  %v4717_v29 = vmul.f32 %v7807_v4, %v7807_v4  ;;  %v5223_v17 = vld [vmem:[%s7915_s17 + $0x1] ss:$0 sm:$0xff] }
0x19a8   :  { %4729 = vadd.xlane.f32.xlu1 %v4728_v38  ;;  %v4694_v59 = vpop.xlane.xlu1 %4693 }
0x19a9   :  { %v7817_v24 = vsub.f32 %v4669_v60, %v4703_v14  ;;  %v4704_v7 = vmul.f32 0.03125, %v4694_v59  ;;  %v4731_v3 = vsel %vm146_vm0, %v4717_v29, 0.0  ;;  %v4718_v31 = vmul.f32 %v7812_v58, %v7812_v58 }
0x19aa   :  { %4732 = vadd.xlane.f32.xlu0 %v4731_v3  ;;  %v4697_v8 = vpop.xlane.xlu0 %4696 }
0x19ab   :  { %v7822_v18 = vsub.f32 %v4670_v27, %v4704_v7  ;;  %v4705_v25 = vmul.f32 0.03125, %v4697_v8  ;;  %v4734_v16 = vsel %vm146_vm0, %v4718_v31, 0.0  ;;  %v4719_v1 = vmul.f32 %v7817_v24, %v7817_v24 }
0x19ac   :  { %4735 = vadd.xlane.f32.xlu1 %v4734_v16 }
0x19ad   :  { %v7827_v55 = vsub.f32 %v4671_v61, %v4705_v25  ;;  %v4737_v54 = vsel %vm146_vm0, %v4719_v1, 0.0  ;;  %v4720_v45 = vmul.f32 %v7822_v18, %v7822_v18 }
0x19ae   :  { %4738 = vadd.xlane.f32.xlu0 %v4737_v54 }
0x19af   :  { %v4740_v57 = vsel %vm146_vm0, %v4720_v45, 0.0  ;;  %v4721_v19 = vmul.f32 %v7827_v55, %v7827_v55 }
0x19b0   :  { %4741 = vadd.xlane.f32.xlu1 %v4740_v57 }
0x19b1   :  { %v4743_v28 = vsel %vm146_vm0, %v4721_v19, 0.0 }
0x19b2   :  { %4744 = vadd.xlane.f32.xlu0 %v4743_v28 }
0x19c1   :  { %4814 = vperm.xlu1 %6102, %v4811_v53  }
0x1a31   :  { %v4724_v10 = vpop.xlane.xlu1 %4723 }
0x1a32   :  { %v4746_v32 = vmul.f32 0.03125, %v4724_v10 }
0x1a33   :  { %v4727_v33 = vpop.xlane.xlu0 %4726 }
0x1a34   :  { %v4754_v23 = vadd.f32 1e-05, %v4746_v32  ;;  %v4747_v27 = vmul.f32 0.03125, %v4727_v33 }
0x1a35   :  { %v4730_v60 = vpop.xlane.xlu1 %4729 }
0x1a36   :  { %6379 = vrsqrt.f32 %v4754_v23  ;;  %v4755_v5 = vadd.f32 1e-05, %v4747_v27  ;;  %v4748_v61 = vmul.f32 0.03125, %v4730_v60 }
0x1a37   :  { %v4733_v11 = vpop.xlane.xlu0 %4732 }
0x1a38   :  { %6381 = vrsqrt.f32 %v4755_v5  ;;  %v4756_v62 = vadd.f32 1e-05, %v4748_v61  ;;  %v4749_v15 = vmul.f32 0.03125, %v4733_v11 }
0x1a39   :  { %v4736_v48 = vpop.xlane.xlu1 %4735 }
0x1a3a   :  { %6383 = vrsqrt.f32 %v4756_v62  ;;  %v4757_v52 = vadd.f32 1e-05, %v4749_v15  ;;  %v4750_v44 = vmul.f32 0.03125, %v4736_v48 }
0x1a3b   :  { %v4739_v51 = vpop.xlane.xlu0 %4738 }
0x1a3c   :  { %6385 = vrsqrt.f32 %v4757_v52  ;;  %v4758_v20 = vadd.f32 1e-05, %v4750_v44  ;;  %v4751_v37 = vmul.f32 0.03125, %v4739_v51 }
0x1a3d   :  { %v4742_v63 = vpop.xlane.xlu1 %4741 }
0x1a3e   :  { %v4759_v30 = vadd.f32 1e-05, %v4751_v37  ;;  %6387 = vrsqrt.f32 %v4758_v20  ;;  %v4752_v6 = vmul.f32 0.03125, %v4742_v63 }
0x1a3f   :  { %v4745_v56 = vpop.xlane.xlu0 %4744 }
0x1a40   :  { %v6380_v26 = vpop.eup %6379  ;;  %6389 = vrsqrt.f32 %v4759_v30  ;;  %v4753_v49 = vmul.f32 0.03125, %v4745_v56  ;;  %v4760_v59 = vadd.f32 1e-05, %v4752_v6 }
0x1a41   :  { %v4770_v2 = vmul.f32 %v6380_v26, %v7796_v0 }
0x1a42   :  { %v6382_v39 = vpop.eup %6381  ;;  %v4761_v40 = vadd.f32 1e-05, %v4753_v49 }
0x1a43   :  { %v4782_v14 = vmul.f32 %v5222_v42, %v4770_v2  ;;  %v4771_v38 = vmul.f32 %v6382_v39, %v7798_v36 }
0x1a44   :  { %v6384_v29 = vpop.eup %6383  ;;  %6391 = vrsqrt.f32 %v4761_v40 }
0x1a45   :  { %v4783_v7 = vmul.f32 %v5222_v42, %v4771_v38  ;;  %v4772_v3 = vmul.f32 %v6384_v29, %v7802_v41  ;;  %v4794_v31 = vadd.f32 %v5223_v17, %v4782_v14  ;;  %6393 = vrsqrt.f32 %v4760_v59 }
0x1a46   :  { %v6386_v8 = vpop.eup %6385 }
0x1a47   :  { %v4773_v25 = vmul.f32 %v6386_v8, %v7807_v4  ;;  %v4795_v0 = vadd.f32 %v5223_v17, %v4783_v7  ;;  %v4784_v1 = vmul.f32 %v5222_v42, %v4772_v3  ;;  %v4802_v45 = vmul.f32 %v4794_v31, %v6574_v13 }
0x1a48   :  { %v6388_v16 = vpop.eup %6387 }
0x1a49   :  { %v4785_v54 = vmul.f32 %v5222_v42, %v4773_v25  ;;  %v4803_v57 = vmul.f32 %v4795_v0, %v6595_v22  ;;  %v4774_v53 = vmul.f32 %v6388_v16, %v7812_v58  ;;  %v4796_v10 = vadd.f32 %v5223_v17, %v4784_v1 }
0x1a4a   :  { %v6390_v36 = vpop.eup %6389 }
0x1a4b   :  { %v4775_v41 = vmul.f32 %v6390_v36, %v7817_v24  ;;  %v5922_v28 = vpack.c.bf16 %v4803_v57, %v4802_v45  ;;  %v4797_v4 = vadd.f32 %v5223_v17, %v4785_v54  ;;  %v4786_v33 = vmul.f32 %v5222_v42, %v4774_v53 }
0x1a4c   :  { %v4804_v23 = vmul.f32 %v4796_v10, %v6572_v12 }
0x1a4d   :  { %5924 = vmatpush3.bf16.xpose.msk.msra.mxu0 %vm7852_vm4, %v5922_v28  ;;  %v4787_v13 = vmul.f32 %v5222_v42, %v4775_v41  ;;  %v4805_v22 = vmul.f32 %v4797_v4, %v6593_v21  ;;  %v4798_v61 = vadd.f32 %v5223_v17, %v4786_v33 }
0x1a4e   :  { %5925 = vmatprep.subr.bf16.mxu0 %v6429_v9  ;;  %v6392_v32 = vpop.eup %6391 }
0x1a4f   :  { %v6394_v27 = vpop.eup %6393  ;;  %v4777_v24 = vmul.f32 %v6392_v32, %v7827_v55  ;;  %v5926_v60 = vpack.c.bf16 %v4805_v22, %v4804_v23  ;;  %v4799_v5 = vadd.f32 %v5223_v17, %v4787_v13  ;;  %v4806_v15 = vmul.f32 %v4798_v61, %v6624_v35  ;;  %v4815_v35 = vpop.permute.xlu1 %4814 }
0x1a50   :  { %v4776_v58 = vmul.f32 %v6394_v27, %v7822_v18  ;;  %v4820_v51 = vrot.slane %v4815_v35, %v127_v50 }
0x1a51   :  { %v4789_v11 = vmul.f32 %v5222_v42, %v4777_v24  ;;  %v4807_v21 = vmul.f32 %v4799_v5, %v6622_v34  ;;  %v4810_v34 = vld [vmem:[%s7916_s18] sm:$0x1]  ;;  %s6396_s18 = scalar_lea.vmem %s4928_s30, 16 }
0x1a52   :  { %v4788_v62 = vmul.f32 %v5222_v42, %v4776_v58  ;;  %p6397_p0 = scmp.ne.s32.totalorder %s4928_s30, %s6396_s18  ;;  %p6402_p2 = scmp.lt.s32.totalorder %s6400_s8, %s6396_s18 }
0x1a53   :  { %v4801_v12 = vadd.f32 %v5223_v17, %v4789_v11  ;;  %v5930_v48 = vpack.c.bf16 %v4807_v21, %v4806_v15 }
0x1a54   :  { %v4800_v55 = vadd.f32 %v5223_v17, %v4788_v62  ;;  %p6403_p3 = por %p6402_p2, %p6401_p1 }
0x1a55   :  { %5928 = vmatpush3.bf16.xpose.msk.msra.mxu0 %vm7852_vm4, %v5926_v60  ;;  %v4809_v18 = vmul.f32 %v4801_v12, %v6649_v46 }
0x1a56   :  { %5929 = vmatprep.subr.bf16.mxu0 %v6429_v9  ;;  %v4808_v52 = vmul.f32 %v4800_v55, %v6652_v47  ;;  %v6395_v47 = vld [vmem:[%s7933_s22] sm:$0x1]  ;;  %p6404_p4 = pnand %p6403_p3, %p6397_p0 }
0x1a58   :  { %v5934_v44 = vpack.c.bf16 %v4809_v18, %v4808_v52 }
0x1a5d   :  { %5932 = vmatpush3.bf16.xpose.msk.msra.mxu0 %vm7852_vm4, %v5930_v48 }
0x1a5e   :  { %5933 = vmatprep.subr.bf16.mxu0 %v6429_v9 }
0x1a65   :  { %5936 = vmatpush3.bf16.xpose.msk.msra.mxu0 %vm7852_vm4, %v5934_v44 }
0x1a6c   :  { %5919 = vmatmul.mubr.msk.f32.vlgmr.msra.gmra.mrb[60].mxu0 %vm146_vm0, %v4810_v34 }
0x1b3f   :  { %v4914_v20 = vpop.f32.mrb[60].mxu0 }
0x1b40   :  { %v4915_v46 = vadd.f32 %v4914_v20, %v4820_v51  ;;  %v5920_v9 = vpop.f32.mrb[61].mxu0 }
0x1b42   :  { %v4918_v37 = vmul.f32 %v6395_v47, %v4915_v46 }
0x1b44   :  { %4920 = vst.msk [vmem:[#allocation4] sm:$0x1] %vm4919_vm8, %v4918_v37 }
0x1b45   :  { %6407 = shalt.err (!%p6404_p4)
}
0x1b46   :  { %s6408_s27 = scalar_lea.hbm %s7918_s20, 16 }
0x1b47   :  { %p6409_p5 = scmp.ne.s32.totalorder %s7918_s20, %s6408_s27  ;;  %p6412_p6 = scmp.lt.u32.totalorder %s6408_s27, %s7918_s20 }
0x1b49   :  { %p6414_p7 = pnand %p6412_p6, %p6409_p5 }
0x1b4b   :  { %6417 = shalt.err (!%p6414_p7)
}
0x1b4c   :  { %4930 = dma.vmem_to_hbm [thread:$0]  %s4928_s30, 16, %s7918_s20, [#allocation5]  }
0x1b4d   :  { %6418 = dma.done.wait [#allocation5], 16  }
0x1b4e   :  { %6419 = vsyncadd [#allocation5], 4294967280 }
0x1b4f   :  { %4934 = vsyncpa [#allocation5], 1 }

</bundles_post_ra>
